<compile_context>
chip_gen: v6e
topology: v6e:2x2x1
jax: 0.10.0
libtpu: 0.0.40
codegen_flags: <defaults>
</compile_context>

<pallas_src>
import functools

import jax
import jax.numpy as jnp
from jax import lax
from jax.experimental import pallas as pl
from jax.experimental.pallas import tpu as pltpu

N_CG_ITERS = 20  # fixed CG iteration count (synthetic stand-in for M.recon_cg_batch)


# --------------------------------------------------------------------------- #
# Kernel
# --------------------------------------------------------------------------- #
def _inv_cg_kernel(rho_ref, aty_ref, mv_ref, g_ref, x_ref):
    """Solve (G + rho*I) x = AtY + rho*mv for every batch row with CG.

    rho_ref : SMEM (1, 1) f32 scalar   (the learned rho_l)
    aty_ref : VMEM (TB, Np) f32        (A^T y, image-space data term, zero-padded)
    mv_ref  : VMEM (TB, Np) f32        (current image estimate v, flattened)
    g_ref   : VMEM (Np, Np) bf16       (A^T A; rho*I applied in f32 inside matvec)
    x_ref   : VMEM (TB, Np) f32        (reconstruction output)
    """
    rho = rho_ref[0, 0]
    G = g_ref[...]                        # bf16, stays VMEM-resident across the grid
    mv = mv_ref[...]                      # f32 warm start
    rhs = aty_ref[...] + rho * mv         # f32 data term

    def matvec(p):
        # bf16 MXU matmul with f32 accumulation; rho*I shift kept in f32 on the
        # VPU (VALU slot has slack under the MXU, so this is effectively free
        # and avoids quantizing the diagonal to bf16).
        return jnp.dot(p.astype(jnp.bfloat16), G,
                       preferred_element_type=jnp.float32) + rho * p

    # Warm start from the current estimate v (standard for ADMM-style CG).
    x0 = mv
    r0 = rhs - matvec(x0)
    p0 = r0
    rs0 = jnp.sum(r0 * r0, axis=-1, keepdims=True)

    def body(_, carry):
        x, r, p, rs = carry
        Ap = matvec(p)
        pAp = jnp.sum(p * Ap, axis=-1, keepdims=True)
        alpha = rs / (pAp + 1e-12)            # exact divide (accuracy over 20 iters)
        x = x + alpha * p
        r = r - alpha * Ap
        rs_new = jnp.sum(r * r, axis=-1, keepdims=True)
        beta = rs_new / (rs + 1e-12)
        p = r + beta * p
        return x, r, p, rs_new

    # Static trip count -> fully unrolled so XLU reductions / VPU epilogue can
    # overlap with MXU work across iterations.
    x, _, _, _ = lax.fori_loop(0, N_CG_ITERS, body, (x0, r0, p0, rs0),
                               unroll=True)
    x_ref[...] = x


# --------------------------------------------------------------------------- #
# Hardware / config helpers (Python-level, outside jit)
# --------------------------------------------------------------------------- #
def _vmem_capacity_bytes():
    """Per-core VMEM capacity; query the chip, fall back to device_kind."""
    try:
        info = pltpu.get_tpu_info()
        cap = getattr(info, "vmem_capacity_bytes", None)
        if cap:
            return int(cap)
    except Exception:
        pass
    kind = jax.devices()[0].device_kind.lower()
    if "v7" in kind:
        return 64 * 1024 * 1024       # v7x: 64 MiB per TensorCore
    return 128 * 1024 * 1024          # v5e / v6e: 128 MiB


def _chip_config():
    """(batch-tile cap, number of TensorCores sharing the 'parallel' grid)."""
    kind = jax.devices()[0].device_kind.lower()
    is_v7 = "v7" in kind
    is_v6 = "v6" in kind
    tb_cap = 256 if (is_v6 or is_v7) else 128      # v5e MXU is 128-wide -> TB=256 is waste
    num_tc = 2 if (is_v7 or "v5p" in kind or "v4" in kind) else 1
    return tb_cap, num_tc


@functools.lru_cache(maxsize=None)
def _buffered_single_supported():
    """Probe (once) whether pipeline_mode=pl.Buffered(1) lowers and compiles."""
    if not hasattr(pl, "Buffered"):
        return False
    try:
        spec = pl.BlockSpec((8, 128), lambda i: (0, 0),
                            pipeline_mode=pl.Buffered(1))
    except TypeError:
        return False
    try:
        def _probe_kernel(x_ref, o_ref):
            o_ref[...] = x_ref[...] * 2.0

        fn = pl.pallas_call(
            _probe_kernel,
            out_shape=jax.ShapeDtypeStruct((8, 128), jnp.float32),
            grid=(2,),
            in_specs=[spec],
            out_specs=pl.BlockSpec((8, 128), lambda i: (0, 0)),
        )
        jax.jit(fn).lower(
            jax.ShapeDtypeStruct((8, 128), jnp.float32)).compile()
        return True
    except Exception:
        return False


def _select_batch_tile(B, n_pad, gram_bytes, vmem_budget, tb_cap, num_tc):
    """Adaptive batch tile: minimize padding waste, keep MXU M large when the
    batch is big, and give every TensorCore at least one grid step."""
    b8 = -(-B // 8) * 8
    cands = sorted({t for t in (8, 16, 32, 64, 128, 256, b8) if 8 <= t <= tb_cap})

    def padded(t):
        return -(-B // t) * t

    def fits(t):
        io = 3 * 2 * t * n_pad * 4        # aty / mv / out tiles, double-buffered
        live = 10 * t * n_pad * 4         # x, r, p, Ap, rhs, bf16 temps, slack
        return gram_bytes + io + live + (4 << 20) <= vmem_budget

    feas = [t for t in cands if fits(t)] or [8]
    pool = feas
    if b8 >= 64:                          # large batch: keep TB >= 64 for MXU efficiency
        big = [t for t in feas if t >= 64]
        if big:
            pool = big
    if num_tc > 1:                        # dual-TC: prefer >= num_tc grid steps
        multi = [t for t in pool if padded(t) // t >= num_tc]
        if multi:
            pool = multi
    # Minimize dead padded rows; tie-break on larger tile (fewer Gram re-streams).
    return min(pool, key=lambda t: (padded(t) - B, -t))


# --------------------------------------------------------------------------- #
# Wrappers
# --------------------------------------------------------------------------- #
def prepare_gram(gram):
    """One-time prep of A^T A: zero-pad to a lane-aligned (Np, Np), cast to bf16.

    Do this ONCE (outside the per-forward path) so no O(N^2) XLA pre-pass runs
    every call; rho*I is applied in f32 inside the kernel instead."""
    n = gram.shape[0]
    n_pad = -(-n // 128) * 128
    if n_pad != n:
        gram = jnp.pad(gram, ((0, n_pad - n), (0, n_pad - n)))
    return gram.astype(jnp.bfloat16)


@functools.partial(
    jax.jit, static_argnames=("tb", "n_pad", "gram_buffers", "vmem_limit"))
def _inv_cg_impl(im, y, gram_bf16, linear_w, rho_init, *,
                 tb, n_pad, gram_buffers, vmem_limit):
    B, _, H, W = im.shape
    n = H * W

    # Glue (tiny scalar math): rho_l = 0.8 * sigmoid(Linear(rho))
    rho_l = 0.8 * jax.nn.sigmoid(rho_init @ linear_w.T)          # shape (1,)
    rho_smem = rho_l.reshape(1, 1).astype(jnp.float32)

    mv = im.reshape(B, n).astype(jnp.float32)
    aty = y.reshape(B, n).astype(jnp.float32)

    b_pad = -(-B // tb) * tb
    if b_pad != B or n_pad != n:
        mv = jnp.pad(mv, ((0, b_pad - B), (0, n_pad - n)))
        aty = jnp.pad(aty, ((0, b_pad - B), (0, n_pad - n)))
    grid = (b_pad // tb,)

    if gram_buffers == 1:
        # Constant block index -> single VMEM buffer is enough; halves the
        # footprint of the largest resident array.
        gram_spec = pl.BlockSpec((n_pad, n_pad), lambda i: (0, 0),
                                 pipeline_mode=pl.Buffered(1))
    else:
        gram_spec = pl.BlockSpec((n_pad, n_pad), lambda i: (0, 0))

    x = pl.pallas_call(
        _inv_cg_kernel,
        out_shape=jax.ShapeDtypeStruct((b_pad, n_pad), jnp.float32),
        grid_spec=pltpu.PrefetchScalarGridSpec(
            num_scalar_prefetch=0,
            grid=grid,
            in_specs=[
                pl.BlockSpec(memory_space=pltpu.MemorySpace.SMEM),   # rho scalar
                pl.BlockSpec((tb, n_pad), lambda i: (i, 0)),         # AtY tile
                pl.BlockSpec((tb, n_pad), lambda i: (i, 0)),         # mv tile
                gram_spec,                                           # Gram (resident)
            ],
            out_specs=pl.BlockSpec((tb, n_pad), lambda i: (i, 0)),
        ),
        compiler_params=pltpu.CompilerParams(
            dimension_semantics=("parallel",),
            vmem_limit_bytes=vmem_limit,
        ),
    )(rho_smem, aty, mv, gram_bf16)

    return x[:B, :n].reshape(B, 1, H, W)


def inv_cg_forward(im, y, gram_bf16, linear_w, rho_init):
    """Forward pass of the `inv_cg` nn.Module.

    im        : (B, 1, H, W) f32   current image estimate (NCHW)
    y         : (B, H, W)    f32   A^T y (image-space data term, as fed to M)
    gram_bf16 : (Np, Np)     bf16  prepare_gram(A^T A) — prepared ONCE
    linear_w  : (1, 1)       f32   weight of nn.Linear(1, 1, bias=False)
    rho_init  : (1,)         f32   M.rho * ones(1)
    Returns   : (B, 1, H, W) f32
    """
    B, _, H, W = im.shape
    n = H * W
    n_pad = gram_bf16.shape[0]
    assert n_pad % 128 == 0 and n_pad >= n, "use prepare_gram() on the Gram"

    vmem_budget = int(0.9 * _vmem_capacity_bytes())        # per-generation cap
    tb_cap, num_tc = _chip_config()
    gram_buffers = 1 if _buffered_single_supported() else 2
    gram_bytes = gram_buffers * n_pad * n_pad * 2           # bf16 Gram

    min_tile_bytes = (3 * 2 + 10) * 8 * n_pad * 4
    if gram_bytes + min_tile_bytes + (4 << 20) > vmem_budget:
        # TODO(synk): streaming K-tiled Gram path (pl.ANY + pltpu.emit_pipeline).
        raise NotImplementedError(
            "Gram too large for the VMEM-resident path on this chip")

    tb = _select_batch_tile(B, n_pad, gram_bytes, vmem_budget, tb_cap, num_tc)

    io_bytes = 3 * 2 * tb * n_pad * 4
    live_bytes = 10 * tb * n_pad * 4
    vmem_limit = int(min(max(gram_bytes + io_bytes + live_bytes + (4 << 20),
                             16 * 1024 * 1024),
                         vmem_budget))

    return _inv_cg_impl(im, y, gram_bf16, linear_w, rho_init,
                        tb=tb, n_pad=n_pad, gram_buffers=gram_buffers,
                        vmem_limit=vmem_limit)


def make_synthetic_M_and_params(H, W):
    """Deterministic stand-in for the external operator M and the Linear layer."""
    N = H * W
    k0, k1 = jax.random.split(jax.random.PRNGKey(0))
    # Symmetric PSD Gram matrix  G = I + (Q Q^T) / N   (well conditioned).
    Q = jax.random.normal(k0, (N, N), dtype=jnp.float32)
    gram = jnp.eye(N, dtype=jnp.float32) + (Q @ Q.T) / jnp.float32(N)
    # nn.Linear(1, 1, bias=False) weight, deterministic.
    linear_w = jax.random.normal(k1, (1, 1), dtype=jnp.float32) * 0.5
    # M.rho (base rho) * ones(1)
    rho_init = jnp.ones((1,), dtype=jnp.float32) * 1.0
    return gram, linear_w, rho_init


if __name__ == "__main__":
    B, H, W = 2, 16, 16
    N = H * W
    gram, linear_w, rho_init = make_synthetic_M_and_params(H, W)
    gram_bf16 = prepare_gram(gram)    # one-time bf16 cast + lane padding

    kx, ky = jax.random.split(jax.random.PRNGKey(0))
    im = jax.random.normal(kx, (B, 1, H, W), dtype=jnp.float32)   # NCHW estimate
    y = jax.random.normal(ky, (B, H, W), dtype=jnp.float32)       # A^T y term

    out = inv_cg_forward(im, y, gram_bf16, linear_w, rho_init)
    jax.block_until_ready(out)
    assert out.shape == (B, 1, H, W)

    # f32 reference solve (validates the bf16-Gram / f32-diagonal CG).
    rho_l = 0.8 * jax.nn.sigmoid(rho_init @ linear_w.T)
    A = gram + rho_l[0] * jnp.eye(N, dtype=jnp.float32)
    rhs = y.reshape(B, N) + rho_l[0] * im.reshape(B, N)
    x_ref = jnp.linalg.solve(A, rhs.T).T
    rel = jnp.linalg.norm(out.reshape(B, N) - x_ref) / jnp.linalg.norm(x_ref)
    assert float(rel) < 0.1, f"relative error too large: {float(rel):.3e}"

    print("KERNEL_OK")
</pallas_src>

<mosaic_0001>
module attributes {stable_mosaic.version = 11 : i64} {
  func.func @_inv_cg_kernel(%arg0: i32, %arg1: memref<1x1xf32, #tpu.memory_space<smem>>, %arg2: memref<8x256xf32, #tpu.memory_space<vmem>>, %arg3: memref<8x256xf32, #tpu.memory_space<vmem>>, %arg4: memref<256x256xbf16, #tpu.memory_space<vmem>>, %arg5: memref<8x256xf32, #tpu.memory_space<vmem>>) attributes {dimension_semantics = [#tpu.dimension_semantics<parallel>], iteration_bounds = array<i64: 1>, scalar_prefetch = 0 : i64, scratch_operands = 0 : i64, tpu.core_type = #tpu.core_type<tc>, window_params = [{transform_indices = @transform_0, window_bounds = array<i64: 1, 1>}, {transform_indices = @transform_1, window_bounds = array<i64: 8, 256>}, {transform_indices = @transform_2, window_bounds = array<i64: 8, 256>}, {pipeline_mode = #tpu.pipeline_mode<synchronous>, transform_indices = @transform_3, window_bounds = array<i64: 256, 256>}, {transform_indices = @transform_4, window_bounds = array<i64: 8, 256>}]} {
    %c0 = arith.constant 0 : index
    %c0_0 = arith.constant 0 : index
    %0 = memref.load %arg1[%c0, %c0_0] : memref<1x1xf32, #tpu.memory_space<smem>>
    %c0_1 = arith.constant 0 : index
    %c0_2 = arith.constant 0 : index
    %1 = vector.load %arg4[%c0_1, %c0_2] : memref<256x256xbf16, #tpu.memory_space<vmem>>, vector<256x256xbf16>
    %c0_3 = arith.constant 0 : index
    %c0_4 = arith.constant 0 : index
    %2 = vector.load %arg3[%c0_3, %c0_4] : memref<8x256xf32, #tpu.memory_space<vmem>>, vector<8x256xf32>
    %c0_5 = arith.constant 0 : index
    %c0_6 = arith.constant 0 : index
    %3 = vector.load %arg2[%c0_5, %c0_6] : memref<8x256xf32, #tpu.memory_space<vmem>>, vector<8x256xf32>
    %4 = vector.broadcast %0 : f32 to vector<8x256xf32>
    %5 = arith.mulf %4, %2 : vector<8x256xf32>
    %6 = arith.addf %3, %5 : vector<8x256xf32>
    %7 = arith.truncf %2 : vector<8x256xf32> to vector<8x256xbf16>
    %cst = arith.constant dense<0.000000e+00> : vector<8x256xf32>
    %8 = tpu.matmul %7, %1, %cst {dimension_numbers = #tpu.dot_dimension_numbers<[1], [0], [0], [1], [0, 0, 1, 1], [], []>} : vector<8x256xbf16>, vector<256x256xbf16>, vector<8x256xf32> -> vector<8x256xf32>
    %9 = vector.broadcast %0 : f32 to vector<8x256xf32>
    %10 = arith.mulf %9, %2 : vector<8x256xf32>
    %11 = arith.addf %8, %10 : vector<8x256xf32>
    %12 = arith.subf %6, %11 : vector<8x256xf32>
    %13 = arith.mulf %12, %12 : vector<8x256xf32>
    %cst_7 = arith.constant dense<0.000000e+00> : vector<8xf32>
    %14 = vector.multi_reduction <add>, %13, %cst_7 [1] : vector<8x256xf32> to vector<8xf32>
    %15 = vector.shape_cast %14 : vector<8xf32> to vector<8x1xf32>
    %c0_i32 = arith.constant 0 : i32
    %16 = arith.truncf %12 : vector<8x256xf32> to vector<8x256xbf16>
    %cst_8 = arith.constant dense<0.000000e+00> : vector<8x256xf32>
    %17 = tpu.matmul %16, %1, %cst_8 {dimension_numbers = #tpu.dot_dimension_numbers<[1], [0], [0], [1], [0, 0, 1, 1], [], []>} : vector<8x256xbf16>, vector<256x256xbf16>, vector<8x256xf32> -> vector<8x256xf32>
    %18 = vector.broadcast %0 : f32 to vector<8x256xf32>
    %19 = arith.mulf %18, %12 : vector<8x256xf32>
    %20 = arith.addf %17, %19 : vector<8x256xf32>
    %21 = arith.mulf %12, %20 : vector<8x256xf32>
    %cst_9 = arith.constant dense<0.000000e+00> : vector<8xf32>
    %22 = vector.multi_reduction <add>, %21, %cst_9 [1] : vector<8x256xf32> to vector<8xf32>
    %23 = vector.shape_cast %22 : vector<8xf32> to vector<8x1xf32>
    %cst_10 = arith.constant 9.99999996E-13 : f32
    %24 = vector.broadcast %cst_10 : f32 to vector<8x1xf32>
    %25 = arith.addf %23, %24 : vector<8x1xf32>
    %26 = arith.divf %15, %25 : vector<8x1xf32>
    %27 = vector.broadcast %26 : vector<8x1xf32> to vector<8x256xf32>
    %28 = arith.mulf %27, %12 : vector<8x256xf32>
    %29 = arith.addf %2, %28 : vector<8x256xf32>
    %30 = vector.broadcast %26 : vector<8x1xf32> to vector<8x256xf32>
    %31 = arith.mulf %30, %20 : vector<8x256xf32>
    %32 = arith.subf %12, %31 : vector<8x256xf32>
    %33 = arith.mulf %32, %32 : vector<8x256xf32>
    %cst_11 = arith.constant dense<0.000000e+00> : vector<8xf32>
    %34 = vector.multi_reduction <add>, %33, %cst_11 [1] : vector<8x256xf32> to vector<8xf32>
    %35 = vector.shape_cast %34 : vector<8xf32> to vector<8x1xf32>
    %cst_12 = arith.constant 9.99999996E-13 : f32
    %36 = vector.broadcast %cst_12 : f32 to vector<8x1xf32>
    %37 = arith.addf %15, %36 : vector<8x1xf32>
    %38 = arith.divf %35, %37 : vector<8x1xf32>
    %39 = vector.broadcast %38 : vector<8x1xf32> to vector<8x256xf32>
    %40 = arith.mulf %39, %12 : vector<8x256xf32>
    %41 = arith.addf %32, %40 : vector<8x256xf32>
    %c1_i32 = arith.constant 1 : i32
    %42 = arith.truncf %41 : vector<8x256xf32> to vector<8x256xbf16>
    %cst_13 = arith.constant dense<0.000000e+00> : vector<8x256xf32>
    %43 = tpu.matmul %42, %1, %cst_13 {dimension_numbers = #tpu.dot_dimension_numbers<[1], [0], [0], [1], [0, 0, 1, 1], [], []>} : vector<8x256xbf16>, vector<256x256xbf16>, vector<8x256xf32> -> vector<8x256xf32>
    %44 = vector.broadcast %0 : f32 to vector<8x256xf32>
    %45 = arith.mulf %44, %41 : vector<8x256xf32>
    %46 = arith.addf %43, %45 : vector<8x256xf32>
    %47 = arith.mulf %41, %46 : vector<8x256xf32>
    %cst_14 = arith.constant dense<0.000000e+00> : vector<8xf32>
    %48 = vector.multi_reduction <add>, %47, %cst_14 [1] : vector<8x256xf32> to vector<8xf32>
    %49 = vector.shape_cast %48 : vector<8xf32> to vector<8x1xf32>
    %cst_15 = arith.constant 9.99999996E-13 : f32
    %50 = vector.broadcast %cst_15 : f32 to vector<8x1xf32>
    %51 = arith.addf %49, %50 : vector<8x1xf32>
    %52 = arith.divf %35, %51 : vector<8x1xf32>
    %53 = vector.broadcast %52 : vector<8x1xf32> to vector<8x256xf32>
    %54 = arith.mulf %53, %41 : vector<8x256xf32>
    %55 = arith.addf %29, %54 : vector<8x256xf32>
    %56 = vector.broadcast %52 : vector<8x1xf32> to vector<8x256xf32>
    %57 = arith.mulf %56, %46 : vector<8x256xf32>
    %58 = arith.subf %32, %57 : vector<8x256xf32>
    %59 = arith.mulf %58, %58 : vector<8x256xf32>
    %cst_16 = arith.constant dense<0.000000e+00> : vector<8xf32>
    %60 = vector.multi_reduction <add>, %59, %cst_16 [1] : vector<8x256xf32> to vector<8xf32>
    %61 = vector.shape_cast %60 : vector<8xf32> to vector<8x1xf32>
    %cst_17 = arith.constant 9.99999996E-13 : f32
    %62 = vector.broadcast %cst_17 : f32 to vector<8x1xf32>
    %63 = arith.addf %35, %62 : vector<8x1xf32>
    %64 = arith.divf %61, %63 : vector<8x1xf32>
    %65 = vector.broadcast %64 : vector<8x1xf32> to vector<8x256xf32>
    %66 = arith.mulf %65, %41 : vector<8x256xf32>
    %67 = arith.addf %58, %66 : vector<8x256xf32>
    %c2_i32 = arith.constant 2 : i32
    %68 = arith.truncf %67 : vector<8x256xf32> to vector<8x256xbf16>
    %cst_18 = arith.constant dense<0.000000e+00> : vector<8x256xf32>
    %69 = tpu.matmul %68, %1, %cst_18 {dimension_numbers = #tpu.dot_dimension_numbers<[1], [0], [0], [1], [0, 0, 1, 1], [], []>} : vector<8x256xbf16>, vector<256x256xbf16>, vector<8x256xf32> -> vector<8x256xf32>
    %70 = vector.broadcast %0 : f32 to vector<8x256xf32>
    %71 = arith.mulf %70, %67 : vector<8x256xf32>
    %72 = arith.addf %69, %71 : vector<8x256xf32>
    %73 = arith.mulf %67, %72 : vector<8x256xf32>
    %cst_19 = arith.constant dense<0.000000e+00> : vector<8xf32>
    %74 = vector.multi_reduction <add>, %73, %cst_19 [1] : vector<8x256xf32> to vector<8xf32>
    %75 = vector.shape_cast %74 : vector<8xf32> to vector<8x1xf32>
    %cst_20 = arith.constant 9.99999996E-13 : f32
    %76 = vector.broadcast %cst_20 : f32 to vector<8x1xf32>
    %77 = arith.addf %75, %76 : vector<8x1xf32>
    %78 = arith.divf %61, %77 : vector<8x1xf32>
    %79 = vector.broadcast %78 : vector<8x1xf32> to vector<8x256xf32>
    %80 = arith.mulf %79, %67 : vector<8x256xf32>
    %81 = arith.addf %55, %80 : vector<8x256xf32>
    %82 = vector.broadcast %78 : vector<8x1xf32> to vector<8x256xf32>
    %83 = arith.mulf %82, %72 : vector<8x256xf32>
    %84 = arith.subf %58, %83 : vector<8x256xf32>
    %85 = arith.mulf %84, %84 : vector<8x256xf32>
    %cst_21 = arith.constant dense<0.000000e+00> : vector<8xf32>
    %86 = vector.multi_reduction <add>, %85, %cst_21 [1] : vector<8x256xf32> to vector<8xf32>
    %87 = vector.shape_cast %86 : vector<8xf32> to vector<8x1xf32>
    %cst_22 = arith.constant 9.99999996E-13 : f32
    %88 = vector.broadcast %cst_22 : f32 to vector<8x1xf32>
    %89 = arith.addf %61, %88 : vector<8x1xf32>
    %90 = arith.divf %87, %89 : vector<8x1xf32>
    %91 = vector.broadcast %90 : vector<8x1xf32> to vector<8x256xf32>
    %92 = arith.mulf %91, %67 : vector<8x256xf32>
    %93 = arith.addf %84, %92 : vector<8x256xf32>
    %c3_i32 = arith.constant 3 : i32
    %94 = arith.truncf %93 : vector<8x256xf32> to vector<8x256xbf16>
    %cst_23 = arith.constant dense<0.000000e+00> : vector<8x256xf32>
    %95 = tpu.matmul %94, %1, %cst_23 {dimension_numbers = #tpu.dot_dimension_numbers<[1], [0], [0], [1], [0, 0, 1, 1], [], []>} : vector<8x256xbf16>, vector<256x256xbf16>, vector<8x256xf32> -> vector<8x256xf32>
    %96 = vector.broadcast %0 : f32 to vector<8x256xf32>
    %97 = arith.mulf %96, %93 : vector<8x256xf32>
    %98 = arith.addf %95, %97 : vector<8x256xf32>
    %99 = arith.mulf %93, %98 : vector<8x256xf32>
    %cst_24 = arith.constant dense<0.000000e+00> : vector<8xf32>
    %100 = vector.multi_reduction <add>, %99, %cst_24 [1] : vector<8x256xf32> to vector<8xf32>
    %101 = vector.shape_cast %100 : vector<8xf32> to vector<8x1xf32>
    %cst_25 = arith.constant 9.99999996E-13 : f32
    %102 = vector.broadcast %cst_25 : f32 to vector<8x1xf32>
    %103 = arith.addf %101, %102 : vector<8x1xf32>
    %104 = arith.divf %87, %103 : vector<8x1xf32>
    %105 = vector.broadcast %104 : vector<8x1xf32> to vector<8x256xf32>
    %106 = arith.mulf %105, %93 : vector<8x256xf32>
    %107 = arith.addf %81, %106 : vector<8x256xf32>
    %108 = vector.broadcast %104 : vector<8x1xf32> to vector<8x256xf32>
    %109 = arith.mulf %108, %98 : vector<8x256xf32>
    %110 = arith.subf %84, %109 : vector<8x256xf32>
    %111 = arith.mulf %110, %110 : vector<8x256xf32>
    %cst_26 = arith.constant dense<0.000000e+00> : vector<8xf32>
    %112 = vector.multi_reduction <add>, %111, %cst_26 [1] : vector<8x256xf32> to vector<8xf32>
    %113 = vector.shape_cast %112 : vector<8xf32> to vector<8x1xf32>
    %cst_27 = arith.constant 9.99999996E-13 : f32
    %114 = vector.broadcast %cst_27 : f32 to vector<8x1xf32>
    %115 = arith.addf %87, %114 : vector<8x1xf32>
    %116 = arith.divf %113, %115 : vector<8x1xf32>
    %117 = vector.broadcast %116 : vector<8x1xf32> to vector<8x256xf32>
    %118 = arith.mulf %117, %93 : vector<8x256xf32>
    %119 = arith.addf %110, %118 : vector<8x256xf32>
    %c4_i32 = arith.constant 4 : i32
    %120 = arith.truncf %119 : vector<8x256xf32> to vector<8x256xbf16>
    %cst_28 = arith.constant dense<0.000000e+00> : vector<8x256xf32>
    %121 = tpu.matmul %120, %1, %cst_28 {dimension_numbers = #tpu.dot_dimension_numbers<[1], [0], [0], [1], [0, 0, 1, 1], [], []>} : vector<8x256xbf16>, vector<256x256xbf16>, vector<8x256xf32> -> vector<8x256xf32>
    %122 = vector.broadcast %0 : f32 to vector<8x256xf32>
    %123 = arith.mulf %122, %119 : vector<8x256xf32>
    %124 = arith.addf %121, %123 : vector<8x256xf32>
    %125 = arith.mulf %119, %124 : vector<8x256xf32>
    %cst_29 = arith.constant dense<0.000000e+00> : vector<8xf32>
    %126 = vector.multi_reduction <add>, %125, %cst_29 [1] : vector<8x256xf32> to vector<8xf32>
    %127 = vector.shape_cast %126 : vector<8xf32> to vector<8x1xf32>
    %cst_30 = arith.constant 9.99999996E-13 : f32
    %128 = vector.broadcast %cst_30 : f32 to vector<8x1xf32>
    %129 = arith.addf %127, %128 : vector<8x1xf32>
    %130 = arith.divf %113, %129 : vector<8x1xf32>
    %131 = vector.broadcast %130 : vector<8x1xf32> to vector<8x256xf32>
    %132 = arith.mulf %131, %119 : vector<8x256xf32>
    %133 = arith.addf %107, %132 : vector<8x256xf32>
    %134 = vector.broadcast %130 : vector<8x1xf32> to vector<8x256xf32>
    %135 = arith.mulf %134, %124 : vector<8x256xf32>
    %136 = arith.subf %110, %135 : vector<8x256xf32>
    %137 = arith.mulf %136, %136 : vector<8x256xf32>
    %cst_31 = arith.constant dense<0.000000e+00> : vector<8xf32>
    %138 = vector.multi_reduction <add>, %137, %cst_31 [1] : vector<8x256xf32> to vector<8xf32>
    %139 = vector.shape_cast %138 : vector<8xf32> to vector<8x1xf32>
    %cst_32 = arith.constant 9.99999996E-13 : f32
    %140 = vector.broadcast %cst_32 : f32 to vector<8x1xf32>
    %141 = arith.addf %113, %140 : vector<8x1xf32>
    %142 = arith.divf %139, %141 : vector<8x1xf32>
    %143 = vector.broadcast %142 : vector<8x1xf32> to vector<8x256xf32>
    %144 = arith.mulf %143, %119 : vector<8x256xf32>
    %145 = arith.addf %136, %144 : vector<8x256xf32>
    %c5_i32 = arith.constant 5 : i32
    %146 = arith.truncf %145 : vector<8x256xf32> to vector<8x256xbf16>
    %cst_33 = arith.constant dense<0.000000e+00> : vector<8x256xf32>
    %147 = tpu.matmul %146, %1, %cst_33 {dimension_numbers = #tpu.dot_dimension_numbers<[1], [0], [0], [1], [0, 0, 1, 1], [], []>} : vector<8x256xbf16>, vector<256x256xbf16>, vector<8x256xf32> -> vector<8x256xf32>
    %148 = vector.broadcast %0 : f32 to vector<8x256xf32>
    %149 = arith.mulf %148, %145 : vector<8x256xf32>
    %150 = arith.addf %147, %149 : vector<8x256xf32>
    %151 = arith.mulf %145, %150 : vector<8x256xf32>
    %cst_34 = arith.constant dense<0.000000e+00> : vector<8xf32>
    %152 = vector.multi_reduction <add>, %151, %cst_34 [1] : vector<8x256xf32> to vector<8xf32>
    %153 = vector.shape_cast %152 : vector<8xf32> to vector<8x1xf32>
    %cst_35 = arith.constant 9.99999996E-13 : f32
    %154 = vector.broadcast %cst_35 : f32 to vector<8x1xf32>
    %155 = arith.addf %153, %154 : vector<8x1xf32>
    %156 = arith.divf %139, %155 : vector<8x1xf32>
    %157 = vector.broadcast %156 : vector<8x1xf32> to vector<8x256xf32>
    %158 = arith.mulf %157, %145 : vector<8x256xf32>
    %159 = arith.addf %133, %158 : vector<8x256xf32>
    %160 = vector.broadcast %156 : vector<8x1xf32> to vector<8x256xf32>
    %161 = arith.mulf %160, %150 : vector<8x256xf32>
    %162 = arith.subf %136, %161 : vector<8x256xf32>
    %163 = arith.mulf %162, %162 : vector<8x256xf32>
    %cst_36 = arith.constant dense<0.000000e+00> : vector<8xf32>
    %164 = vector.multi_reduction <add>, %163, %cst_36 [1] : vector<8x256xf32> to vector<8xf32>
    %165 = vector.shape_cast %164 : vector<8xf32> to vector<8x1xf32>
    %cst_37 = arith.constant 9.99999996E-13 : f32
    %166 = vector.broadcast %cst_37 : f32 to vector<8x1xf32>
    %167 = arith.addf %139, %166 : vector<8x1xf32>
    %168 = arith.divf %165, %167 : vector<8x1xf32>
    %169 = vector.broadcast %168 : vector<8x1xf32> to vector<8x256xf32>
    %170 = arith.mulf %169, %145 : vector<8x256xf32>
    %171 = arith.addf %162, %170 : vector<8x256xf32>
    %c6_i32 = arith.constant 6 : i32
    %172 = arith.truncf %171 : vector<8x256xf32> to vector<8x256xbf16>
    %cst_38 = arith.constant dense<0.000000e+00> : vector<8x256xf32>
    %173 = tpu.matmul %172, %1, %cst_38 {dimension_numbers = #tpu.dot_dimension_numbers<[1], [0], [0], [1], [0, 0, 1, 1], [], []>} : vector<8x256xbf16>, vector<256x256xbf16>, vector<8x256xf32> -> vector<8x256xf32>
    %174 = vector.broadcast %0 : f32 to vector<8x256xf32>
    %175 = arith.mulf %174, %171 : vector<8x256xf32>
    %176 = arith.addf %173, %175 : vector<8x256xf32>
    %177 = arith.mulf %171, %176 : vector<8x256xf32>
    %cst_39 = arith.constant dense<0.000000e+00> : vector<8xf32>
    %178 = vector.multi_reduction <add>, %177, %cst_39 [1] : vector<8x256xf32> to vector<8xf32>
    %179 = vector.shape_cast %178 : vector<8xf32> to vector<8x1xf32>
    %cst_40 = arith.constant 9.99999996E-13 : f32
    %180 = vector.broadcast %cst_40 : f32 to vector<8x1xf32>
    %181 = arith.addf %179, %180 : vector<8x1xf32>
    %182 = arith.divf %165, %181 : vector<8x1xf32>
    %183 = vector.broadcast %182 : vector<8x1xf32> to vector<8x256xf32>
    %184 = arith.mulf %183, %171 : vector<8x256xf32>
    %185 = arith.addf %159, %184 : vector<8x256xf32>
    %186 = vector.broadcast %182 : vector<8x1xf32> to vector<8x256xf32>
    %187 = arith.mulf %186, %176 : vector<8x256xf32>
    %188 = arith.subf %162, %187 : vector<8x256xf32>
    %189 = arith.mulf %188, %188 : vector<8x256xf32>
    %cst_41 = arith.constant dense<0.000000e+00> : vector<8xf32>
    %190 = vector.multi_reduction <add>, %189, %cst_41 [1] : vector<8x256xf32> to vector<8xf32>
    %191 = vector.shape_cast %190 : vector<8xf32> to vector<8x1xf32>
    %cst_42 = arith.constant 9.99999996E-13 : f32
    %192 = vector.broadcast %cst_42 : f32 to vector<8x1xf32>
    %193 = arith.addf %165, %192 : vector<8x1xf32>
    %194 = arith.divf %191, %193 : vector<8x1xf32>
    %195 = vector.broadcast %194 : vector<8x1xf32> to vector<8x256xf32>
    %196 = arith.mulf %195, %171 : vector<8x256xf32>
    %197 = arith.addf %188, %196 : vector<8x256xf32>
    %c7_i32 = arith.constant 7 : i32
    %198 = arith.truncf %197 : vector<8x256xf32> to vector<8x256xbf16>
    %cst_43 = arith.constant dense<0.000000e+00> : vector<8x256xf32>
    %199 = tpu.matmul %198, %1, %cst_43 {dimension_numbers = #tpu.dot_dimension_numbers<[1], [0], [0], [1], [0, 0, 1, 1], [], []>} : vector<8x256xbf16>, vector<256x256xbf16>, vector<8x256xf32> -> vector<8x256xf32>
    %200 = vector.broadcast %0 : f32 to vector<8x256xf32>
    %201 = arith.mulf %200, %197 : vector<8x256xf32>
    %202 = arith.addf %199, %201 : vector<8x256xf32>
    %203 = arith.mulf %197, %202 : vector<8x256xf32>
    %cst_44 = arith.constant dense<0.000000e+00> : vector<8xf32>
    %204 = vector.multi_reduction <add>, %203, %cst_44 [1] : vector<8x256xf32> to vector<8xf32>
    %205 = vector.shape_cast %204 : vector<8xf32> to vector<8x1xf32>
    %cst_45 = arith.constant 9.99999996E-13 : f32
    %206 = vector.broadcast %cst_45 : f32 to vector<8x1xf32>
    %207 = arith.addf %205, %206 : vector<8x1xf32>
    %208 = arith.divf %191, %207 : vector<8x1xf32>
    %209 = vector.broadcast %208 : vector<8x1xf32> to vector<8x256xf32>
    %210 = arith.mulf %209, %197 : vector<8x256xf32>
    %211 = arith.addf %185, %210 : vector<8x256xf32>
    %212 = vector.broadcast %208 : vector<8x1xf32> to vector<8x256xf32>
    %213 = arith.mulf %212, %202 : vector<8x256xf32>
    %214 = arith.subf %188, %213 : vector<8x256xf32>
    %215 = arith.mulf %214, %214 : vector<8x256xf32>
    %cst_46 = arith.constant dense<0.000000e+00> : vector<8xf32>
    %216 = vector.multi_reduction <add>, %215, %cst_46 [1] : vector<8x256xf32> to vector<8xf32>
    %217 = vector.shape_cast %216 : vector<8xf32> to vector<8x1xf32>
    %cst_47 = arith.constant 9.99999996E-13 : f32
    %218 = vector.broadcast %cst_47 : f32 to vector<8x1xf32>
    %219 = arith.addf %191, %218 : vector<8x1xf32>
    %220 = arith.divf %217, %219 : vector<8x1xf32>
    %221 = vector.broadcast %220 : vector<8x1xf32> to vector<8x256xf32>
    %222 = arith.mulf %221, %197 : vector<8x256xf32>
    %223 = arith.addf %214, %222 : vector<8x256xf32>
    %c8_i32 = arith.constant 8 : i32
    %224 = arith.truncf %223 : vector<8x256xf32> to vector<8x256xbf16>
    %cst_48 = arith.constant dense<0.000000e+00> : vector<8x256xf32>
    %225 = tpu.matmul %224, %1, %cst_48 {dimension_numbers = #tpu.dot_dimension_numbers<[1], [0], [0], [1], [0, 0, 1, 1], [], []>} : vector<8x256xbf16>, vector<256x256xbf16>, vector<8x256xf32> -> vector<8x256xf32>
    %226 = vector.broadcast %0 : f32 to vector<8x256xf32>
    %227 = arith.mulf %226, %223 : vector<8x256xf32>
    %228 = arith.addf %225, %227 : vector<8x256xf32>
    %229 = arith.mulf %223, %228 : vector<8x256xf32>
    %cst_49 = arith.constant dense<0.000000e+00> : vector<8xf32>
    %230 = vector.multi_reduction <add>, %229, %cst_49 [1] : vector<8x256xf32> to vector<8xf32>
    %231 = vector.shape_cast %230 : vector<8xf32> to vector<8x1xf32>
    %cst_50 = arith.constant 9.99999996E-13 : f32
    %232 = vector.broadcast %cst_50 : f32 to vector<8x1xf32>
    %233 = arith.addf %231, %232 : vector<8x1xf32>
    %234 = arith.divf %217, %233 : vector<8x1xf32>
    %235 = vector.broadcast %234 : vector<8x1xf32> to vector<8x256xf32>
    %236 = arith.mulf %235, %223 : vector<8x256xf32>
    %237 = arith.addf %211, %236 : vector<8x256xf32>
    %238 = vector.broadcast %234 : vector<8x1xf32> to vector<8x256xf32>
    %239 = arith.mulf %238, %228 : vector<8x256xf32>
    %240 = arith.subf %214, %239 : vector<8x256xf32>
    %241 = arith.mulf %240, %240 : vector<8x256xf32>
    %cst_51 = arith.constant dense<0.000000e+00> : vector<8xf32>
    %242 = vector.multi_reduction <add>, %241, %cst_51 [1] : vector<8x256xf32> to vector<8xf32>
    %243 = vector.shape_cast %242 : vector<8xf32> to vector<8x1xf32>
    %cst_52 = arith.constant 9.99999996E-13 : f32
    %244 = vector.broadcast %cst_52 : f32 to vector<8x1xf32>
    %245 = arith.addf %217, %244 : vector<8x1xf32>
    %246 = arith.divf %243, %245 : vector<8x1xf32>
    %247 = vector.broadcast %246 : vector<8x1xf32> to vector<8x256xf32>
    %248 = arith.mulf %247, %223 : vector<8x256xf32>
    %249 = arith.addf %240, %248 : vector<8x256xf32>
    %c9_i32 = arith.constant 9 : i32
    %250 = arith.truncf %249 : vector<8x256xf32> to vector<8x256xbf16>
    %cst_53 = arith.constant dense<0.000000e+00> : vector<8x256xf32>
    %251 = tpu.matmul %250, %1, %cst_53 {dimension_numbers = #tpu.dot_dimension_numbers<[1], [0], [0], [1], [0, 0, 1, 1], [], []>} : vector<8x256xbf16>, vector<256x256xbf16>, vector<8x256xf32> -> vector<8x256xf32>
    %252 = vector.broadcast %0 : f32 to vector<8x256xf32>
    %253 = arith.mulf %252, %249 : vector<8x256xf32>
    %254 = arith.addf %251, %253 : vector<8x256xf32>
    %255 = arith.mulf %249, %254 : vector<8x256xf32>
    %cst_54 = arith.constant dense<0.000000e+00> : vector<8xf32>
    %256 = vector.multi_reduction <add>, %255, %cst_54 [1] : vector<8x256xf32> to vector<8xf32>
    %257 = vector.shape_cast %256 : vector<8xf32> to vector<8x1xf32>
    %cst_55 = arith.constant 9.99999996E-13 : f32
    %258 = vector.broadcast %cst_55 : f32 to vector<8x1xf32>
    %259 = arith.addf %257, %258 : vector<8x1xf32>
    %260 = arith.divf %243, %259 : vector<8x1xf32>
    %261 = vector.broadcast %260 : vector<8x1xf32> to vector<8x256xf32>
    %262 = arith.mulf %261, %249 : vector<8x256xf32>
    %263 = arith.addf %237, %262 : vector<8x256xf32>
    %264 = vector.broadcast %260 : vector<8x1xf32> to vector<8x256xf32>
    %265 = arith.mulf %264, %254 : vector<8x256xf32>
    %266 = arith.subf %240, %265 : vector<8x256xf32>
    %267 = arith.mulf %266, %266 : vector<8x256xf32>
    %cst_56 = arith.constant dense<0.000000e+00> : vector<8xf32>
    %268 = vector.multi_reduction <add>, %267, %cst_56 [1] : vector<8x256xf32> to vector<8xf32>
    %269 = vector.shape_cast %268 : vector<8xf32> to vector<8x1xf32>
    %cst_57 = arith.constant 9.99999996E-13 : f32
    %270 = vector.broadcast %cst_57 : f32 to vector<8x1xf32>
    %271 = arith.addf %243, %270 : vector<8x1xf32>
    %272 = arith.divf %269, %271 : vector<8x1xf32>
    %273 = vector.broadcast %272 : vector<8x1xf32> to vector<8x256xf32>
    %274 = arith.mulf %273, %249 : vector<8x256xf32>
    %275 = arith.addf %266, %274 : vector<8x256xf32>
    %c10_i32 = arith.constant 10 : i32
    %276 = arith.truncf %275 : vector<8x256xf32> to vector<8x256xbf16>
    %cst_58 = arith.constant dense<0.000000e+00> : vector<8x256xf32>
    %277 = tpu.matmul %276, %1, %cst_58 {dimension_numbers = #tpu.dot_dimension_numbers<[1], [0], [0], [1], [0, 0, 1, 1], [], []>} : vector<8x256xbf16>, vector<256x256xbf16>, vector<8x256xf32> -> vector<8x256xf32>
    %278 = vector.broadcast %0 : f32 to vector<8x256xf32>
    %279 = arith.mulf %278, %275 : vector<8x256xf32>
    %280 = arith.addf %277, %279 : vector<8x256xf32>
    %281 = arith.mulf %275, %280 : vector<8x256xf32>
    %cst_59 = arith.constant dense<0.000000e+00> : vector<8xf32>
    %282 = vector.multi_reduction <add>, %281, %cst_59 [1] : vector<8x256xf32> to vector<8xf32>
    %283 = vector.shape_cast %282 : vector<8xf32> to vector<8x1xf32>
    %cst_60 = arith.constant 9.99999996E-13 : f32
    %284 = vector.broadcast %cst_60 : f32 to vector<8x1xf32>
    %285 = arith.addf %283, %284 : vector<8x1xf32>
    %286 = arith.divf %269, %285 : vector<8x1xf32>
    %287 = vector.broadcast %286 : vector<8x1xf32> to vector<8x256xf32>
    %288 = arith.mulf %287, %275 : vector<8x256xf32>
    %289 = arith.addf %263, %288 : vector<8x256xf32>
    %290 = vector.broadcast %286 : vector<8x1xf32> to vector<8x256xf32>
    %291 = arith.mulf %290, %280 : vector<8x256xf32>
    %292 = arith.subf %266, %291 : vector<8x256xf32>
    %293 = arith.mulf %292, %292 : vector<8x256xf32>
    %cst_61 = arith.constant dense<0.000000e+00> : vector<8xf32>
    %294 = vector.multi_reduction <add>, %293, %cst_61 [1] : vector<8x256xf32> to vector<8xf32>
    %295 = vector.shape_cast %294 : vector<8xf32> to vector<8x1xf32>
    %cst_62 = arith.constant 9.99999996E-13 : f32
    %296 = vector.broadcast %cst_62 : f32 to vector<8x1xf32>
    %297 = arith.addf %269, %296 : vector<8x1xf32>
    %298 = arith.divf %295, %297 : vector<8x1xf32>
    %299 = vector.broadcast %298 : vector<8x1xf32> to vector<8x256xf32>
    %300 = arith.mulf %299, %275 : vector<8x256xf32>
    %301 = arith.addf %292, %300 : vector<8x256xf32>
    %c11_i32 = arith.constant 11 : i32
    %302 = arith.truncf %301 : vector<8x256xf32> to vector<8x256xbf16>
    %cst_63 = arith.constant dense<0.000000e+00> : vector<8x256xf32>
    %303 = tpu.matmul %302, %1, %cst_63 {dimension_numbers = #tpu.dot_dimension_numbers<[1], [0], [0], [1], [0, 0, 1, 1], [], []>} : vector<8x256xbf16>, vector<256x256xbf16>, vector<8x256xf32> -> vector<8x256xf32>
    %304 = vector.broadcast %0 : f32 to vector<8x256xf32>
    %305 = arith.mulf %304, %301 : vector<8x256xf32>
    %306 = arith.addf %303, %305 : vector<8x256xf32>
    %307 = arith.mulf %301, %306 : vector<8x256xf32>
    %cst_64 = arith.constant dense<0.000000e+00> : vector<8xf32>
    %308 = vector.multi_reduction <add>, %307, %cst_64 [1] : vector<8x256xf32> to vector<8xf32>
    %309 = vector.shape_cast %308 : vector<8xf32> to vector<8x1xf32>
    %cst_65 = arith.constant 9.99999996E-13 : f32
    %310 = vector.broadcast %cst_65 : f32 to vector<8x1xf32>
    %311 = arith.addf %309, %310 : vector<8x1xf32>
    %312 = arith.divf %295, %311 : vector<8x1xf32>
    %313 = vector.broadcast %312 : vector<8x1xf32> to vector<8x256xf32>
    %314 = arith.mulf %313, %301 : vector<8x256xf32>
    %315 = arith.addf %289, %314 : vector<8x256xf32>
    %316 = vector.broadcast %312 : vector<8x1xf32> to vector<8x256xf32>
    %317 = arith.mulf %316, %306 : vector<8x256xf32>
    %318 = arith.subf %292, %317 : vector<8x256xf32>
    %319 = arith.mulf %318, %318 : vector<8x256xf32>
    %cst_66 = arith.constant dense<0.000000e+00> : vector<8xf32>
    %320 = vector.multi_reduction <add>, %319, %cst_66 [1] : vector<8x256xf32> to vector<8xf32>
    %321 = vector.shape_cast %320 : vector<8xf32> to vector<8x1xf32>
    %cst_67 = arith.constant 9.99999996E-13 : f32
    %322 = vector.broadcast %cst_67 : f32 to vector<8x1xf32>
    %323 = arith.addf %295, %322 : vector<8x1xf32>
    %324 = arith.divf %321, %323 : vector<8x1xf32>
    %325 = vector.broadcast %324 : vector<8x1xf32> to vector<8x256xf32>
    %326 = arith.mulf %325, %301 : vector<8x256xf32>
    %327 = arith.addf %318, %326 : vector<8x256xf32>
    %c12_i32 = arith.constant 12 : i32
    %328 = arith.truncf %327 : vector<8x256xf32> to vector<8x256xbf16>
    %cst_68 = arith.constant dense<0.000000e+00> : vector<8x256xf32>
    %329 = tpu.matmul %328, %1, %cst_68 {dimension_numbers = #tpu.dot_dimension_numbers<[1], [0], [0], [1], [0, 0, 1, 1], [], []>} : vector<8x256xbf16>, vector<256x256xbf16>, vector<8x256xf32> -> vector<8x256xf32>
    %330 = vector.broadcast %0 : f32 to vector<8x256xf32>
    %331 = arith.mulf %330, %327 : vector<8x256xf32>
    %332 = arith.addf %329, %331 : vector<8x256xf32>
    %333 = arith.mulf %327, %332 : vector<8x256xf32>
    %cst_69 = arith.constant dense<0.000000e+00> : vector<8xf32>
    %334 = vector.multi_reduction <add>, %333, %cst_69 [1] : vector<8x256xf32> to vector<8xf32>
    %335 = vector.shape_cast %334 : vector<8xf32> to vector<8x1xf32>
    %cst_70 = arith.constant 9.99999996E-13 : f32
    %336 = vector.broadcast %cst_70 : f32 to vector<8x1xf32>
    %337 = arith.addf %335, %336 : vector<8x1xf32>
    %338 = arith.divf %321, %337 : vector<8x1xf32>
    %339 = vector.broadcast %338 : vector<8x1xf32> to vector<8x256xf32>
    %340 = arith.mulf %339, %327 : vector<8x256xf32>
    %341 = arith.addf %315, %340 : vector<8x256xf32>
    %342 = vector.broadcast %338 : vector<8x1xf32> to vector<8x256xf32>
    %343 = arith.mulf %342, %332 : vector<8x256xf32>
    %344 = arith.subf %318, %343 : vector<8x256xf32>
    %345 = arith.mulf %344, %344 : vector<8x256xf32>
    %cst_71 = arith.constant dense<0.000000e+00> : vector<8xf32>
    %346 = vector.multi_reduction <add>, %345, %cst_71 [1] : vector<8x256xf32> to vector<8xf32>
    %347 = vector.shape_cast %346 : vector<8xf32> to vector<8x1xf32>
    %cst_72 = arith.constant 9.99999996E-13 : f32
    %348 = vector.broadcast %cst_72 : f32 to vector<8x1xf32>
    %349 = arith.addf %321, %348 : vector<8x1xf32>
    %350 = arith.divf %347, %349 : vector<8x1xf32>
    %351 = vector.broadcast %350 : vector<8x1xf32> to vector<8x256xf32>
    %352 = arith.mulf %351, %327 : vector<8x256xf32>
    %353 = arith.addf %344, %352 : vector<8x256xf32>
    %c13_i32 = arith.constant 13 : i32
    %354 = arith.truncf %353 : vector<8x256xf32> to vector<8x256xbf16>
    %cst_73 = arith.constant dense<0.000000e+00> : vector<8x256xf32>
    %355 = tpu.matmul %354, %1, %cst_73 {dimension_numbers = #tpu.dot_dimension_numbers<[1], [0], [0], [1], [0, 0, 1, 1], [], []>} : vector<8x256xbf16>, vector<256x256xbf16>, vector<8x256xf32> -> vector<8x256xf32>
    %356 = vector.broadcast %0 : f32 to vector<8x256xf32>
    %357 = arith.mulf %356, %353 : vector<8x256xf32>
    %358 = arith.addf %355, %357 : vector<8x256xf32>
    %359 = arith.mulf %353, %358 : vector<8x256xf32>
    %cst_74 = arith.constant dense<0.000000e+00> : vector<8xf32>
    %360 = vector.multi_reduction <add>, %359, %cst_74 [1] : vector<8x256xf32> to vector<8xf32>
    %361 = vector.shape_cast %360 : vector<8xf32> to vector<8x1xf32>
    %cst_75 = arith.constant 9.99999996E-13 : f32
    %362 = vector.broadcast %cst_75 : f32 to vector<8x1xf32>
    %363 = arith.addf %361, %362 : vector<8x1xf32>
    %364 = arith.divf %347, %363 : vector<8x1xf32>
    %365 = vector.broadcast %364 : vector<8x1xf32> to vector<8x256xf32>
    %366 = arith.mulf %365, %353 : vector<8x256xf32>
    %367 = arith.addf %341, %366 : vector<8x256xf32>
    %368 = vector.broadcast %364 : vector<8x1xf32> to vector<8x256xf32>
    %369 = arith.mulf %368, %358 : vector<8x256xf32>
    %370 = arith.subf %344, %369 : vector<8x256xf32>
    %371 = arith.mulf %370, %370 : vector<8x256xf32>
    %cst_76 = arith.constant dense<0.000000e+00> : vector<8xf32>
    %372 = vector.multi_reduction <add>, %371, %cst_76 [1] : vector<8x256xf32> to vector<8xf32>
    %373 = vector.shape_cast %372 : vector<8xf32> to vector<8x1xf32>
    %cst_77 = arith.constant 9.99999996E-13 : f32
    %374 = vector.broadcast %cst_77 : f32 to vector<8x1xf32>
    %375 = arith.addf %347, %374 : vector<8x1xf32>
    %376 = arith.divf %373, %375 : vector<8x1xf32>
    %377 = vector.broadcast %376 : vector<8x1xf32> to vector<8x256xf32>
    %378 = arith.mulf %377, %353 : vector<8x256xf32>
    %379 = arith.addf %370, %378 : vector<8x256xf32>
    %c14_i32 = arith.constant 14 : i32
    %380 = arith.truncf %379 : vector<8x256xf32> to vector<8x256xbf16>
    %cst_78 = arith.constant dense<0.000000e+00> : vector<8x256xf32>
    %381 = tpu.matmul %380, %1, %cst_78 {dimension_numbers = #tpu.dot_dimension_numbers<[1], [0], [0], [1], [0, 0, 1, 1], [], []>} : vector<8x256xbf16>, vector<256x256xbf16>, vector<8x256xf32> -> vector<8x256xf32>
    %382 = vector.broadcast %0 : f32 to vector<8x256xf32>
    %383 = arith.mulf %382, %379 : vector<8x256xf32>
    %384 = arith.addf %381, %383 : vector<8x256xf32>
    %385 = arith.mulf %379, %384 : vector<8x256xf32>
    %cst_79 = arith.constant dense<0.000000e+00> : vector<8xf32>
    %386 = vector.multi_reduction <add>, %385, %cst_79 [1] : vector<8x256xf32> to vector<8xf32>
    %387 = vector.shape_cast %386 : vector<8xf32> to vector<8x1xf32>
    %cst_80 = arith.constant 9.99999996E-13 : f32
    %388 = vector.broadcast %cst_80 : f32 to vector<8x1xf32>
    %389 = arith.addf %387, %388 : vector<8x1xf32>
    %390 = arith.divf %373, %389 : vector<8x1xf32>
    %391 = vector.broadcast %390 : vector<8x1xf32> to vector<8x256xf32>
    %392 = arith.mulf %391, %379 : vector<8x256xf32>
    %393 = arith.addf %367, %392 : vector<8x256xf32>
    %394 = vector.broadcast %390 : vector<8x1xf32> to vector<8x256xf32>
    %395 = arith.mulf %394, %384 : vector<8x256xf32>
    %396 = arith.subf %370, %395 : vector<8x256xf32>
    %397 = arith.mulf %396, %396 : vector<8x256xf32>
    %cst_81 = arith.constant dense<0.000000e+00> : vector<8xf32>
    %398 = vector.multi_reduction <add>, %397, %cst_81 [1] : vector<8x256xf32> to vector<8xf32>
    %399 = vector.shape_cast %398 : vector<8xf32> to vector<8x1xf32>
    %cst_82 = arith.constant 9.99999996E-13 : f32
    %400 = vector.broadcast %cst_82 : f32 to vector<8x1xf32>
    %401 = arith.addf %373, %400 : vector<8x1xf32>
    %402 = arith.divf %399, %401 : vector<8x1xf32>
    %403 = vector.broadcast %402 : vector<8x1xf32> to vector<8x256xf32>
    %404 = arith.mulf %403, %379 : vector<8x256xf32>
    %405 = arith.addf %396, %404 : vector<8x256xf32>
    %c15_i32 = arith.constant 15 : i32
    %406 = arith.truncf %405 : vector<8x256xf32> to vector<8x256xbf16>
    %cst_83 = arith.constant dense<0.000000e+00> : vector<8x256xf32>
    %407 = tpu.matmul %406, %1, %cst_83 {dimension_numbers = #tpu.dot_dimension_numbers<[1], [0], [0], [1], [0, 0, 1, 1], [], []>} : vector<8x256xbf16>, vector<256x256xbf16>, vector<8x256xf32> -> vector<8x256xf32>
    %408 = vector.broadcast %0 : f32 to vector<8x256xf32>
    %409 = arith.mulf %408, %405 : vector<8x256xf32>
    %410 = arith.addf %407, %409 : vector<8x256xf32>
    %411 = arith.mulf %405, %410 : vector<8x256xf32>
    %cst_84 = arith.constant dense<0.000000e+00> : vector<8xf32>
    %412 = vector.multi_reduction <add>, %411, %cst_84 [1] : vector<8x256xf32> to vector<8xf32>
    %413 = vector.shape_cast %412 : vector<8xf32> to vector<8x1xf32>
    %cst_85 = arith.constant 9.99999996E-13 : f32
    %414 = vector.broadcast %cst_85 : f32 to vector<8x1xf32>
    %415 = arith.addf %413, %414 : vector<8x1xf32>
    %416 = arith.divf %399, %415 : vector<8x1xf32>
    %417 = vector.broadcast %416 : vector<8x1xf32> to vector<8x256xf32>
    %418 = arith.mulf %417, %405 : vector<8x256xf32>
    %419 = arith.addf %393, %418 : vector<8x256xf32>
    %420 = vector.broadcast %416 : vector<8x1xf32> to vector<8x256xf32>
    %421 = arith.mulf %420, %410 : vector<8x256xf32>
    %422 = arith.subf %396, %421 : vector<8x256xf32>
    %423 = arith.mulf %422, %422 : vector<8x256xf32>
    %cst_86 = arith.constant dense<0.000000e+00> : vector<8xf32>
    %424 = vector.multi_reduction <add>, %423, %cst_86 [1] : vector<8x256xf32> to vector<8xf32>
    %425 = vector.shape_cast %424 : vector<8xf32> to vector<8x1xf32>
    %cst_87 = arith.constant 9.99999996E-13 : f32
    %426 = vector.broadcast %cst_87 : f32 to vector<8x1xf32>
    %427 = arith.addf %399, %426 : vector<8x1xf32>
    %428 = arith.divf %425, %427 : vector<8x1xf32>
    %429 = vector.broadcast %428 : vector<8x1xf32> to vector<8x256xf32>
    %430 = arith.mulf %429, %405 : vector<8x256xf32>
    %431 = arith.addf %422, %430 : vector<8x256xf32>
    %c16_i32 = arith.constant 16 : i32
    %432 = arith.truncf %431 : vector<8x256xf32> to vector<8x256xbf16>
    %cst_88 = arith.constant dense<0.000000e+00> : vector<8x256xf32>
    %433 = tpu.matmul %432, %1, %cst_88 {dimension_numbers = #tpu.dot_dimension_numbers<[1], [0], [0], [1], [0, 0, 1, 1], [], []>} : vector<8x256xbf16>, vector<256x256xbf16>, vector<8x256xf32> -> vector<8x256xf32>
    %434 = vector.broadcast %0 : f32 to vector<8x256xf32>
    %435 = arith.mulf %434, %431 : vector<8x256xf32>
    %436 = arith.addf %433, %435 : vector<8x256xf32>
    %437 = arith.mulf %431, %436 : vector<8x256xf32>
    %cst_89 = arith.constant dense<0.000000e+00> : vector<8xf32>
    %438 = vector.multi_reduction <add>, %437, %cst_89 [1] : vector<8x256xf32> to vector<8xf32>
    %439 = vector.shape_cast %438 : vector<8xf32> to vector<8x1xf32>
    %cst_90 = arith.constant 9.99999996E-13 : f32
    %440 = vector.broadcast %cst_90 : f32 to vector<8x1xf32>
    %441 = arith.addf %439, %440 : vector<8x1xf32>
    %442 = arith.divf %425, %441 : vector<8x1xf32>
    %443 = vector.broadcast %442 : vector<8x1xf32> to vector<8x256xf32>
    %444 = arith.mulf %443, %431 : vector<8x256xf32>
    %445 = arith.addf %419, %444 : vector<8x256xf32>
    %446 = vector.broadcast %442 : vector<8x1xf32> to vector<8x256xf32>
    %447 = arith.mulf %446, %436 : vector<8x256xf32>
    %448 = arith.subf %422, %447 : vector<8x256xf32>
    %449 = arith.mulf %448, %448 : vector<8x256xf32>
    %cst_91 = arith.constant dense<0.000000e+00> : vector<8xf32>
    %450 = vector.multi_reduction <add>, %449, %cst_91 [1] : vector<8x256xf32> to vector<8xf32>
    %451 = vector.shape_cast %450 : vector<8xf32> to vector<8x1xf32>
    %cst_92 = arith.constant 9.99999996E-13 : f32
    %452 = vector.broadcast %cst_92 : f32 to vector<8x1xf32>
    %453 = arith.addf %425, %452 : vector<8x1xf32>
    %454 = arith.divf %451, %453 : vector<8x1xf32>
    %455 = vector.broadcast %454 : vector<8x1xf32> to vector<8x256xf32>
    %456 = arith.mulf %455, %431 : vector<8x256xf32>
    %457 = arith.addf %448, %456 : vector<8x256xf32>
    %c17_i32 = arith.constant 17 : i32
    %458 = arith.truncf %457 : vector<8x256xf32> to vector<8x256xbf16>
    %cst_93 = arith.constant dense<0.000000e+00> : vector<8x256xf32>
    %459 = tpu.matmul %458, %1, %cst_93 {dimension_numbers = #tpu.dot_dimension_numbers<[1], [0], [0], [1], [0, 0, 1, 1], [], []>} : vector<8x256xbf16>, vector<256x256xbf16>, vector<8x256xf32> -> vector<8x256xf32>
    %460 = vector.broadcast %0 : f32 to vector<8x256xf32>
    %461 = arith.mulf %460, %457 : vector<8x256xf32>
    %462 = arith.addf %459, %461 : vector<8x256xf32>
    %463 = arith.mulf %457, %462 : vector<8x256xf32>
    %cst_94 = arith.constant dense<0.000000e+00> : vector<8xf32>
    %464 = vector.multi_reduction <add>, %463, %cst_94 [1] : vector<8x256xf32> to vector<8xf32>
    %465 = vector.shape_cast %464 : vector<8xf32> to vector<8x1xf32>
    %cst_95 = arith.constant 9.99999996E-13 : f32
    %466 = vector.broadcast %cst_95 : f32 to vector<8x1xf32>
    %467 = arith.addf %465, %466 : vector<8x1xf32>
    %468 = arith.divf %451, %467 : vector<8x1xf32>
    %469 = vector.broadcast %468 : vector<8x1xf32> to vector<8x256xf32>
    %470 = arith.mulf %469, %457 : vector<8x256xf32>
    %471 = arith.addf %445, %470 : vector<8x256xf32>
    %472 = vector.broadcast %468 : vector<8x1xf32> to vector<8x256xf32>
    %473 = arith.mulf %472, %462 : vector<8x256xf32>
    %474 = arith.subf %448, %473 : vector<8x256xf32>
    %475 = arith.mulf %474, %474 : vector<8x256xf32>
    %cst_96 = arith.constant dense<0.000000e+00> : vector<8xf32>
    %476 = vector.multi_reduction <add>, %475, %cst_96 [1] : vector<8x256xf32> to vector<8xf32>
    %477 = vector.shape_cast %476 : vector<8xf32> to vector<8x1xf32>
    %cst_97 = arith.constant 9.99999996E-13 : f32
    %478 = vector.broadcast %cst_97 : f32 to vector<8x1xf32>
    %479 = arith.addf %451, %478 : vector<8x1xf32>
    %480 = arith.divf %477, %479 : vector<8x1xf32>
    %481 = vector.broadcast %480 : vector<8x1xf32> to vector<8x256xf32>
    %482 = arith.mulf %481, %457 : vector<8x256xf32>
    %483 = arith.addf %474, %482 : vector<8x256xf32>
    %c18_i32 = arith.constant 18 : i32
    %484 = arith.truncf %483 : vector<8x256xf32> to vector<8x256xbf16>
    %cst_98 = arith.constant dense<0.000000e+00> : vector<8x256xf32>
    %485 = tpu.matmul %484, %1, %cst_98 {dimension_numbers = #tpu.dot_dimension_numbers<[1], [0], [0], [1], [0, 0, 1, 1], [], []>} : vector<8x256xbf16>, vector<256x256xbf16>, vector<8x256xf32> -> vector<8x256xf32>
    %486 = vector.broadcast %0 : f32 to vector<8x256xf32>
    %487 = arith.mulf %486, %483 : vector<8x256xf32>
    %488 = arith.addf %485, %487 : vector<8x256xf32>
    %489 = arith.mulf %483, %488 : vector<8x256xf32>
    %cst_99 = arith.constant dense<0.000000e+00> : vector<8xf32>
    %490 = vector.multi_reduction <add>, %489, %cst_99 [1] : vector<8x256xf32> to vector<8xf32>
    %491 = vector.shape_cast %490 : vector<8xf32> to vector<8x1xf32>
    %cst_100 = arith.constant 9.99999996E-13 : f32
    %492 = vector.broadcast %cst_100 : f32 to vector<8x1xf32>
    %493 = arith.addf %491, %492 : vector<8x1xf32>
    %494 = arith.divf %477, %493 : vector<8x1xf32>
    %495 = vector.broadcast %494 : vector<8x1xf32> to vector<8x256xf32>
    %496 = arith.mulf %495, %483 : vector<8x256xf32>
    %497 = arith.addf %471, %496 : vector<8x256xf32>
    %498 = vector.broadcast %494 : vector<8x1xf32> to vector<8x256xf32>
    %499 = arith.mulf %498, %488 : vector<8x256xf32>
    %500 = arith.subf %474, %499 : vector<8x256xf32>
    %501 = arith.mulf %500, %500 : vector<8x256xf32>
    %cst_101 = arith.constant dense<0.000000e+00> : vector<8xf32>
    %502 = vector.multi_reduction <add>, %501, %cst_101 [1] : vector<8x256xf32> to vector<8xf32>
    %503 = vector.shape_cast %502 : vector<8xf32> to vector<8x1xf32>
    %cst_102 = arith.constant 9.99999996E-13 : f32
    %504 = vector.broadcast %cst_102 : f32 to vector<8x1xf32>
    %505 = arith.addf %477, %504 : vector<8x1xf32>
    %506 = arith.divf %503, %505 : vector<8x1xf32>
    %507 = vector.broadcast %506 : vector<8x1xf32> to vector<8x256xf32>
    %508 = arith.mulf %507, %483 : vector<8x256xf32>
    %509 = arith.addf %500, %508 : vector<8x256xf32>
    %c19_i32 = arith.constant 19 : i32
    %510 = arith.truncf %509 : vector<8x256xf32> to vector<8x256xbf16>
    %cst_103 = arith.constant dense<0.000000e+00> : vector<8x256xf32>
    %511 = tpu.matmul %510, %1, %cst_103 {dimension_numbers = #tpu.dot_dimension_numbers<[1], [0], [0], [1], [0, 0, 1, 1], [], []>} : vector<8x256xbf16>, vector<256x256xbf16>, vector<8x256xf32> -> vector<8x256xf32>
    %512 = vector.broadcast %0 : f32 to vector<8x256xf32>
    %513 = arith.mulf %512, %509 : vector<8x256xf32>
    %514 = arith.addf %511, %513 : vector<8x256xf32>
    %515 = arith.mulf %509, %514 : vector<8x256xf32>
    %cst_104 = arith.constant dense<0.000000e+00> : vector<8xf32>
    %516 = vector.multi_reduction <add>, %515, %cst_104 [1] : vector<8x256xf32> to vector<8xf32>
    %517 = vector.shape_cast %516 : vector<8xf32> to vector<8x1xf32>
    %cst_105 = arith.constant 9.99999996E-13 : f32
    %518 = vector.broadcast %cst_105 : f32 to vector<8x1xf32>
    %519 = arith.addf %517, %518 : vector<8x1xf32>
    %520 = arith.divf %503, %519 : vector<8x1xf32>
    %521 = vector.broadcast %520 : vector<8x1xf32> to vector<8x256xf32>
    %522 = arith.mulf %521, %509 : vector<8x256xf32>
    %523 = arith.addf %497, %522 : vector<8x256xf32>
    %524 = vector.broadcast %520 : vector<8x1xf32> to vector<8x256xf32>
    %525 = arith.mulf %524, %514 : vector<8x256xf32>
    %526 = arith.subf %500, %525 : vector<8x256xf32>
    %527 = arith.mulf %526, %526 : vector<8x256xf32>
    %cst_106 = arith.constant dense<0.000000e+00> : vector<8xf32>
    %528 = vector.multi_reduction <add>, %527, %cst_106 [1] : vector<8x256xf32> to vector<8xf32>
    %529 = vector.shape_cast %528 : vector<8xf32> to vector<8x1xf32>
    %cst_107 = arith.constant 9.99999996E-13 : f32
    %530 = vector.broadcast %cst_107 : f32 to vector<8x1xf32>
    %531 = arith.addf %503, %530 : vector<8x1xf32>
    %532 = arith.divf %529, %531 : vector<8x1xf32>
    %533 = vector.broadcast %532 : vector<8x1xf32> to vector<8x256xf32>
    %534 = arith.mulf %533, %509 : vector<8x256xf32>
    %535 = arith.addf %526, %534 : vector<8x256xf32>
    %c0_108 = arith.constant 0 : index
    %c0_109 = arith.constant 0 : index
    %536 = vector.load %arg5[%c0_108, %c0_109] : memref<8x256xf32, #tpu.memory_space<vmem>>, vector<8x256xf32>
    tpu.vector_store %arg5[%c0_108, %c0_109], %523 {strides = array<i32>} : memref<8x256xf32, #tpu.memory_space<vmem>>, vector<8x256xf32>,
    return
  }
  func.func @transform_0(%arg0: i32) -> (i32, i32) {
    %c0_i32 = arith.constant 0 : i32
    %c0_i32_0 = arith.constant 0 : i32
    %c0_i32_1 = arith.constant 0 : i32
    return %c0_i32, %c0_i32_0 : i32, i32
  }
  func.func @transform_1(%arg0: i32) -> (i32, i32) {
    %c0_i32 = arith.constant 0 : i32
    %c0_i32_0 = arith.constant 0 : i32
    return %arg0, %c0_i32 : i32, i32
  }
  func.func @transform_2(%arg0: i32) -> (i32, i32) {
    %c0_i32 = arith.constant 0 : i32
    %c0_i32_0 = arith.constant 0 : i32
    return %arg0, %c0_i32 : i32, i32
  }
  func.func @transform_3(%arg0: i32) -> (i32, i32) {
    %c0_i32 = arith.constant 0 : i32
    %c0_i32_0 = arith.constant 0 : i32
    %c0_i32_1 = arith.constant 0 : i32
    return %c0_i32, %c0_i32_0 : i32, i32
  }
  func.func @transform_4(%arg0: i32) -> (i32, i32) {
    %c0_i32 = arith.constant 0 : i32
    %c0_i32_0 = arith.constant 0 : i32
    return %arg0, %c0_i32 : i32, i32
  }
}

</mosaic_0001>

<bundles_post_ra>
// kernel: _inv_cg_impl.1
= control target key start
LH: loop header
LB: loop body
LE: loop exit
PB: predicated region body
PF: predicated region fallthrough
CT: control target
= control target key end

     0   :  { %10 = vsyncpa [#allocation4], 0  ;;  %s1982_s15 = smov [#allocation3]   ;;  %s3639_s0 = inlined_call_operand.<no memory space> [shape: f32[1,1], index: 0, kind: input, shape index: {}]   ;;  %s3640_s1 = inlined_call_operand.vmem [shape: f32[8,256], index: 1, kind: input, shape index: {}]   ;;  %s3641_s2 = inlined_call_operand.vmem [shape: f32[8,256], index: 2, kind: input, shape index: {}]   ;;  %s3642_s3 = inlined_call_operand.hbm [shape: bf16[256,256], index: 3, kind: input, shape index: {}]   ;;  %s3643_s4 = inlined_call_operand.vmem [shape: f32[8,256], index: 4, kind: output, shape index: {}]  }
   0x1   :  { %s22_s16 = sshll.u32 %s1982_s15, 4  ;;  %s23_s16 = int_to_ptr.vmem [resolvable:$true] %s22_s16 }
   0x2   :  { %s1968_s17 = scalar_lea.vmem %s23_s16, 4096  ;;  %p1973_p1 = scmp.lt.s32.totalorder %s23_s16, %s23_s16 }
   0x3   :  { %p1969_p0 = scmp.ne.s32.totalorder %s23_s16, %s1968_s17  ;;  %p1974_p2 = scmp.lt.s32.totalorder %s1968_s17, %s1968_s17 }
   0x5   :  { %p1975_p3 = por %p1974_p2, %p1973_p1 }
   0x7   :  { %p1976_p4 = pnand %p1975_p3, %p1969_p0 }
   0x9   :  { %1979 = shalt.err (!%p1976_p4)
}
   0xa   :  { %s1983_s18 = smov 128   ;;  %s1984_s19 = smov 8  }
   0xb   :  { %28 = dma.hbm_to_vmem [thread:$0]  %s3642_s3, 4096, %s23_s16, [#allocation4], %s1983_s18, %s1983_s18, %s1984_s19  }
   0xc   :  { %1980 = dma.done.wait [#allocation4], 4096  }
   0xd   :  { %1981 = vsyncadd [#allocation4], 4294963200  ;;  %v2013_v0 = vld [vmem:[#allocation3 + $0x74] ss:$8 sps:$4 sm:$0xff]   ;;  %v2015_v1 = vld [vmem:[#allocation3 + $0x70] ss:$8 sps:$4 sm:$0xff]   ;;  %v2192_v36 = vstv %s3639_s0 }
   0xe   :  { %236 = vmatprep.subr.bf16.mxu0 %v2013_v0  ;;  %v2018_v2 = vld [vmem:[#allocation3 + $0x64] ss:$8 sps:$4 sm:$0xff]   ;;  %288 = vmatprep.subr.bf16.mxu1 %v2013_v0  ;;  %v2022_v3 = vld [vmem:[#allocation3 + $0x60] ss:$8 sps:$4 sm:$0xff]   ;;  %v2026_v4 = vld [vmem:[#allocation3 + $0x54] ss:$8 sps:$4 sm:$0xff]  }
   0xf   :  { %237 = vmatpush1.bf16.msra.mxu0 %v2015_v1  ;;  %289 = vmatpush1.bf16.msra.mxu1 %v2015_v1  ;;  %v2030_v5 = vld [vmem:[#allocation3 + $0x50] ss:$8 sps:$4 sm:$0xff]   ;;  %v2034_v6 = vld [vmem:[#allocation3 + $0x44] ss:$8 sps:$4 sm:$0xff]   ;;  %v2038_v7 = vld [vmem:[#allocation3 + $0x40] ss:$8 sps:$4 sm:$0xff]  }
  0x10   :  { %238 = vmatprep.subr.bf16.mxu0 %v2018_v2  ;;  %290 = vmatprep.subr.bf16.mxu1 %v2018_v2  ;;  %v2042_v8 = vld [vmem:[#allocation3 + $0x34] ss:$8 sps:$4 sm:$0xff]   ;;  %v2046_v9 = vld [vmem:[#allocation3 + $0x30] ss:$8 sps:$4 sm:$0xff]   ;;  %v2050_v10 = vld [vmem:[#allocation3 + $0x24] ss:$8 sps:$4 sm:$0xff]  }
  0x11   :  { %v2054_v11 = vld [vmem:[#allocation3 + $0x20] ss:$8 sps:$4 sm:$0xff]   ;;  %v2058_v12 = vld [vmem:[#allocation3 + $0x14] ss:$8 sps:$4 sm:$0xff]   ;;  %v2069_v15 = vld [vmem:[#allocation3 + $0x10] ss:$8 sps:$4 sm:$0xff]  }
  0x12   :  { %v2064_v13 = vld [vmem:[%s3641_s2 + $0x8] sm:$0xff]  ;;  %v2081_v18 = vld [vmem:[#allocation3 + $0xf4] ss:$8 sps:$4 sm:$0xff]   ;;  %v2085_v19 = vld [vmem:[#allocation3 + $0xf0] ss:$8 sps:$4 sm:$0xff]  }
  0x13   :  { %239 = vmatpush1.bf16.msra.mxu0 %v2022_v3  ;;  %291 = vmatpush1.bf16.msra.mxu1 %v2022_v3  ;;  %v75_v14 = vpack.c.bf16 %v2064_v13, %v2064_v13  ;;  %v2073_v16 = vld [vmem:[#allocation3 + $0x4] ss:$8 sps:$4 sm:$0xff]   ;;  %v2077_v17 = vld [vmem:[#allocation3] ss:$8 sps:$4 sm:$0xff]   ;;  %v2097_v22 = vld [vmem:[#allocation3 + $0xd4] ss:$8 sps:$4 sm:$0xff]   ;;  %v71_v39 = vmul.f32 %v2192_v36, %v2064_v13 }
  0x14   :  { %240 = vmatprep.subr.bf16.mxu0 %v2026_v4  ;;  %292 = vmatprep.subr.bf16.mxu1 %v2026_v4  ;;  %v2089_v20 = vld [vmem:[#allocation3 + $0xe4] ss:$8 sps:$4 sm:$0xff]   ;;  %v2093_v21 = vld [vmem:[#allocation3 + $0xe0] ss:$8 sps:$4 sm:$0xff]   ;;  %v2101_v23 = vld [vmem:[#allocation3 + $0xd0] ss:$8 sps:$4 sm:$0xff]  }
  0x15   :  { %268 = vmatprep.mubr.bf16.mxu0 %v75_v14  ;;  %v2105_v24 = vld [vmem:[#allocation3 + $0xc4] ss:$8 sps:$4 sm:$0xff]   ;;  %v2109_v25 = vld [vmem:[#allocation3 + $0xc0] ss:$8 sps:$4 sm:$0xff]   ;;  %v2113_v26 = vld [vmem:[#allocation3 + $0xb4] ss:$8 sps:$4 sm:$0xff]  }
  0x16   :  { %v2117_v27 = vld [vmem:[#allocation3 + $0xb0] ss:$8 sps:$4 sm:$0xff]   ;;  %v2121_v28 = vld [vmem:[#allocation3 + $0xa4] ss:$8 sps:$4 sm:$0xff]   ;;  %v2125_v29 = vld [vmem:[#allocation3 + $0xa0] ss:$8 sps:$4 sm:$0xff]  }
  0x17   :  { %241 = vmatpush1.bf16.msra.mxu0 %v2030_v5  ;;  %293 = vmatpush1.bf16.msra.mxu1 %v2030_v5  ;;  %v2129_v30 = vld [vmem:[#allocation3 + $0x94] ss:$8 sps:$4 sm:$0xff]   ;;  %v2133_v31 = vld [vmem:[#allocation3 + $0x90] ss:$8 sps:$4 sm:$0xff]   ;;  %v2137_v32 = vld [vmem:[#allocation3 + $0x84] ss:$8 sps:$4 sm:$0xff]  }
  0x18   :  { %242 = vmatprep.subr.bf16.mxu0 %v2034_v6  ;;  %294 = vmatprep.subr.bf16.mxu1 %v2034_v6  ;;  %v2141_v33 = vld [vmem:[#allocation3 + $0x80] ss:$8 sps:$4 sm:$0xff]  }
  0x19   :  { %v2146_v34 = vld [vmem:[%s3641_s2] sm:$0xff]  ;;  %v68_v40 = vld [vmem:[%s3640_s1 + $0x8] sm:$0xff] }
  0x1a   :  { %v74_v35 = vpack.c.bf16 %v2146_v34, %v2146_v34  ;;  %v70_v37 = vmul.f32 %v2192_v36, %v2146_v34  ;;  %v67_v38 = vld [vmem:[%s3640_s1] sm:$0xff]  ;;  %v73_v44 = vadd.f32 %v71_v39, %v68_v40 }
  0x1b   :  { %243 = vmatpush1.bf16.msra.mxu0 %v2038_v7  ;;  %295 = vmatpush1.bf16.msra.mxu1 %v2038_v7 }
  0x1c   :  { %244 = vmatprep.subr.bf16.mxu0 %v2042_v8  ;;  %296 = vmatprep.subr.bf16.mxu1 %v2042_v8  ;;  %v72_v41 = vadd.f32 %v70_v37, %v67_v38 }
  0x1f   :  { %245 = vmatpush1.bf16.msra.mxu0 %v2046_v9  ;;  %297 = vmatpush1.bf16.msra.mxu1 %v2046_v9 }
  0x20   :  { %246 = vmatprep.subr.bf16.mxu0 %v2050_v10  ;;  %298 = vmatprep.subr.bf16.mxu1 %v2050_v10 }
  0x23   :  { %247 = vmatpush1.bf16.msra.mxu0 %v2054_v11  ;;  %299 = vmatpush1.bf16.msra.mxu1 %v2054_v11 }
  0x24   :  { %248 = vmatprep.subr.bf16.mxu0 %v2058_v12  ;;  %300 = vmatprep.subr.bf16.mxu1 %v2058_v12 }
  0x27   :  { %249 = vmatpush1.bf16.msra.mxu0 %v2069_v15  ;;  %301 = vmatpush1.bf16.msra.mxu1 %v2069_v15 }
  0x28   :  { %250 = vmatprep.subr.bf16.mxu0 %v2073_v16  ;;  %302 = vmatprep.subr.bf16.mxu1 %v2073_v16 }
  0x2b   :  { %251 = vmatpush1.bf16.msra.mxu0 %v2077_v17  ;;  %303 = vmatpush1.bf16.msra.mxu1 %v2077_v17 }
  0x2c   :  { %252 = vmatprep.subr.bf16.mxu0 %v2081_v18  ;;  %304 = vmatprep.subr.bf16.mxu1 %v2081_v18 }
  0x2f   :  { %253 = vmatpush2.bf16.msra.mxu0 %v2085_v19  ;;  %305 = vmatpush2.bf16.msra.mxu1 %v2085_v19 }
  0x30   :  { %254 = vmatprep.subr.bf16.mxu0 %v2089_v20  ;;  %306 = vmatprep.subr.bf16.mxu1 %v2089_v20 }
  0x33   :  { %255 = vmatpush2.bf16.msra.mxu0 %v2093_v21  ;;  %307 = vmatpush2.bf16.msra.mxu1 %v2093_v21 }
  0x34   :  { %256 = vmatprep.subr.bf16.mxu0 %v2097_v22  ;;  %308 = vmatprep.subr.bf16.mxu1 %v2097_v22 }
  0x37   :  { %257 = vmatpush2.bf16.msra.mxu0 %v2101_v23  ;;  %309 = vmatpush2.bf16.msra.mxu1 %v2101_v23 }
  0x38   :  { %258 = vmatprep.subr.bf16.mxu0 %v2105_v24  ;;  %310 = vmatprep.subr.bf16.mxu1 %v2105_v24 }
  0x3b   :  { %259 = vmatpush2.bf16.msra.mxu0 %v2109_v25  ;;  %311 = vmatpush2.bf16.msra.mxu1 %v2109_v25 }
  0x3c   :  { %260 = vmatprep.subr.bf16.mxu0 %v2113_v26  ;;  %312 = vmatprep.subr.bf16.mxu1 %v2113_v26 }
  0x3f   :  { %261 = vmatpush2.bf16.msra.mxu0 %v2117_v27  ;;  %313 = vmatpush2.bf16.msra.mxu1 %v2117_v27 }
  0x40   :  { %262 = vmatprep.subr.bf16.mxu0 %v2121_v28  ;;  %314 = vmatprep.subr.bf16.mxu1 %v2121_v28 }
  0x43   :  { %263 = vmatpush2.bf16.msra.mxu0 %v2125_v29  ;;  %315 = vmatpush2.bf16.msra.mxu1 %v2125_v29 }
  0x44   :  { %264 = vmatprep.subr.bf16.mxu0 %v2129_v30  ;;  %316 = vmatprep.subr.bf16.mxu1 %v2129_v30 }
  0x47   :  { %265 = vmatpush2.bf16.msra.mxu0 %v2133_v31  ;;  %317 = vmatpush2.bf16.msra.mxu1 %v2133_v31 }
  0x48   :  { %266 = vmatprep.subr.bf16.mxu0 %v2137_v32  ;;  %318 = vmatprep.subr.bf16.mxu1 %v2137_v32 }
  0x4b   :  { %267 = vmatpush2.bf16.msra.mxu0 %v2141_v33  ;;  %319 = vmatpush2.bf16.msra.mxu1 %v2141_v33 }
  0x4c   :  { %361 = vmatprep.subr.bf16.mxu0 %v2013_v0  ;;  %434 = vmatprep.subr.bf16.mxu1 %v2013_v0 }
  0x4e   :  { %269 = vmatmul.mubr.bf16.vlgmr.msra.gmra.mxu0 %v74_v35 }
  0x4f   :  { %362 = vmatpush1.bf16.msra.mxu0 %v2015_v1 }
  0x50   :  { %363 = vmatprep.subr.bf16.mxu0 %v2018_v2 }
  0x53   :  { %364 = vmatpush1.bf16.msra.mxu0 %v2022_v3 }
  0x54   :  { %365 = vmatprep.subr.bf16.mxu0 %v2026_v4 }
  0x57   :  { %366 = vmatpush1.bf16.msra.mxu0 %v2030_v5 }
  0x58   :  { %367 = vmatprep.subr.bf16.mxu0 %v2034_v6 }
  0x5b   :  { %368 = vmatpush1.bf16.msra.mxu0 %v2038_v7 }
  0x5c   :  { %369 = vmatprep.subr.bf16.mxu0 %v2042_v8 }
  0x5f   :  { %370 = vmatpush1.bf16.msra.mxu0 %v2046_v9 }
  0x60   :  { %371 = vmatprep.subr.bf16.mxu0 %v2050_v10 }
  0x63   :  { %372 = vmatpush1.bf16.msra.mxu0 %v2054_v11 }
  0x64   :  { %373 = vmatprep.subr.bf16.mxu0 %v2058_v12 }
  0x67   :  { %374 = vmatpush1.bf16.msra.mxu0 %v2069_v15 }
  0x68   :  { %375 = vmatprep.subr.bf16.mxu0 %v2073_v16 }
  0x6b   :  { %376 = vmatpush1.bf16.msra.mxu0 %v2077_v17 }
  0x6c   :  { %377 = vmatprep.subr.bf16.mxu0 %v2081_v18 }
  0x6f   :  { %378 = vmatpush2.bf16.msra.mxu0 %v2085_v19 }
  0x70   :  { %379 = vmatprep.subr.bf16.mxu0 %v2089_v20 }
  0x73   :  { %380 = vmatpush2.bf16.msra.mxu0 %v2093_v21 }
  0x74   :  { %381 = vmatprep.subr.bf16.mxu0 %v2097_v22 }
  0x77   :  { %382 = vmatpush2.bf16.msra.mxu0 %v2101_v23 }
  0x78   :  { %383 = vmatprep.subr.bf16.mxu0 %v2105_v24 }
  0x7b   :  { %384 = vmatpush2.bf16.msra.mxu0 %v2109_v25 }
  0x7c   :  { %385 = vmatprep.subr.bf16.mxu0 %v2113_v26 }
  0x7f   :  { %386 = vmatpush2.bf16.msra.mxu0 %v2117_v27 }
  0x80   :  { %387 = vmatprep.subr.bf16.mxu0 %v2121_v28 }
  0x83   :  { %388 = vmatpush2.bf16.msra.mxu0 %v2125_v29 }
  0x84   :  { %389 = vmatprep.subr.bf16.mxu0 %v2129_v30 }
  0x87   :  { %390 = vmatpush2.bf16.msra.mxu0 %v2133_v31 }
  0x88   :  { %391 = vmatprep.subr.bf16.mxu0 %v2137_v32 }
  0x8b   :  { %392 = vmatpush2.bf16.msra.mxu0 %v2141_v33 }
  0x8c   :  { %507 = vmatprep.subr.bf16.mxu0 %v2013_v0 }
 0x10e   :  { %v270_v42 = vpop.f32.mrf.mxu0 }
 0x10f   :  { %v271_v43 = vadd.f32 %v270_v42, %v70_v37 }
 0x110   :  { %v272_v45 = vpop.f32.mrf.mxu0 }
 0x111   :  { %v273_v46 = vadd.f32 %v272_v45, %v71_v39  ;;  %v2204_v47 = vsub.f32 %v72_v41, %v271_v43 }
 0x112   :  { %v274_v48 = vpop.f32.mrf.mxu0 }
 0x113   :  { %v2206_v49 = vsub.f32 %v73_v44, %v273_v46  ;;  %v284_v52 = vpack.c.bf16 %v2204_v47, %v2204_v47  ;;  %v286_v53 = vmul.f32 %v2204_v47, %v2192_v36  ;;  %v279_v35 = vmul.f32 %v2204_v47, %v2204_v47 }
 0x114   :  { %v275_v50 = vpop.f32.mrf.mxu0 }
 0x115   :  { %v285_v51 = vpack.c.bf16 %v2206_v49, %v2206_v49  ;;  %v287_v56 = vmul.f32 %v2206_v49, %v2192_v36  ;;  %v280_v14 = vmul.f32 %v2206_v49, %v2206_v49 }
 0x117   :  { %320 = vmatprep.mubr.bf16.mxu1 %v285_v51  ;;  %v281_v37 = vadd.f32 %v280_v14, %v279_v35 }
 0x118   :  { %321 = vmatmul.mubr.bf16.vlgmr.msra.gmra.mxu1 %v284_v52 }
 0x119   :  { %435 = vmatpush1.bf16.msra.mxu1 %v2015_v1 }
 0x11a   :  { %436 = vmatprep.subr.bf16.mxu1 %v2018_v2 }
 0x11d   :  { %437 = vmatpush1.bf16.msra.mxu1 %v2022_v3 }
 0x11e   :  { %438 = vmatprep.subr.bf16.mxu1 %v2026_v4 }
 0x121   :  { %439 = vmatpush1.bf16.msra.mxu1 %v2030_v5 }
 0x122   :  { %440 = vmatprep.subr.bf16.mxu1 %v2034_v6 }
 0x125   :  { %441 = vmatpush1.bf16.msra.mxu1 %v2038_v7 }
 0x126   :  { %442 = vmatprep.subr.bf16.mxu1 %v2042_v8 }
 0x129   :  { %443 = vmatpush1.bf16.msra.mxu1 %v2046_v9 }
 0x12a   :  { %444 = vmatprep.subr.bf16.mxu1 %v2050_v10 }
 0x12d   :  { %445 = vmatpush1.bf16.msra.mxu1 %v2054_v11 }
 0x12e   :  { %446 = vmatprep.subr.bf16.mxu1 %v2058_v12 }
 0x131   :  { %447 = vmatpush1.bf16.msra.mxu1 %v2069_v15 }
 0x132   :  { %448 = vmatprep.subr.bf16.mxu1 %v2073_v16 }
 0x135   :  { %449 = vmatpush1.bf16.msra.mxu1 %v2077_v17 }
 0x136   :  { %450 = vmatprep.subr.bf16.mxu1 %v2081_v18 }
 0x139   :  { %451 = vmatpush2.bf16.msra.mxu1 %v2085_v19 }
 0x13a   :  { %452 = vmatprep.subr.bf16.mxu1 %v2089_v20 }
 0x13d   :  { %453 = vmatpush2.bf16.msra.mxu1 %v2093_v21 }
 0x13e   :  { %454 = vmatprep.subr.bf16.mxu1 %v2097_v22 }
 0x141   :  { %455 = vmatpush2.bf16.msra.mxu1 %v2101_v23 }
 0x142   :  { %456 = vmatprep.subr.bf16.mxu1 %v2105_v24 }
 0x145   :  { %457 = vmatpush2.bf16.msra.mxu1 %v2109_v25 }
 0x146   :  { %458 = vmatprep.subr.bf16.mxu1 %v2113_v26 }
 0x149   :  { %459 = vmatpush2.bf16.msra.mxu1 %v2117_v27 }
 0x14a   :  { %460 = vmatprep.subr.bf16.mxu1 %v2121_v28 }
 0x14d   :  { %461 = vmatpush2.bf16.msra.mxu1 %v2125_v29 }
 0x14e   :  { %462 = vmatprep.subr.bf16.mxu1 %v2129_v30 }
 0x151   :  { %463 = vmatpush2.bf16.msra.mxu1 %v2133_v31 }
 0x152   :  { %464 = vmatprep.subr.bf16.mxu1 %v2137_v32 }
 0x155   :  { %465 = vmatpush2.bf16.msra.mxu1 %v2141_v33 }
 0x156   :  { %580 = vmatprep.subr.bf16.mxu1 %v2013_v0 }
 0x1d8   :  { %v322_v54 = vpop.f32.mrf.mxu1 }
 0x1d9   :  { %v323_v55 = vadd.f32 %v322_v54, %v286_v53 }
 0x1da   :  { %v324_v57 = vpop.f32.mrf.mxu1 }
 0x1db   :  { %v325_v58 = vadd.f32 %v324_v57, %v287_v56  ;;  %v329_v60 = vmul.f32 %v323_v55, %v2204_v47 }
 0x1dc   :  { %v326_v59 = vpop.f32.mrf.mxu1 }
 0x1dd   :  { %v330_v61 = vmul.f32 %v325_v58, %v2206_v49 }
 0x1de   :  { %v327_v62 = vpop.f32.mrf.mxu1 }
 0x1df   :  { %v331_v63 = vadd.f32 %v330_v61, %v329_v60 }
 0x1e1   :  { %332 = vadd.xlane.f32.xlu0 %v331_v63 }
 0x1e5   :  { %282 = vadd.xlane.f32.xlu0 %v281_v37 }
 0x26a   :  { %v333_v38 = vpop.xlane.xlu0 %332 }
 0x26b   :  { %v334_v39 = vadd.f32 1e-12, %v333_v38 }
 0x26d   :  { %1818 = vrcp.f32 %v334_v39 }
 0x26e   :  { %v283_v41 = vpop.xlane.xlu0 %282 }
 0x26f   :  { %v350_v52 = vadd.f32 1e-12, %v283_v41 }
 0x271   :  { %1820 = vrcp.f32 %v350_v52 }
 0x27a   :  { %v1819_v40 = vpop.eup %1818 }
 0x27b   :  { %v2254_v42 = vmul.f32 %v1819_v40, %v283_v41 }
 0x27d   :  { %v341_v43 = vmul.f32 %v2254_v42, %v323_v55  ;;  %v342_v44 = vmul.f32 %v2254_v42, %v325_v58  ;;  %v338_v52 = vmul.f32 %v2254_v42, %v2206_v49 }
 0x27e   :  { %v1821_v53 = vpop.eup %1820 }
 0x27f   :  { %v2259_v45 = vsub.f32 %v2204_v47, %v341_v43  ;;  %v2262_v46 = vsub.f32 %v2206_v49, %v342_v44 }
 0x281   :  { %v345_v48 = vmul.f32 %v2259_v45, %v2259_v45  ;;  %v346_v50 = vmul.f32 %v2262_v46, %v2262_v46 }
 0x283   :  { %v347_v51 = vadd.f32 %v346_v50, %v345_v48 }
 0x285   :  { %348 = vadd.xlane.f32.xlu1 %v347_v51  ;;  %v337_v51 = vmul.f32 %v2254_v42, %v2204_v47 }
 0x30e   :  { %v2268_v54 = vpop.xlane.xlu1 %348 }
 0x30f   :  { %v352_v55 = vmul.f32 %v1821_v53, %v2268_v54 }
 0x311   :  { %v353_v56 = vmul.f32 %v352_v55, %v2204_v47  ;;  %v354_v57 = vmul.f32 %v352_v55, %v2206_v49 }
 0x313   :  { %v2274_v58 = vadd.f32 %v353_v56, %v2259_v45  ;;  %v2277_v59 = vadd.f32 %v354_v57, %v2262_v46  ;;  %v339_v56 = vadd.f32 %v337_v51, %v2146_v34  ;;  %v340_v57 = vadd.f32 %v338_v52, %v2064_v13 }
 0x315   :  { %v358_v60 = vpack.c.bf16 %v2277_v59, %v2277_v59  ;;  %v357_v61 = vpack.c.bf16 %v2274_v58, %v2274_v58  ;;  %v359_v62 = vmul.f32 %v2274_v58, %v2192_v36  ;;  %v360_v35 = vmul.f32 %v2277_v59, %v2192_v36 }
 0x317   :  { %393 = vmatprep.mubr.bf16.mxu0 %v358_v60 }
 0x318   :  { %394 = vmatmul.mubr.bf16.vlgmr.msra.gmra.mxu0 %v357_v61 }
 0x319   :  { %508 = vmatpush1.bf16.msra.mxu0 %v2015_v1 }
 0x31a   :  { %509 = vmatprep.subr.bf16.mxu0 %v2018_v2 }
 0x31d   :  { %510 = vmatpush1.bf16.msra.mxu0 %v2022_v3 }
 0x31e   :  { %511 = vmatprep.subr.bf16.mxu0 %v2026_v4 }
 0x321   :  { %512 = vmatpush1.bf16.msra.mxu0 %v2030_v5 }
 0x322   :  { %513 = vmatprep.subr.bf16.mxu0 %v2034_v6 }
 0x325   :  { %514 = vmatpush1.bf16.msra.mxu0 %v2038_v7 }
 0x326   :  { %515 = vmatprep.subr.bf16.mxu0 %v2042_v8 }
 0x329   :  { %516 = vmatpush1.bf16.msra.mxu0 %v2046_v9 }
 0x32a   :  { %517 = vmatprep.subr.bf16.mxu0 %v2050_v10 }
 0x32d   :  { %518 = vmatpush1.bf16.msra.mxu0 %v2054_v11 }
 0x32e   :  { %519 = vmatprep.subr.bf16.mxu0 %v2058_v12 }
 0x331   :  { %520 = vmatpush1.bf16.msra.mxu0 %v2069_v15 }
 0x332   :  { %521 = vmatprep.subr.bf16.mxu0 %v2073_v16 }
 0x335   :  { %522 = vmatpush1.bf16.msra.mxu0 %v2077_v17 }
 0x336   :  { %523 = vmatprep.subr.bf16.mxu0 %v2081_v18 }
 0x339   :  { %524 = vmatpush2.bf16.msra.mxu0 %v2085_v19 }
 0x33a   :  { %525 = vmatprep.subr.bf16.mxu0 %v2089_v20 }
 0x33d   :  { %526 = vmatpush2.bf16.msra.mxu0 %v2093_v21 }
 0x33e   :  { %527 = vmatprep.subr.bf16.mxu0 %v2097_v22 }
 0x341   :  { %528 = vmatpush2.bf16.msra.mxu0 %v2101_v23 }
 0x342   :  { %529 = vmatprep.subr.bf16.mxu0 %v2105_v24 }
 0x345   :  { %530 = vmatpush2.bf16.msra.mxu0 %v2109_v25 }
 0x346   :  { %531 = vmatprep.subr.bf16.mxu0 %v2113_v26 }
 0x349   :  { %532 = vmatpush2.bf16.msra.mxu0 %v2117_v27 }
 0x34a   :  { %533 = vmatprep.subr.bf16.mxu0 %v2121_v28 }
 0x34d   :  { %534 = vmatpush2.bf16.msra.mxu0 %v2125_v29 }
 0x34e   :  { %535 = vmatprep.subr.bf16.mxu0 %v2129_v30 }
 0x351   :  { %536 = vmatpush2.bf16.msra.mxu0 %v2133_v31 }
 0x352   :  { %537 = vmatprep.subr.bf16.mxu0 %v2137_v32 }
 0x355   :  { %538 = vmatpush2.bf16.msra.mxu0 %v2141_v33 }
 0x356   :  { %653 = vmatprep.subr.bf16.mxu0 %v2013_v0 }
 0x3d8   :  { %v395_v63 = vpop.f32.mrf.mxu0 }
 0x3d9   :  { %v396_v14 = vadd.f32 %v395_v63, %v359_v62 }
 0x3da   :  { %v397_v37 = vpop.f32.mrf.mxu0 }
 0x3db   :  { %v398_v38 = vadd.f32 %v397_v37, %v360_v35  ;;  %v402_v40 = vmul.f32 %v396_v14, %v2274_v58 }
 0x3dc   :  { %v399_v39 = vpop.f32.mrf.mxu0 }
 0x3dd   :  { %v403_v41 = vmul.f32 %v398_v38, %v2277_v59 }
 0x3de   :  { %v400_v43 = vpop.f32.mrf.mxu0 }
 0x3df   :  { %v404_v44 = vadd.f32 %v403_v41, %v402_v40 }
 0x3e1   :  { %405 = vadd.xlane.f32.xlu1 %v404_v44 }
 0x46a   :  { %v406_v48 = vpop.xlane.xlu1 %405 }
 0x46b   :  { %v407_v50 = vadd.f32 1e-12, %v406_v48 }
 0x46d   :  { %1822 = vrcp.f32 %v407_v50 }
 0x47a   :  { %v1823_v53 = vpop.eup %1822 }
 0x47b   :  { %v409_v55 = vmul.f32 %v1823_v53, %v2268_v54 }
 0x47d   :  { %v410_v60 = vmul.f32 %v409_v55, %v2274_v58  ;;  %v411_v61 = vmul.f32 %v409_v55, %v2277_v59  ;;  %v414_v62 = vmul.f32 %v409_v55, %v396_v14  ;;  %v415_v63 = vmul.f32 %v409_v55, %v398_v38 }
 0x47e   :  { %v423_v14 = vadd.f32 1e-12, %v2268_v54 }
 0x47f   :  { %v2330_v35 = vadd.f32 %v410_v60, %v339_v56  ;;  %v2332_v37 = vadd.f32 %v411_v61, %v340_v57  ;;  %v2335_v47 = vsub.f32 %v2259_v45, %v414_v62  ;;  %v2338_v49 = vsub.f32 %v2262_v46, %v415_v63 }
 0x480   :  { %1824 = vrcp.f32 %v423_v14 }
 0x481   :  { %v418_v34 = vmul.f32 %v2335_v47, %v2335_v47  ;;  %v419_v13 = vmul.f32 %v2338_v49, %v2338_v49 }
 0x483   :  { %v420_v42 = vadd.f32 %v419_v13, %v418_v34 }
 0x485   :  { %421 = vadd.xlane.f32.xlu0 %v420_v42 }
 0x48d   :  { %v1825_v38 = vpop.eup %1824 }
 0x50e   :  { %v2345_v39 = vpop.xlane.xlu0 %421 }
 0x50f   :  { %v425_v45 = vmul.f32 %v1825_v38, %v2345_v39 }
 0x511   :  { %v426_v40 = vmul.f32 %v425_v45, %v2274_v58  ;;  %v427_v46 = vmul.f32 %v425_v45, %v2277_v59 }
 0x513   :  { %v2351_v41 = vadd.f32 %v426_v40, %v2335_v47  ;;  %v2354_v43 = vadd.f32 %v427_v46, %v2338_v49 }
 0x515   :  { %v431_v44 = vpack.c.bf16 %v2354_v43, %v2354_v43  ;;  %v430_v54 = vpack.c.bf16 %v2351_v41, %v2351_v41  ;;  %v432_v58 = vmul.f32 %v2351_v41, %v2192_v36  ;;  %v433_v50 = vmul.f32 %v2354_v43, %v2192_v36 }
 0x517   :  { %466 = vmatprep.mubr.bf16.mxu1 %v431_v44 }
 0x518   :  { %467 = vmatmul.mubr.bf16.vlgmr.msra.gmra.mxu1 %v430_v54 }
 0x519   :  { %581 = vmatpush1.bf16.msra.mxu1 %v2015_v1 }
 0x51a   :  { %582 = vmatprep.subr.bf16.mxu1 %v2018_v2 }
 0x51d   :  { %583 = vmatpush1.bf16.msra.mxu1 %v2022_v3 }
 0x51e   :  { %584 = vmatprep.subr.bf16.mxu1 %v2026_v4 }
 0x521   :  { %585 = vmatpush1.bf16.msra.mxu1 %v2030_v5 }
 0x522   :  { %586 = vmatprep.subr.bf16.mxu1 %v2034_v6 }
 0x525   :  { %587 = vmatpush1.bf16.msra.mxu1 %v2038_v7 }
 0x526   :  { %588 = vmatprep.subr.bf16.mxu1 %v2042_v8 }
 0x529   :  { %589 = vmatpush1.bf16.msra.mxu1 %v2046_v9 }
 0x52a   :  { %590 = vmatprep.subr.bf16.mxu1 %v2050_v10 }
 0x52d   :  { %591 = vmatpush1.bf16.msra.mxu1 %v2054_v11 }
 0x52e   :  { %592 = vmatprep.subr.bf16.mxu1 %v2058_v12 }
 0x531   :  { %593 = vmatpush1.bf16.msra.mxu1 %v2069_v15 }
 0x532   :  { %594 = vmatprep.subr.bf16.mxu1 %v2073_v16 }
 0x535   :  { %595 = vmatpush1.bf16.msra.mxu1 %v2077_v17 }
 0x536   :  { %596 = vmatprep.subr.bf16.mxu1 %v2081_v18 }
 0x539   :  { %597 = vmatpush2.bf16.msra.mxu1 %v2085_v19 }
 0x53a   :  { %598 = vmatprep.subr.bf16.mxu1 %v2089_v20 }
 0x53d   :  { %599 = vmatpush2.bf16.msra.mxu1 %v2093_v21 }
 0x53e   :  { %600 = vmatprep.subr.bf16.mxu1 %v2097_v22 }
 0x541   :  { %601 = vmatpush2.bf16.msra.mxu1 %v2101_v23 }
 0x542   :  { %602 = vmatprep.subr.bf16.mxu1 %v2105_v24 }
 0x545   :  { %603 = vmatpush2.bf16.msra.mxu1 %v2109_v25 }
 0x546   :  { %604 = vmatprep.subr.bf16.mxu1 %v2113_v26 }
 0x549   :  { %605 = vmatpush2.bf16.msra.mxu1 %v2117_v27 }
 0x54a   :  { %606 = vmatprep.subr.bf16.mxu1 %v2121_v28 }
 0x54d   :  { %607 = vmatpush2.bf16.msra.mxu1 %v2125_v29 }
 0x54e   :  { %608 = vmatprep.subr.bf16.mxu1 %v2129_v30 }
 0x551   :  { %609 = vmatpush2.bf16.msra.mxu1 %v2133_v31 }
 0x552   :  { %610 = vmatprep.subr.bf16.mxu1 %v2137_v32 }
 0x555   :  { %611 = vmatpush2.bf16.msra.mxu1 %v2141_v33 }
 0x556   :  { %726 = vmatprep.subr.bf16.mxu1 %v2013_v0 }
 0x5d8   :  { %v468_v59 = vpop.f32.mrf.mxu1 }
 0x5d9   :  { %v469_v48 = vadd.f32 %v468_v59, %v432_v58 }
 0x5da   :  { %v470_v51 = vpop.f32.mrf.mxu1 }
 0x5db   :  { %v471_v52 = vadd.f32 %v470_v51, %v433_v50  ;;  %v475_v55 = vmul.f32 %v469_v48, %v2351_v41 }
 0x5dc   :  { %v472_v53 = vpop.f32.mrf.mxu1 }
 0x5dd   :  { %v476_v56 = vmul.f32 %v471_v52, %v2354_v43 }
 0x5de   :  { %v473_v57 = vpop.f32.mrf.mxu1 }
 0x5df   :  { %v477_v60 = vadd.f32 %v476_v56, %v475_v55 }
 0x5e1   :  { %478 = vadd.xlane.f32.xlu1 %v477_v60 }
 0x66a   :  { %v479_v61 = vpop.xlane.xlu1 %478 }
 0x66b   :  { %v480_v62 = vadd.f32 1e-12, %v479_v61 }
 0x66d   :  { %1826 = vrcp.f32 %v480_v62 }
 0x67a   :  { %v1827_v63 = vpop.eup %1826 }
 0x67b   :  { %v482_v34 = vmul.f32 %v1827_v63, %v2345_v39 }
 0x67d   :  { %v483_v13 = vmul.f32 %v482_v34, %v2351_v41  ;;  %v484_v42 = vmul.f32 %v482_v34, %v2354_v43  ;;  %v487_v14 = vmul.f32 %v482_v34, %v469_v48  ;;  %v488_v38 = vmul.f32 %v482_v34, %v471_v52 }
 0x67f   :  { %v2402_v45 = vadd.f32 %v483_v13, %v2330_v35  ;;  %v2405_v40 = vadd.f32 %v484_v42, %v2332_v37  ;;  %v2408_v46 = vsub.f32 %v2335_v47, %v487_v14  ;;  %v2411_v44 = vsub.f32 %v2338_v49, %v488_v38 }
 0x680   :  { %v496_v35 = vadd.f32 1e-12, %v2345_v39 }
 0x681   :  { %v491_v54 = vmul.f32 %v2408_v46, %v2408_v46  ;;  %v492_v58 = vmul.f32 %v2411_v44, %v2411_v44 }
 0x682   :  { %1828 = vrcp.f32 %v496_v35 }
 0x683   :  { %v493_v59 = vadd.f32 %v492_v58, %v491_v54 }
 0x685   :  { %494 = vadd.xlane.f32.xlu0 %v493_v59 }
 0x68f   :  { %v1829_v48 = vpop.eup %1828 }
 0x70e   :  { %v2418_v37 = vpop.xlane.xlu0 %494 }
 0x70f   :  { %v498_v47 = vmul.f32 %v1829_v48, %v2418_v37 }
 0x711   :  { %v499_v50 = vmul.f32 %v498_v47, %v2351_v41  ;;  %v500_v49 = vmul.f32 %v498_v47, %v2354_v43 }
 0x713   :  { %v2424_v51 = vadd.f32 %v499_v50, %v2408_v46  ;;  %v2427_v52 = vadd.f32 %v500_v49, %v2411_v44 }
 0x715   :  { %v504_v53 = vpack.c.bf16 %v2427_v52, %v2427_v52  ;;  %v503_v39 = vpack.c.bf16 %v2424_v51, %v2424_v51  ;;  %v505_v41 = vmul.f32 %v2424_v51, %v2192_v36  ;;  %v506_v56 = vmul.f32 %v2427_v52, %v2192_v36 }
 0x717   :  { %539 = vmatprep.mubr.bf16.mxu0 %v504_v53 }
 0x718   :  { %540 = vmatmul.mubr.bf16.vlgmr.msra.gmra.mxu0 %v503_v39 }
 0x719   :  { %654 = vmatpush1.bf16.msra.mxu0 %v2015_v1 }
 0x71a   :  { %655 = vmatprep.subr.bf16.mxu0 %v2018_v2 }
 0x71d   :  { %656 = vmatpush1.bf16.msra.mxu0 %v2022_v3 }
 0x71e   :  { %657 = vmatprep.subr.bf16.mxu0 %v2026_v4 }
 0x721   :  { %658 = vmatpush1.bf16.msra.mxu0 %v2030_v5 }
 0x722   :  { %659 = vmatprep.subr.bf16.mxu0 %v2034_v6 }
 0x725   :  { %660 = vmatpush1.bf16.msra.mxu0 %v2038_v7 }
 0x726   :  { %661 = vmatprep.subr.bf16.mxu0 %v2042_v8 }
 0x729   :  { %662 = vmatpush1.bf16.msra.mxu0 %v2046_v9 }
 0x72a   :  { %663 = vmatprep.subr.bf16.mxu0 %v2050_v10 }
 0x72d   :  { %664 = vmatpush1.bf16.msra.mxu0 %v2054_v11 }
 0x72e   :  { %665 = vmatprep.subr.bf16.mxu0 %v2058_v12 }
 0x731   :  { %666 = vmatpush1.bf16.msra.mxu0 %v2069_v15 }
 0x732   :  { %667 = vmatprep.subr.bf16.mxu0 %v2073_v16 }
 0x735   :  { %668 = vmatpush1.bf16.msra.mxu0 %v2077_v17 }
 0x736   :  { %669 = vmatprep.subr.bf16.mxu0 %v2081_v18 }
 0x739   :  { %670 = vmatpush2.bf16.msra.mxu0 %v2085_v19 }
 0x73a   :  { %671 = vmatprep.subr.bf16.mxu0 %v2089_v20 }
 0x73d   :  { %672 = vmatpush2.bf16.msra.mxu0 %v2093_v21 }
 0x73e   :  { %673 = vmatprep.subr.bf16.mxu0 %v2097_v22 }
 0x741   :  { %674 = vmatpush2.bf16.msra.mxu0 %v2101_v23 }
 0x742   :  { %675 = vmatprep.subr.bf16.mxu0 %v2105_v24 }
 0x745   :  { %676 = vmatpush2.bf16.msra.mxu0 %v2109_v25 }
 0x746   :  { %677 = vmatprep.subr.bf16.mxu0 %v2113_v26 }
 0x749   :  { %678 = vmatpush2.bf16.msra.mxu0 %v2117_v27 }
 0x74a   :  { %679 = vmatprep.subr.bf16.mxu0 %v2121_v28 }
 0x74d   :  { %680 = vmatpush2.bf16.msra.mxu0 %v2125_v29 }
 0x74e   :  { %681 = vmatprep.subr.bf16.mxu0 %v2129_v30 }
 0x751   :  { %682 = vmatpush2.bf16.msra.mxu0 %v2133_v31 }
 0x752   :  { %683 = vmatprep.subr.bf16.mxu0 %v2137_v32 }
 0x755   :  { %684 = vmatpush2.bf16.msra.mxu0 %v2141_v33 }
 0x756   :  { %799 = vmatprep.subr.bf16.mxu0 %v2013_v0 }
 0x7d8   :  { %v541_v43 = vpop.f32.mrf.mxu0 }
 0x7d9   :  { %v542_v55 = vadd.f32 %v541_v43, %v505_v41 }
 0x7da   :  { %v543_v57 = vpop.f32.mrf.mxu0 }
 0x7db   :  { %v544_v60 = vadd.f32 %v543_v57, %v506_v56  ;;  %v548_v62 = vmul.f32 %v542_v55, %v2424_v51 }
 0x7dc   :  { %v545_v61 = vpop.f32.mrf.mxu0 }
 0x7dd   :  { %v549_v63 = vmul.f32 %v544_v60, %v2427_v52 }
 0x7de   :  { %v546_v34 = vpop.f32.mrf.mxu0 }
 0x7df   :  { %v550_v13 = vadd.f32 %v549_v63, %v548_v62 }
 0x7e1   :  { %551 = vadd.xlane.f32.xlu1 %v550_v13 }
 0x86a   :  { %v552_v42 = vpop.xlane.xlu1 %551 }
 0x86b   :  { %v553_v0 = vadd.f32 1e-12, %v552_v42 }
 0x86d   :  { %1830 = vrcp.f32 %v553_v0 }
 0x87a   :  { %v1831_v14 = vpop.eup %1830 }
 0x87b   :  { %v555_v38 = vmul.f32 %v1831_v14, %v2418_v37 }
 0x87d   :  { %v556_v54 = vmul.f32 %v555_v38, %v2424_v51  ;;  %v557_v58 = vmul.f32 %v555_v38, %v2427_v52  ;;  %v560_v59 = vmul.f32 %v555_v38, %v542_v55  ;;  %v561_v35 = vmul.f32 %v555_v38, %v544_v60 }
 0x87f   :  { %v2475_v48 = vadd.f32 %v556_v54, %v2402_v45  ;;  %v2478_v47 = vadd.f32 %v557_v58, %v2405_v40  ;;  %v2481_v50 = vsub.f32 %v2408_v46, %v560_v59  ;;  %v2484_v49 = vsub.f32 %v2411_v44, %v561_v35 }
 0x880   :  { %v569_v45 = vadd.f32 1e-12, %v2418_v37 }
 0x881   :  { %v564_v53 = vmul.f32 %v2481_v50, %v2481_v50  ;;  %v565_v39 = vmul.f32 %v2484_v49, %v2484_v49 }
 0x882   :  { %1832 = vrcp.f32 %v569_v45 }
 0x883   :  { %v566_v41 = vadd.f32 %v565_v39, %v564_v53 }
 0x885   :  { %567 = vadd.xlane.f32.xlu0 %v566_v41 }
 0x88f   :  { %v1833_v43 = vpop.eup %1832 }
 0x90e   :  { %v2491_v40 = vpop.xlane.xlu0 %567 }
 0x90f   :  { %v571_v46 = vmul.f32 %v1833_v43, %v2491_v40 }
 0x911   :  { %v572_v55 = vmul.f32 %v571_v46, %v2424_v51  ;;  %v573_v44 = vmul.f32 %v571_v46, %v2427_v52 }
 0x913   :  { %v2497_v56 = vadd.f32 %v572_v55, %v2481_v50  ;;  %v2500_v57 = vadd.f32 %v573_v44, %v2484_v49  ;;  %v2581_v55 = vld [vmem:[#allocation3 + $0x70] ss:$8 sps:$4 sm:$0xff]   ;;  %v2584_v44 = vld [vmem:[#allocation3 + $0x64] ss:$8 sps:$4 sm:$0xff]  }
 0x915   :  { %v577_v60 = vpack.c.bf16 %v2500_v57, %v2500_v57  ;;  %v576_v37 = vpack.c.bf16 %v2497_v56, %v2497_v56 }
 0x917   :  { %612 = vmatprep.mubr.bf16.mxu1 %v577_v60  ;;  %v2593_v60 = vld [vmem:[#allocation3 + $0x50] ss:$8 sps:$4 sm:$0xff]  }
 0x918   :  { %613 = vmatmul.mubr.bf16.vlgmr.msra.gmra.mxu1 %v576_v37  ;;  %v2596_v37 = vld [vmem:[#allocation3 + $0x44] ss:$8 sps:$4 sm:$0xff]  }
 0x919   :  { %727 = vmatpush1.bf16.msra.mxu1 %v2015_v1  ;;  %v2537_v1 = vld [vmem:[#allocation3 + $0x74] ss:$8 sps:$4 sm:$0xff]  }
 0x91a   :  { %728 = vmatprep.subr.bf16.mxu1 %v2018_v2  ;;  %v578_v2 = vmul.f32 %v2497_v56, %v2192_v36 }
 0x91d   :  { %729 = vmatpush1.bf16.msra.mxu1 %v2022_v3 }
 0x91e   :  { %730 = vmatprep.subr.bf16.mxu1 %v2026_v4 }
 0x921   :  { %731 = vmatpush1.bf16.msra.mxu1 %v2030_v5  ;;  %v579_v5 = vmul.f32 %v2500_v57, %v2192_v36 }
 0x922   :  { %732 = vmatprep.subr.bf16.mxu1 %v2034_v6 }
 0x925   :  { %733 = vmatpush1.bf16.msra.mxu1 %v2038_v7 }
 0x926   :  { %734 = vmatprep.subr.bf16.mxu1 %v2042_v8 }
 0x929   :  { %735 = vmatpush1.bf16.msra.mxu1 %v2046_v9 }
 0x92a   :  { %736 = vmatprep.subr.bf16.mxu1 %v2050_v10 }
 0x92d   :  { %737 = vmatpush1.bf16.msra.mxu1 %v2054_v11 }
 0x92e   :  { %738 = vmatprep.subr.bf16.mxu1 %v2058_v12 }
 0x931   :  { %739 = vmatpush1.bf16.msra.mxu1 %v2069_v15 }
 0x932   :  { %740 = vmatprep.subr.bf16.mxu1 %v2073_v16 }
 0x935   :  { %741 = vmatpush1.bf16.msra.mxu1 %v2077_v17 }
 0x936   :  { %742 = vmatprep.subr.bf16.mxu1 %v2081_v18 }
 0x939   :  { %743 = vmatpush2.bf16.msra.mxu1 %v2085_v19 }
 0x93a   :  { %744 = vmatprep.subr.bf16.mxu1 %v2089_v20 }
 0x93d   :  { %745 = vmatpush2.bf16.msra.mxu1 %v2093_v21 }
 0x93e   :  { %746 = vmatprep.subr.bf16.mxu1 %v2097_v22 }
 0x941   :  { %747 = vmatpush2.bf16.msra.mxu1 %v2101_v23 }
 0x942   :  { %748 = vmatprep.subr.bf16.mxu1 %v2105_v24 }
 0x945   :  { %749 = vmatpush2.bf16.msra.mxu1 %v2109_v25 }
 0x946   :  { %750 = vmatprep.subr.bf16.mxu1 %v2113_v26 }
 0x949   :  { %751 = vmatpush2.bf16.msra.mxu1 %v2117_v27 }
 0x94a   :  { %752 = vmatprep.subr.bf16.mxu1 %v2121_v28 }
 0x94d   :  { %753 = vmatpush2.bf16.msra.mxu1 %v2125_v29 }
 0x94e   :  { %754 = vmatprep.subr.bf16.mxu1 %v2129_v30 }
 0x951   :  { %755 = vmatpush2.bf16.msra.mxu1 %v2133_v31 }
 0x952   :  { %756 = vmatprep.subr.bf16.mxu1 %v2137_v32 }
 0x955   :  { %757 = vmatpush2.bf16.msra.mxu1 %v2141_v33 }
 0x956   :  { %872 = vmatprep.subr.bf16.mxu1 %v2537_v1 }
 0x9d8   :  { %v614_v3 = vpop.f32.mrf.mxu1 }
 0x9d9   :  { %v615_v4 = vadd.f32 %v614_v3, %v578_v2  ;;  %v2599_v2 = vld [vmem:[#allocation3 + $0x40] ss:$8 sps:$4 sm:$0xff]   ;;  %v2602_v3 = vld [vmem:[#allocation3 + $0x34] ss:$8 sps:$4 sm:$0xff]  }
 0x9da   :  { %v616_v6 = vpop.f32.mrf.mxu1 }
 0x9db   :  { %v617_v7 = vadd.f32 %v616_v6, %v579_v5  ;;  %v621_v9 = vmul.f32 %v615_v4, %v2497_v56  ;;  %v2608_v5 = vld [vmem:[#allocation3 + $0x24] ss:$8 sps:$4 sm:$0xff]   ;;  %v2611_v6 = vld [vmem:[#allocation3 + $0x20] ss:$8 sps:$4 sm:$0xff]  }
 0x9dc   :  { %v618_v8 = vpop.f32.mrf.mxu1 }
 0x9dd   :  { %v622_v10 = vmul.f32 %v617_v7, %v2500_v57 }
 0x9de   :  { %v619_v11 = vpop.f32.mrf.mxu1 }
 0x9df   :  { %v623_v51 = vadd.f32 %v622_v10, %v621_v9 }
 0x9e1   :  { %624 = vadd.xlane.f32.xlu1 %v623_v51 }
 0xa6a   :  { %v625_v52 = vpop.xlane.xlu1 %624 }
 0xa6b   :  { %v626_v61 = vadd.f32 1e-12, %v625_v52 }
 0xa6d   :  { %1834 = vrcp.f32 %v626_v61 }
 0xa7a   :  { %v1835_v62 = vpop.eup %1834 }
 0xa7b   :  { %v628_v63 = vmul.f32 %v1835_v62, %v2491_v40 }
 0xa7d   :  { %v629_v34 = vmul.f32 %v628_v63, %v2497_v56  ;;  %v630_v13 = vmul.f32 %v628_v63, %v2500_v57  ;;  %v633_v42 = vmul.f32 %v628_v63, %v615_v4  ;;  %v634_v0 = vmul.f32 %v628_v63, %v617_v7  ;;  %v2605_v4 = vld [vmem:[#allocation3 + $0x30] ss:$8 sps:$4 sm:$0xff]  }
 0xa7f   :  { %v2550_v14 = vadd.f32 %v629_v34, %v2475_v48  ;;  %v2553_v38 = vadd.f32 %v630_v13, %v2478_v47  ;;  %v2556_v54 = vsub.f32 %v2481_v50, %v633_v42  ;;  %v2559_v58 = vsub.f32 %v2484_v49, %v634_v0 }
 0xa80   :  { %v642_v48 = vadd.f32 1e-12, %v2491_v40 }
 0xa81   :  { %v637_v59 = vmul.f32 %v2556_v54, %v2556_v54  ;;  %v638_v35 = vmul.f32 %v2559_v58, %v2559_v58 }
 0xa82   :  { %1836 = vrcp.f32 %v642_v48  ;;  %v2702_v48 = vld [vmem:[#allocation3 + $0xf0] ss:$8 sps:$4 sm:$0xff]  }
 0xa83   :  { %v639_v53 = vadd.f32 %v638_v35, %v637_v59  ;;  %v2693_v59 = vld [vmem:[#allocation3 + $0x4] ss:$8 sps:$4 sm:$0xff]   ;;  %v2696_v35 = vld [vmem:[#allocation3] ss:$8 sps:$4 sm:$0xff]  }
 0xa85   :  { %640 = vadd.xlane.f32.xlu0 %v639_v53  ;;  %v2699_v53 = vld [vmem:[#allocation3 + $0xf4] ss:$8 sps:$4 sm:$0xff]  }
 0xa8f   :  { %v1837_v39 = vpop.eup %1836 }
 0xb0e   :  { %v2566_v47 = vpop.xlane.xlu0 %640 }
 0xb0f   :  { %v644_v50 = vmul.f32 %v1837_v39, %v2566_v47  ;;  %v715_v52 = vadd.f32 1e-12, %v2566_v47  ;;  %v2705_v39 = vld [vmem:[#allocation3 + $0xe4] ss:$8 sps:$4 sm:$0xff]  }
 0xb11   :  { %v645_v41 = vmul.f32 %v644_v50, %v2497_v56  ;;  %v646_v49 = vmul.f32 %v644_v50, %v2500_v57  ;;  %v2587_v56 = vld [vmem:[#allocation3 + $0x60] ss:$8 sps:$4 sm:$0xff]   ;;  %v2590_v57 = vld [vmem:[#allocation3 + $0x54] ss:$8 sps:$4 sm:$0xff]  }
 0xb12   :  { %v2711_v50 = vld [vmem:[#allocation3 + $0xd4] ss:$8 sps:$4 sm:$0xff]  }
 0xb13   :  { %v2572_v45 = vadd.f32 %v645_v41, %v2556_v54  ;;  %v2575_v43 = vadd.f32 %v646_v49, %v2559_v58  ;;  %v2714_v41 = vld [vmem:[#allocation3 + $0xd0] ss:$8 sps:$4 sm:$0xff]   ;;  %v2717_v49 = vld [vmem:[#allocation3 + $0xc4] ss:$8 sps:$4 sm:$0xff]  }
 0xb15   :  { %v650_v46 = vpack.c.bf16 %v2575_v43, %v2575_v43  ;;  %v649_v40 = vpack.c.bf16 %v2572_v45, %v2572_v45 }
 0xb17   :  { %685 = vmatprep.mubr.bf16.mxu0 %v650_v46  ;;  %v2726_v46 = vld [vmem:[#allocation3 + $0xb0] ss:$8 sps:$4 sm:$0xff]  }
 0xb18   :  { %686 = vmatmul.mubr.bf16.vlgmr.msra.gmra.mxu0 %v649_v40  ;;  %v2729_v40 = vld [vmem:[#allocation3 + $0xa4] ss:$8 sps:$4 sm:$0xff]  }
 0xb19   :  { %800 = vmatpush1.bf16.msra.mxu0 %v2581_v55 }
 0xb1a   :  { %801 = vmatprep.subr.bf16.mxu0 %v2584_v44 }
 0xb1d   :  { %802 = vmatpush1.bf16.msra.mxu0 %v2587_v56 }
 0xb1e   :  { %803 = vmatprep.subr.bf16.mxu0 %v2590_v57 }
 0xb21   :  { %804 = vmatpush1.bf16.msra.mxu0 %v2593_v60 }
 0xb22   :  { %805 = vmatprep.subr.bf16.mxu0 %v2596_v37 }
 0xb25   :  { %806 = vmatpush1.bf16.msra.mxu0 %v2599_v2 }
 0xb26   :  { %807 = vmatprep.subr.bf16.mxu0 %v2602_v3 }
 0xb29   :  { %808 = vmatpush1.bf16.msra.mxu0 %v2605_v4 }
 0xb2a   :  { %809 = vmatprep.subr.bf16.mxu0 %v2608_v5 }
 0xb2d   :  { %810 = vmatpush1.bf16.msra.mxu0 %v2611_v6 }
 0xb2e   :  { %811 = vmatprep.subr.bf16.mxu0 %v2058_v12  ;;  %v651_v12 = vmul.f32 %v2572_v45, %v2192_v36 }
 0xb31   :  { %812 = vmatpush1.bf16.msra.mxu0 %v2069_v15 }
 0xb32   :  { %813 = vmatprep.subr.bf16.mxu0 %v2073_v16 }
 0xb35   :  { %814 = vmatpush1.bf16.msra.mxu0 %v2077_v17  ;;  %v652_v17 = vmul.f32 %v2575_v43, %v2192_v36 }
 0xb36   :  { %815 = vmatprep.subr.bf16.mxu0 %v2081_v18 }
 0xb39   :  { %816 = vmatpush2.bf16.msra.mxu0 %v2085_v19 }
 0xb3a   :  { %817 = vmatprep.subr.bf16.mxu0 %v2089_v20 }
 0xb3d   :  { %818 = vmatpush2.bf16.msra.mxu0 %v2093_v21 }
 0xb3e   :  { %819 = vmatprep.subr.bf16.mxu0 %v2097_v22 }
 0xb41   :  { %820 = vmatpush2.bf16.msra.mxu0 %v2101_v23 }
 0xb42   :  { %821 = vmatprep.subr.bf16.mxu0 %v2105_v24 }
 0xb45   :  { %822 = vmatpush2.bf16.msra.mxu0 %v2109_v25 }
 0xb46   :  { %823 = vmatprep.subr.bf16.mxu0 %v2113_v26 }
 0xb49   :  { %824 = vmatpush2.bf16.msra.mxu0 %v2117_v27 }
 0xb4a   :  { %825 = vmatprep.subr.bf16.mxu0 %v2121_v28 }
 0xb4d   :  { %826 = vmatpush2.bf16.msra.mxu0 %v2125_v29 }
 0xb4e   :  { %827 = vmatprep.subr.bf16.mxu0 %v2129_v30 }
 0xb51   :  { %828 = vmatpush2.bf16.msra.mxu0 %v2133_v31 }
 0xb52   :  { %829 = vmatprep.subr.bf16.mxu0 %v2137_v32 }
 0xb55   :  { %830 = vmatpush2.bf16.msra.mxu0 %v2141_v33 }
 0xb56   :  { %945 = vmatprep.subr.bf16.mxu0 %v2537_v1 }
 0xbd8   :  { %v687_v15 = vpop.f32.mrf.mxu0 }
 0xbd9   :  { %v688_v16 = vadd.f32 %v687_v15, %v651_v12  ;;  %v2732_v12 = vld [vmem:[#allocation3 + $0xa0] ss:$8 sps:$4 sm:$0xff]   ;;  %v2735_v15 = vld [vmem:[#allocation3 + $0x94] ss:$8 sps:$4 sm:$0xff]  }
 0xbda   :  { %v689_v18 = vpop.f32.mrf.mxu0 }
 0xbdb   :  { %v690_v19 = vadd.f32 %v689_v18, %v652_v17  ;;  %v694_v21 = vmul.f32 %v688_v16, %v2572_v45  ;;  %v2741_v17 = vld [vmem:[#allocation3 + $0x84] ss:$8 sps:$4 sm:$0xff]   ;;  %v2744_v18 = vld [vmem:[#allocation3 + $0x80] ss:$8 sps:$4 sm:$0xff]  }
 0xbdc   :  { %v691_v20 = vpop.f32.mrf.mxu0 }
 0xbdd   :  { %v695_v22 = vmul.f32 %v690_v19, %v2575_v43 }
 0xbde   :  { %v692_v23 = vpop.f32.mrf.mxu0 }
 0xbdf   :  { %v696_v24 = vadd.f32 %v695_v22, %v694_v21 }
 0xbe1   :  { %697 = vadd.xlane.f32.xlu1 %v696_v24 }
 0xc6a   :  { %v698_v25 = vpop.xlane.xlu1 %697 }
 0xc6b   :  { %v699_v26 = vadd.f32 1e-12, %v698_v25 }
 0xc6d   :  { %1838 = vrcp.f32 %v699_v26 }
 0xc6e   :  { %1840 = vrcp.f32 %v715_v52 }
 0xc7a   :  { %v1839_v27 = vpop.eup %1838 }
 0xc7b   :  { %v701_v28 = vmul.f32 %v1839_v27, %v2566_v47  ;;  %v1841_v61 = vpop.eup %1840  ;;  %v2708_v47 = vld [vmem:[#allocation3 + $0xe0] ss:$8 sps:$4 sm:$0xff]  }
 0xc7d   :  { %v702_v29 = vmul.f32 %v701_v28, %v2572_v45  ;;  %v703_v30 = vmul.f32 %v701_v28, %v2575_v43  ;;  %v706_v31 = vmul.f32 %v701_v28, %v688_v16  ;;  %v707_v32 = vmul.f32 %v701_v28, %v690_v19  ;;  %v2738_v16 = vld [vmem:[#allocation3 + $0x90] ss:$8 sps:$4 sm:$0xff]  }
 0xc7f   :  { %v2645_v33 = vadd.f32 %v702_v29, %v2550_v14  ;;  %v2648_v7 = vadd.f32 %v703_v30, %v2553_v38  ;;  %v2651_v8 = vsub.f32 %v2556_v54, %v706_v31  ;;  %v2654_v9 = vsub.f32 %v2559_v58, %v707_v32  ;;  %v2687_v54 = vld [vmem:[#allocation3 + $0x14] ss:$8 sps:$4 sm:$0xff]   ;;  %v2690_v58 = vld [vmem:[#allocation3 + $0x10] ss:$8 sps:$4 sm:$0xff]  }
 0xc81   :  { %v710_v10 = vmul.f32 %v2651_v8, %v2651_v8  ;;  %v711_v11 = vmul.f32 %v2654_v9, %v2654_v9 }
 0xc83   :  { %v712_v51 = vadd.f32 %v711_v11, %v710_v10 }
 0xc85   :  { %713 = vadd.xlane.f32.xlu0 %v712_v51 }
 0xd0e   :  { %v2661_v62 = vpop.xlane.xlu0 %713 }
 0xd0f   :  { %v717_v63 = vmul.f32 %v1841_v61, %v2661_v62 }
 0xd11   :  { %v718_v34 = vmul.f32 %v717_v63, %v2572_v45  ;;  %v719_v13 = vmul.f32 %v717_v63, %v2575_v43  ;;  %v2720_v45 = vld [vmem:[#allocation3 + $0xc0] ss:$8 sps:$4 sm:$0xff]   ;;  %v2723_v43 = vld [vmem:[#allocation3 + $0xb4] ss:$8 sps:$4 sm:$0xff]  }
 0xd13   :  { %v2667_v42 = vadd.f32 %v718_v34, %v2651_v8  ;;  %v2670_v0 = vadd.f32 %v719_v13, %v2654_v9 }
 0xd15   :  { %v723_v14 = vpack.c.bf16 %v2670_v0, %v2670_v0  ;;  %v722_v38 = vpack.c.bf16 %v2667_v42, %v2667_v42  ;;  %v724_v19 = vmul.f32 %v2667_v42, %v2192_v36  ;;  %v725_v22 = vmul.f32 %v2670_v0, %v2192_v36 }
 0xd17   :  { %758 = vmatprep.mubr.bf16.mxu1 %v723_v14 }
 0xd18   :  { %759 = vmatmul.mubr.bf16.vlgmr.msra.gmra.mxu1 %v722_v38 }
 0xd19   :  { %873 = vmatpush1.bf16.msra.mxu1 %v2581_v55 }
 0xd1a   :  { %874 = vmatprep.subr.bf16.mxu1 %v2584_v44 }
 0xd1d   :  { %875 = vmatpush1.bf16.msra.mxu1 %v2587_v56 }
 0xd1e   :  { %876 = vmatprep.subr.bf16.mxu1 %v2590_v57 }
 0xd21   :  { %877 = vmatpush1.bf16.msra.mxu1 %v2593_v60 }
 0xd22   :  { %878 = vmatprep.subr.bf16.mxu1 %v2596_v37 }
 0xd25   :  { %879 = vmatpush1.bf16.msra.mxu1 %v2599_v2 }
 0xd26   :  { %880 = vmatprep.subr.bf16.mxu1 %v2602_v3 }
 0xd29   :  { %881 = vmatpush1.bf16.msra.mxu1 %v2605_v4 }
 0xd2a   :  { %882 = vmatprep.subr.bf16.mxu1 %v2608_v5 }
 0xd2d   :  { %883 = vmatpush1.bf16.msra.mxu1 %v2611_v6 }
 0xd2e   :  { %884 = vmatprep.subr.bf16.mxu1 %v2687_v54 }
 0xd31   :  { %885 = vmatpush1.bf16.msra.mxu1 %v2690_v58 }
 0xd32   :  { %886 = vmatprep.subr.bf16.mxu1 %v2693_v59 }
 0xd35   :  { %887 = vmatpush1.bf16.msra.mxu1 %v2696_v35 }
 0xd36   :  { %888 = vmatprep.subr.bf16.mxu1 %v2699_v53 }
 0xd39   :  { %889 = vmatpush2.bf16.msra.mxu1 %v2702_v48 }
 0xd3a   :  { %890 = vmatprep.subr.bf16.mxu1 %v2705_v39 }
 0xd3d   :  { %891 = vmatpush2.bf16.msra.mxu1 %v2708_v47 }
 0xd3e   :  { %892 = vmatprep.subr.bf16.mxu1 %v2711_v50 }
 0xd41   :  { %893 = vmatpush2.bf16.msra.mxu1 %v2714_v41 }
 0xd42   :  { %894 = vmatprep.subr.bf16.mxu1 %v2717_v49 }
 0xd45   :  { %895 = vmatpush2.bf16.msra.mxu1 %v2720_v45 }
 0xd46   :  { %896 = vmatprep.subr.bf16.mxu1 %v2723_v43 }
 0xd49   :  { %897 = vmatpush2.bf16.msra.mxu1 %v2726_v46 }
 0xd4a   :  { %898 = vmatprep.subr.bf16.mxu1 %v2729_v40 }
 0xd4d   :  { %899 = vmatpush2.bf16.msra.mxu1 %v2732_v12 }
 0xd4e   :  { %900 = vmatprep.subr.bf16.mxu1 %v2735_v15 }
 0xd51   :  { %901 = vmatpush2.bf16.msra.mxu1 %v2738_v16 }
 0xd52   :  { %902 = vmatprep.subr.bf16.mxu1 %v2741_v17 }
 0xd55   :  { %903 = vmatpush2.bf16.msra.mxu1 %v2744_v18 }
 0xd56   :  { %1018 = vmatprep.subr.bf16.mxu1 %v2537_v1 }
 0xdd8   :  { %v760_v20 = vpop.f32.mrf.mxu1 }
 0xdd9   :  { %v761_v21 = vadd.f32 %v760_v20, %v724_v19 }
 0xdda   :  { %v762_v23 = vpop.f32.mrf.mxu1 }
 0xddb   :  { %v763_v24 = vadd.f32 %v762_v23, %v725_v22  ;;  %v767_v26 = vmul.f32 %v761_v21, %v2667_v42 }
 0xddc   :  { %v764_v25 = vpop.f32.mrf.mxu1 }
 0xddd   :  { %v768_v27 = vmul.f32 %v763_v24, %v2670_v0 }
 0xdde   :  { %v765_v28 = vpop.f32.mrf.mxu1 }
 0xddf   :  { %v769_v29 = vadd.f32 %v768_v27, %v767_v26 }
 0xde1   :  { %770 = vadd.xlane.f32.xlu1 %v769_v29 }
 0xe6a   :  { %v771_v30 = vpop.xlane.xlu1 %770 }
 0xe6b   :  { %v772_v31 = vadd.f32 1e-12, %v771_v30 }
 0xe6d   :  { %1842 = vrcp.f32 %v772_v31 }
 0xe7a   :  { %v1843_v32 = vpop.eup %1842 }
 0xe7b   :  { %v774_v10 = vmul.f32 %v1843_v32, %v2661_v62 }
 0xe7d   :  { %v775_v11 = vmul.f32 %v774_v10, %v2667_v42  ;;  %v776_v51 = vmul.f32 %v774_v10, %v2670_v0  ;;  %v779_v52 = vmul.f32 %v774_v10, %v761_v21  ;;  %v780_v61 = vmul.f32 %v774_v10, %v763_v24 }
 0xe7f   :  { %v2758_v63 = vadd.f32 %v775_v11, %v2645_v33  ;;  %v2761_v34 = vadd.f32 %v776_v51, %v2648_v7  ;;  %v2764_v13 = vsub.f32 %v2651_v8, %v779_v52  ;;  %v2767_v14 = vsub.f32 %v2654_v9, %v780_v61 }
 0xe80   :  { %v788_v33 = vadd.f32 1e-12, %v2661_v62 }
 0xe81   :  { %v783_v38 = vmul.f32 %v2764_v13, %v2764_v13  ;;  %v784_v19 = vmul.f32 %v2767_v14, %v2767_v14 }
 0xe82   :  { %1844 = vrcp.f32 %v788_v33 }
 0xe83   :  { %v785_v20 = vadd.f32 %v784_v19, %v783_v38 }
 0xe85   :  { %786 = vadd.xlane.f32.xlu0 %v785_v20 }
 0xe8f   :  { %v1845_v21 = vpop.eup %1844 }
 0xf0e   :  { %v2774_v7 = vpop.xlane.xlu0 %786 }
 0xf0f   :  { %v790_v8 = vmul.f32 %v1845_v21, %v2774_v7 }
 0xf11   :  { %v791_v22 = vmul.f32 %v790_v8, %v2667_v42  ;;  %v792_v9 = vmul.f32 %v790_v8, %v2670_v0 }
 0xf13   :  { %v2780_v23 = vadd.f32 %v791_v22, %v2764_v13  ;;  %v2783_v24 = vadd.f32 %v792_v9, %v2767_v14 }
 0xf15   :  { %v796_v25 = vpack.c.bf16 %v2783_v24, %v2783_v24  ;;  %v795_v62 = vpack.c.bf16 %v2780_v23, %v2780_v23  ;;  %v797_v42 = vmul.f32 %v2780_v23, %v2192_v36  ;;  %v798_v27 = vmul.f32 %v2783_v24, %v2192_v36 }
 0xf17   :  { %831 = vmatprep.mubr.bf16.mxu0 %v796_v25 }
 0xf18   :  { %832 = vmatmul.mubr.bf16.vlgmr.msra.gmra.mxu0 %v795_v62 }
 0xf19   :  { %946 = vmatpush1.bf16.msra.mxu0 %v2581_v55 }
 0xf1a   :  { %947 = vmatprep.subr.bf16.mxu0 %v2584_v44 }
 0xf1d   :  { %948 = vmatpush1.bf16.msra.mxu0 %v2587_v56 }
 0xf1e   :  { %949 = vmatprep.subr.bf16.mxu0 %v2590_v57 }
 0xf21   :  { %950 = vmatpush1.bf16.msra.mxu0 %v2593_v60 }
 0xf22   :  { %951 = vmatprep.subr.bf16.mxu0 %v2596_v37 }
 0xf25   :  { %952 = vmatpush1.bf16.msra.mxu0 %v2599_v2 }
 0xf26   :  { %953 = vmatprep.subr.bf16.mxu0 %v2602_v3 }
 0xf29   :  { %954 = vmatpush1.bf16.msra.mxu0 %v2605_v4 }
 0xf2a   :  { %955 = vmatprep.subr.bf16.mxu0 %v2608_v5 }
 0xf2d   :  { %956 = vmatpush1.bf16.msra.mxu0 %v2611_v6 }
 0xf2e   :  { %957 = vmatprep.subr.bf16.mxu0 %v2687_v54 }
 0xf31   :  { %958 = vmatpush1.bf16.msra.mxu0 %v2690_v58 }
 0xf32   :  { %959 = vmatprep.subr.bf16.mxu0 %v2693_v59 }
 0xf35   :  { %960 = vmatpush1.bf16.msra.mxu0 %v2696_v35 }
 0xf36   :  { %961 = vmatprep.subr.bf16.mxu0 %v2699_v53 }
 0xf39   :  { %962 = vmatpush2.bf16.msra.mxu0 %v2702_v48 }
 0xf3a   :  { %963 = vmatprep.subr.bf16.mxu0 %v2705_v39 }
 0xf3d   :  { %964 = vmatpush2.bf16.msra.mxu0 %v2708_v47 }
 0xf3e   :  { %965 = vmatprep.subr.bf16.mxu0 %v2711_v50 }
 0xf41   :  { %966 = vmatpush2.bf16.msra.mxu0 %v2714_v41 }
 0xf42   :  { %967 = vmatprep.subr.bf16.mxu0 %v2717_v49 }
 0xf45   :  { %968 = vmatpush2.bf16.msra.mxu0 %v2720_v45 }
 0xf46   :  { %969 = vmatprep.subr.bf16.mxu0 %v2723_v43 }
 0xf49   :  { %970 = vmatpush2.bf16.msra.mxu0 %v2726_v46 }
 0xf4a   :  { %971 = vmatprep.subr.bf16.mxu0 %v2729_v40 }
 0xf4d   :  { %972 = vmatpush2.bf16.msra.mxu0 %v2732_v12 }
 0xf4e   :  { %973 = vmatprep.subr.bf16.mxu0 %v2735_v15 }
 0xf51   :  { %974 = vmatpush2.bf16.msra.mxu0 %v2738_v16 }
 0xf52   :  { %975 = vmatprep.subr.bf16.mxu0 %v2741_v17 }
 0xf55   :  { %976 = vmatpush2.bf16.msra.mxu0 %v2744_v18 }
 0xf56   :  { %1091 = vmatprep.subr.bf16.mxu0 %v2537_v1 }
 0xfd8   :  { %v833_v0 = vpop.f32.mrf.mxu0 }
 0xfd9   :  { %v834_v26 = vadd.f32 %v833_v0, %v797_v42 }
 0xfda   :  { %v835_v28 = vpop.f32.mrf.mxu0 }
 0xfdb   :  { %v836_v29 = vadd.f32 %v835_v28, %v798_v27  ;;  %v840_v31 = vmul.f32 %v834_v26, %v2780_v23 }
 0xfdc   :  { %v837_v30 = vpop.f32.mrf.mxu0 }
 0xfdd   :  { %v841_v32 = vmul.f32 %v836_v29, %v2783_v24 }
 0xfde   :  { %v838_v10 = vpop.f32.mrf.mxu0 }
 0xfdf   :  { %v842_v11 = vadd.f32 %v841_v32, %v840_v31 }
 0xfe1   :  { %843 = vadd.xlane.f32.xlu1 %v842_v11 }
0x106a   :  { %v844_v51 = vpop.xlane.xlu1 %843 }
0x106b   :  { %v845_v52 = vadd.f32 1e-12, %v844_v51 }
0x106d   :  { %1846 = vrcp.f32 %v845_v52 }
0x107a   :  { %v1847_v61 = vpop.eup %1846 }
0x107b   :  { %v847_v38 = vmul.f32 %v1847_v61, %v2774_v7 }
0x107d   :  { %v848_v19 = vmul.f32 %v847_v38, %v2780_v23  ;;  %v849_v20 = vmul.f32 %v847_v38, %v2783_v24  ;;  %v852_v33 = vmul.f32 %v847_v38, %v834_v26  ;;  %v853_v21 = vmul.f32 %v847_v38, %v836_v29 }
0x107f   :  { %v2831_v8 = vadd.f32 %v848_v19, %v2758_v63  ;;  %v2834_v22 = vadd.f32 %v849_v20, %v2761_v34  ;;  %v2837_v9 = vsub.f32 %v2764_v13, %v852_v33  ;;  %v2840_v25 = vsub.f32 %v2767_v14, %v853_v21 }
0x1080   :  { %v861_v63 = vadd.f32 1e-12, %v2774_v7 }
0x1081   :  { %v856_v62 = vmul.f32 %v2837_v9, %v2837_v9  ;;  %v857_v42 = vmul.f32 %v2840_v25, %v2840_v25 }
0x1082   :  { %1848 = vrcp.f32 %v861_v63 }
0x1083   :  { %v858_v0 = vadd.f32 %v857_v42, %v856_v62 }
0x1085   :  { %859 = vadd.xlane.f32.xlu0 %v858_v0 }
0x108f   :  { %v1849_v26 = vpop.eup %1848 }
0x110e   :  { %v2847_v34 = vpop.xlane.xlu0 %859 }
0x110f   :  { %v863_v13 = vmul.f32 %v1849_v26, %v2847_v34 }
0x1111   :  { %v864_v27 = vmul.f32 %v863_v13, %v2780_v23  ;;  %v865_v14 = vmul.f32 %v863_v13, %v2783_v24 }
0x1113   :  { %v2853_v28 = vadd.f32 %v864_v27, %v2837_v9  ;;  %v2856_v29 = vadd.f32 %v865_v14, %v2840_v25 }
0x1115   :  { %v869_v30 = vpack.c.bf16 %v2856_v29, %v2856_v29  ;;  %v868_v7 = vpack.c.bf16 %v2853_v28, %v2853_v28  ;;  %v870_v23 = vmul.f32 %v2853_v28, %v2192_v36  ;;  %v871_v32 = vmul.f32 %v2856_v29, %v2192_v36 }
0x1117   :  { %904 = vmatprep.mubr.bf16.mxu1 %v869_v30 }
0x1118   :  { %905 = vmatmul.mubr.bf16.vlgmr.msra.gmra.mxu1 %v868_v7 }
0x1119   :  { %1019 = vmatpush1.bf16.msra.mxu1 %v2581_v55 }
0x111a   :  { %1020 = vmatprep.subr.bf16.mxu1 %v2584_v44 }
0x111d   :  { %1021 = vmatpush1.bf16.msra.mxu1 %v2587_v56 }
0x111e   :  { %1022 = vmatprep.subr.bf16.mxu1 %v2590_v57 }
0x1121   :  { %1023 = vmatpush1.bf16.msra.mxu1 %v2593_v60 }
0x1122   :  { %1024 = vmatprep.subr.bf16.mxu1 %v2596_v37 }
0x1125   :  { %1025 = vmatpush1.bf16.msra.mxu1 %v2599_v2 }
0x1126   :  { %1026 = vmatprep.subr.bf16.mxu1 %v2602_v3 }
0x1129   :  { %1027 = vmatpush1.bf16.msra.mxu1 %v2605_v4 }
0x112a   :  { %1028 = vmatprep.subr.bf16.mxu1 %v2608_v5 }
0x112d   :  { %1029 = vmatpush1.bf16.msra.mxu1 %v2611_v6 }
0x112e   :  { %1030 = vmatprep.subr.bf16.mxu1 %v2687_v54 }
0x1131   :  { %1031 = vmatpush1.bf16.msra.mxu1 %v2690_v58 }
0x1132   :  { %1032 = vmatprep.subr.bf16.mxu1 %v2693_v59 }
0x1135   :  { %1033 = vmatpush1.bf16.msra.mxu1 %v2696_v35 }
0x1136   :  { %1034 = vmatprep.subr.bf16.mxu1 %v2699_v53 }
0x1139   :  { %1035 = vmatpush2.bf16.msra.mxu1 %v2702_v48 }
0x113a   :  { %1036 = vmatprep.subr.bf16.mxu1 %v2705_v39 }
0x113d   :  { %1037 = vmatpush2.bf16.msra.mxu1 %v2708_v47 }
0x113e   :  { %1038 = vmatprep.subr.bf16.mxu1 %v2711_v50 }
0x1141   :  { %1039 = vmatpush2.bf16.msra.mxu1 %v2714_v41 }
0x1142   :  { %1040 = vmatprep.subr.bf16.mxu1 %v2717_v49 }
0x1145   :  { %1041 = vmatpush2.bf16.msra.mxu1 %v2720_v45 }
0x1146   :  { %1042 = vmatprep.subr.bf16.mxu1 %v2723_v43 }
0x1149   :  { %1043 = vmatpush2.bf16.msra.mxu1 %v2726_v46 }
0x114a   :  { %1044 = vmatprep.subr.bf16.mxu1 %v2729_v40 }
0x114d   :  { %1045 = vmatpush2.bf16.msra.mxu1 %v2732_v12 }
0x114e   :  { %1046 = vmatprep.subr.bf16.mxu1 %v2735_v15 }
0x1151   :  { %1047 = vmatpush2.bf16.msra.mxu1 %v2738_v16 }
0x1152   :  { %1048 = vmatprep.subr.bf16.mxu1 %v2741_v17 }
0x1155   :  { %1049 = vmatpush2.bf16.msra.mxu1 %v2744_v18 }
0x1156   :  { %1164 = vmatprep.subr.bf16.mxu1 %v2537_v1 }
0x11d8   :  { %v906_v24 = vpop.f32.mrf.mxu1 }
0x11d9   :  { %v907_v31 = vadd.f32 %v906_v24, %v870_v23 }
0x11da   :  { %v908_v10 = vpop.f32.mrf.mxu1 }
0x11db   :  { %v909_v11 = vadd.f32 %v908_v10, %v871_v32  ;;  %v913_v52 = vmul.f32 %v907_v31, %v2853_v28 }
0x11dc   :  { %v910_v51 = vpop.f32.mrf.mxu1 }
0x11dd   :  { %v914_v61 = vmul.f32 %v909_v11, %v2856_v29 }
0x11de   :  { %v911_v38 = vpop.f32.mrf.mxu1 }
0x11df   :  { %v915_v19 = vadd.f32 %v914_v61, %v913_v52 }
0x11e1   :  { %916 = vadd.xlane.f32.xlu1 %v915_v19 }
0x126a   :  { %v917_v20 = vpop.xlane.xlu1 %916 }
0x126b   :  { %v918_v33 = vadd.f32 1e-12, %v917_v20 }
0x126d   :  { %1850 = vrcp.f32 %v918_v33 }
0x127a   :  { %v1851_v21 = vpop.eup %1850 }
0x127b   :  { %v920_v62 = vmul.f32 %v1851_v21, %v2847_v34 }
0x127d   :  { %v921_v42 = vmul.f32 %v920_v62, %v2853_v28  ;;  %v922_v0 = vmul.f32 %v920_v62, %v2856_v29  ;;  %v925_v63 = vmul.f32 %v920_v62, %v907_v31  ;;  %v926_v26 = vmul.f32 %v920_v62, %v909_v11 }
0x127f   :  { %v2904_v13 = vadd.f32 %v921_v42, %v2831_v8  ;;  %v2907_v27 = vadd.f32 %v922_v0, %v2834_v22  ;;  %v2910_v14 = vsub.f32 %v2837_v9, %v925_v63  ;;  %v2913_v30 = vsub.f32 %v2840_v25, %v926_v26 }
0x1280   :  { %v934_v8 = vadd.f32 1e-12, %v2847_v34 }
0x1281   :  { %v929_v7 = vmul.f32 %v2910_v14, %v2910_v14  ;;  %v930_v23 = vmul.f32 %v2913_v30, %v2913_v30 }
0x1282   :  { %1852 = vrcp.f32 %v934_v8 }
0x1283   :  { %v931_v24 = vadd.f32 %v930_v23, %v929_v7 }
0x1285   :  { %932 = vadd.xlane.f32.xlu0 %v931_v24 }
0x128f   :  { %v1853_v31 = vpop.eup %1852 }
0x130e   :  { %v2920_v22 = vpop.xlane.xlu0 %932 }
0x130f   :  { %v936_v9 = vmul.f32 %v1853_v31, %v2920_v22 }
0x1311   :  { %v937_v32 = vmul.f32 %v936_v9, %v2853_v28  ;;  %v938_v25 = vmul.f32 %v936_v9, %v2856_v29 }
0x1313   :  { %v2926_v10 = vadd.f32 %v937_v32, %v2910_v14  ;;  %v2929_v11 = vadd.f32 %v938_v25, %v2913_v30 }
0x1315   :  { %v942_v51 = vpack.c.bf16 %v2929_v11, %v2929_v11  ;;  %v941_v34 = vpack.c.bf16 %v2926_v10, %v2926_v10  ;;  %v943_v28 = vmul.f32 %v2926_v10, %v2192_v36  ;;  %v944_v61 = vmul.f32 %v2929_v11, %v2192_v36 }
0x1317   :  { %977 = vmatprep.mubr.bf16.mxu0 %v942_v51 }
0x1318   :  { %978 = vmatmul.mubr.bf16.vlgmr.msra.gmra.mxu0 %v941_v34 }
0x1319   :  { %1092 = vmatpush1.bf16.msra.mxu0 %v2581_v55 }
0x131a   :  { %1093 = vmatprep.subr.bf16.mxu0 %v2584_v44 }
0x131d   :  { %1094 = vmatpush1.bf16.msra.mxu0 %v2587_v56 }
0x131e   :  { %1095 = vmatprep.subr.bf16.mxu0 %v2590_v57 }
0x1321   :  { %1096 = vmatpush1.bf16.msra.mxu0 %v2593_v60 }
0x1322   :  { %1097 = vmatprep.subr.bf16.mxu0 %v2596_v37 }
0x1325   :  { %1098 = vmatpush1.bf16.msra.mxu0 %v2599_v2 }
0x1326   :  { %1099 = vmatprep.subr.bf16.mxu0 %v2602_v3 }
0x1329   :  { %1100 = vmatpush1.bf16.msra.mxu0 %v2605_v4 }
0x132a   :  { %1101 = vmatprep.subr.bf16.mxu0 %v2608_v5 }
0x132d   :  { %1102 = vmatpush1.bf16.msra.mxu0 %v2611_v6 }
0x132e   :  { %1103 = vmatprep.subr.bf16.mxu0 %v2687_v54 }
0x1331   :  { %1104 = vmatpush1.bf16.msra.mxu0 %v2690_v58 }
0x1332   :  { %1105 = vmatprep.subr.bf16.mxu0 %v2693_v59 }
0x1335   :  { %1106 = vmatpush1.bf16.msra.mxu0 %v2696_v35 }
0x1336   :  { %1107 = vmatprep.subr.bf16.mxu0 %v2699_v53 }
0x1339   :  { %1108 = vmatpush2.bf16.msra.mxu0 %v2702_v48 }
0x133a   :  { %1109 = vmatprep.subr.bf16.mxu0 %v2705_v39 }
0x133d   :  { %1110 = vmatpush2.bf16.msra.mxu0 %v2708_v47 }
0x133e   :  { %1111 = vmatprep.subr.bf16.mxu0 %v2711_v50 }
0x1341   :  { %1112 = vmatpush2.bf16.msra.mxu0 %v2714_v41 }
0x1342   :  { %1113 = vmatprep.subr.bf16.mxu0 %v2717_v49 }
0x1345   :  { %1114 = vmatpush2.bf16.msra.mxu0 %v2720_v45 }
0x1346   :  { %1115 = vmatprep.subr.bf16.mxu0 %v2723_v43 }
0x1349   :  { %1116 = vmatpush2.bf16.msra.mxu0 %v2726_v46 }
0x134a   :  { %1117 = vmatprep.subr.bf16.mxu0 %v2729_v40 }
0x134d   :  { %1118 = vmatpush2.bf16.msra.mxu0 %v2732_v12 }
0x134e   :  { %1119 = vmatprep.subr.bf16.mxu0 %v2735_v15 }
0x1351   :  { %1120 = vmatpush2.bf16.msra.mxu0 %v2738_v16 }
0x1352   :  { %1121 = vmatprep.subr.bf16.mxu0 %v2741_v17 }
0x1355   :  { %1122 = vmatpush2.bf16.msra.mxu0 %v2744_v18 }
0x1356   :  { %1237 = vmatprep.subr.bf16.mxu0 %v2537_v1 }
0x13d8   :  { %v979_v29 = vpop.f32.mrf.mxu0 }
0x13d9   :  { %v980_v52 = vadd.f32 %v979_v29, %v943_v28 }
0x13da   :  { %v981_v38 = vpop.f32.mrf.mxu0 }
0x13db   :  { %v982_v19 = vadd.f32 %v981_v38, %v944_v61  ;;  %v986_v33 = vmul.f32 %v980_v52, %v2926_v10 }
0x13dc   :  { %v983_v20 = vpop.f32.mrf.mxu0 }
0x13dd   :  { %v987_v21 = vmul.f32 %v982_v19, %v2929_v11 }
0x13de   :  { %v984_v62 = vpop.f32.mrf.mxu0 }
0x13df   :  { %v988_v42 = vadd.f32 %v987_v21, %v986_v33 }
0x13e1   :  { %989 = vadd.xlane.f32.xlu1 %v988_v42 }
0x146a   :  { %v990_v0 = vpop.xlane.xlu1 %989 }
0x146b   :  { %v991_v63 = vadd.f32 1e-12, %v990_v0 }
0x146d   :  { %1854 = vrcp.f32 %v991_v63 }
0x147a   :  { %v1855_v26 = vpop.eup %1854 }
0x147b   :  { %v993_v7 = vmul.f32 %v1855_v26, %v2920_v22 }
0x147d   :  { %v994_v23 = vmul.f32 %v993_v7, %v2926_v10  ;;  %v995_v24 = vmul.f32 %v993_v7, %v2929_v11  ;;  %v998_v8 = vmul.f32 %v993_v7, %v980_v52  ;;  %v999_v31 = vmul.f32 %v993_v7, %v982_v19 }
0x147f   :  { %v2977_v9 = vadd.f32 %v994_v23, %v2904_v13  ;;  %v2980_v32 = vadd.f32 %v995_v24, %v2907_v27  ;;  %v2983_v25 = vsub.f32 %v2910_v14, %v998_v8  ;;  %v2986_v51 = vsub.f32 %v2913_v30, %v999_v31 }
0x1480   :  { %v1007_v13 = vadd.f32 1e-12, %v2920_v22 }
0x1481   :  { %v1002_v34 = vmul.f32 %v2983_v25, %v2983_v25  ;;  %v1003_v28 = vmul.f32 %v2986_v51, %v2986_v51 }
0x1482   :  { %1856 = vrcp.f32 %v1007_v13 }
0x1483   :  { %v1004_v29 = vadd.f32 %v1003_v28, %v1002_v34 }
0x1485   :  { %1005 = vadd.xlane.f32.xlu0 %v1004_v29 }
0x148f   :  { %v1857_v52 = vpop.eup %1856 }
0x150e   :  { %v2993_v27 = vpop.xlane.xlu0 %1005 }
0x150f   :  { %v1009_v14 = vmul.f32 %v1857_v52, %v2993_v27 }
0x1511   :  { %v1010_v61 = vmul.f32 %v1009_v14, %v2926_v10  ;;  %v1011_v30 = vmul.f32 %v1009_v14, %v2929_v11 }
0x1513   :  { %v2999_v38 = vadd.f32 %v1010_v61, %v2983_v25  ;;  %v3002_v19 = vadd.f32 %v1011_v30, %v2986_v51 }
0x1515   :  { %v1015_v20 = vpack.c.bf16 %v3002_v19, %v3002_v19  ;;  %v1014_v22 = vpack.c.bf16 %v2999_v38, %v2999_v38  ;;  %v1016_v10 = vmul.f32 %v2999_v38, %v2192_v36  ;;  %v1017_v21 = vmul.f32 %v3002_v19, %v2192_v36 }
0x1517   :  { %1050 = vmatprep.mubr.bf16.mxu1 %v1015_v20 }
0x1518   :  { %1051 = vmatmul.mubr.bf16.vlgmr.msra.gmra.mxu1 %v1014_v22 }
0x1519   :  { %1165 = vmatpush1.bf16.msra.mxu1 %v2581_v55 }
0x151a   :  { %1166 = vmatprep.subr.bf16.mxu1 %v2584_v44 }
0x151d   :  { %1167 = vmatpush1.bf16.msra.mxu1 %v2587_v56 }
0x151e   :  { %1168 = vmatprep.subr.bf16.mxu1 %v2590_v57 }
0x1521   :  { %1169 = vmatpush1.bf16.msra.mxu1 %v2593_v60 }
0x1522   :  { %1170 = vmatprep.subr.bf16.mxu1 %v2596_v37 }
0x1525   :  { %1171 = vmatpush1.bf16.msra.mxu1 %v2599_v2 }
0x1526   :  { %1172 = vmatprep.subr.bf16.mxu1 %v2602_v3 }
0x1529   :  { %1173 = vmatpush1.bf16.msra.mxu1 %v2605_v4 }
0x152a   :  { %1174 = vmatprep.subr.bf16.mxu1 %v2608_v5 }
0x152d   :  { %1175 = vmatpush1.bf16.msra.mxu1 %v2611_v6 }
0x152e   :  { %1176 = vmatprep.subr.bf16.mxu1 %v2687_v54 }
0x1531   :  { %1177 = vmatpush1.bf16.msra.mxu1 %v2690_v58 }
0x1532   :  { %1178 = vmatprep.subr.bf16.mxu1 %v2693_v59 }
0x1535   :  { %1179 = vmatpush1.bf16.msra.mxu1 %v2696_v35 }
0x1536   :  { %1180 = vmatprep.subr.bf16.mxu1 %v2699_v53 }
0x1539   :  { %1181 = vmatpush2.bf16.msra.mxu1 %v2702_v48 }
0x153a   :  { %1182 = vmatprep.subr.bf16.mxu1 %v2705_v39 }
0x153d   :  { %1183 = vmatpush2.bf16.msra.mxu1 %v2708_v47 }
0x153e   :  { %1184 = vmatprep.subr.bf16.mxu1 %v2711_v50 }
0x1541   :  { %1185 = vmatpush2.bf16.msra.mxu1 %v2714_v41 }
0x1542   :  { %1186 = vmatprep.subr.bf16.mxu1 %v2717_v49 }
0x1545   :  { %1187 = vmatpush2.bf16.msra.mxu1 %v2720_v45 }
0x1546   :  { %1188 = vmatprep.subr.bf16.mxu1 %v2723_v43 }
0x1549   :  { %1189 = vmatpush2.bf16.msra.mxu1 %v2726_v46 }
0x154a   :  { %1190 = vmatprep.subr.bf16.mxu1 %v2729_v40 }
0x154d   :  { %1191 = vmatpush2.bf16.msra.mxu1 %v2732_v12 }
0x154e   :  { %1192 = vmatprep.subr.bf16.mxu1 %v2735_v15 }
0x1551   :  { %1193 = vmatpush2.bf16.msra.mxu1 %v2738_v16 }
0x1552   :  { %1194 = vmatprep.subr.bf16.mxu1 %v2741_v17 }
0x1555   :  { %1195 = vmatpush2.bf16.msra.mxu1 %v2744_v18 }
0x1556   :  { %1310 = vmatprep.subr.bf16.mxu1 %v2537_v1 }
0x15d8   :  { %v1052_v11 = vpop.f32.mrf.mxu1 }
0x15d9   :  { %v1053_v33 = vadd.f32 %v1052_v11, %v1016_v10 }
0x15da   :  { %v1054_v62 = vpop.f32.mrf.mxu1 }
0x15db   :  { %v1055_v42 = vadd.f32 %v1054_v62, %v1017_v21  ;;  %v1059_v63 = vmul.f32 %v1053_v33, %v2999_v38 }
0x15dc   :  { %v1056_v0 = vpop.f32.mrf.mxu1 }
0x15dd   :  { %v1060_v26 = vmul.f32 %v1055_v42, %v3002_v19 }
0x15de   :  { %v1057_v7 = vpop.f32.mrf.mxu1 }
0x15df   :  { %v1061_v23 = vadd.f32 %v1060_v26, %v1059_v63 }
0x15e1   :  { %1062 = vadd.xlane.f32.xlu1 %v1061_v23 }
0x166a   :  { %v1063_v24 = vpop.xlane.xlu1 %1062 }
0x166b   :  { %v1064_v1 = vadd.f32 1e-12, %v1063_v24 }
0x166d   :  { %1858 = vrcp.f32 %v1064_v1 }
0x167a   :  { %v1859_v8 = vpop.eup %1858 }
0x167b   :  { %v1066_v31 = vmul.f32 %v1859_v8, %v2993_v27 }
0x167d   :  { %v1067_v34 = vmul.f32 %v1066_v31, %v2999_v38  ;;  %v1068_v28 = vmul.f32 %v1066_v31, %v3002_v19  ;;  %v1071_v29 = vmul.f32 %v1066_v31, %v1053_v33  ;;  %v1072_v13 = vmul.f32 %v1066_v31, %v1055_v42 }
0x167f   :  { %v3050_v52 = vadd.f32 %v1067_v34, %v2977_v9  ;;  %v3053_v14 = vadd.f32 %v1068_v28, %v2980_v32  ;;  %v3056_v61 = vsub.f32 %v2983_v25, %v1071_v29  ;;  %v3059_v30 = vsub.f32 %v2986_v51, %v1072_v13 }
0x1680   :  { %v1080_v9 = vadd.f32 1e-12, %v2993_v27 }
0x1681   :  { %v1075_v20 = vmul.f32 %v3056_v61, %v3056_v61  ;;  %v1076_v22 = vmul.f32 %v3059_v30, %v3059_v30 }
0x1682   :  { %1860 = vrcp.f32 %v1080_v9 }
0x1683   :  { %v1077_v10 = vadd.f32 %v1076_v22, %v1075_v20 }
0x1685   :  { %1078 = vadd.xlane.f32.xlu0 %v1077_v10 }
0x168f   :  { %v1861_v11 = vpop.eup %1860 }
0x170e   :  { %v3066_v32 = vpop.xlane.xlu0 %1078 }
0x170f   :  { %v1082_v25 = vmul.f32 %v1861_v11, %v3066_v32 }
0x1711   :  { %v1083_v33 = vmul.f32 %v1082_v25, %v2999_v38  ;;  %v1084_v51 = vmul.f32 %v1082_v25, %v3002_v19 }
0x1713   :  { %v3072_v21 = vadd.f32 %v1083_v33, %v3056_v61  ;;  %v3075_v62 = vadd.f32 %v1084_v51, %v3059_v30  ;;  %v3156_v33 = vld [vmem:[#allocation3 + $0x70] ss:$8 sps:$4 sm:$0xff]   ;;  %v3159_v51 = vld [vmem:[#allocation3 + $0x64] ss:$8 sps:$4 sm:$0xff]  }
0x1715   :  { %v1088_v42 = vpack.c.bf16 %v3075_v62, %v3075_v62  ;;  %v1087_v27 = vpack.c.bf16 %v3072_v21, %v3072_v21 }
0x1717   :  { %1123 = vmatprep.mubr.bf16.mxu0 %v1088_v42  ;;  %v3168_v42 = vld [vmem:[#allocation3 + $0x50] ss:$8 sps:$4 sm:$0xff]  }
0x1718   :  { %1124 = vmatmul.mubr.bf16.vlgmr.msra.gmra.mxu0 %v1087_v27  ;;  %v3171_v27 = vld [vmem:[#allocation3 + $0x44] ss:$8 sps:$4 sm:$0xff]  }
0x1719   :  { %1238 = vmatpush1.bf16.msra.mxu0 %v2581_v55  ;;  %v3112_v55 = vld [vmem:[#allocation3 + $0x74] ss:$8 sps:$4 sm:$0xff]  }
0x171a   :  { %1239 = vmatprep.subr.bf16.mxu0 %v2584_v44  ;;  %v1089_v44 = vmul.f32 %v3072_v21, %v2192_v36 }
0x171d   :  { %1240 = vmatpush1.bf16.msra.mxu0 %v2587_v56 }
0x171e   :  { %1241 = vmatprep.subr.bf16.mxu0 %v2590_v57 }
0x1721   :  { %1242 = vmatpush1.bf16.msra.mxu0 %v2593_v60  ;;  %v1090_v60 = vmul.f32 %v3075_v62, %v2192_v36 }
0x1722   :  { %1243 = vmatprep.subr.bf16.mxu0 %v2596_v37 }
0x1725   :  { %1244 = vmatpush1.bf16.msra.mxu0 %v2599_v2 }
0x1726   :  { %1245 = vmatprep.subr.bf16.mxu0 %v2602_v3 }
0x1729   :  { %1246 = vmatpush1.bf16.msra.mxu0 %v2605_v4 }
0x172a   :  { %1247 = vmatprep.subr.bf16.mxu0 %v2608_v5 }
0x172d   :  { %1248 = vmatpush1.bf16.msra.mxu0 %v2611_v6 }
0x172e   :  { %1249 = vmatprep.subr.bf16.mxu0 %v2687_v54 }
0x1731   :  { %1250 = vmatpush1.bf16.msra.mxu0 %v2690_v58 }
0x1732   :  { %1251 = vmatprep.subr.bf16.mxu0 %v2693_v59 }
0x1735   :  { %1252 = vmatpush1.bf16.msra.mxu0 %v2696_v35 }
0x1736   :  { %1253 = vmatprep.subr.bf16.mxu0 %v2699_v53 }
0x1739   :  { %1254 = vmatpush2.bf16.msra.mxu0 %v2702_v48 }
0x173a   :  { %1255 = vmatprep.subr.bf16.mxu0 %v2705_v39 }
0x173d   :  { %1256 = vmatpush2.bf16.msra.mxu0 %v2708_v47 }
0x173e   :  { %1257 = vmatprep.subr.bf16.mxu0 %v2711_v50 }
0x1741   :  { %1258 = vmatpush2.bf16.msra.mxu0 %v2714_v41 }
0x1742   :  { %1259 = vmatprep.subr.bf16.mxu0 %v2717_v49 }
0x1745   :  { %1260 = vmatpush2.bf16.msra.mxu0 %v2720_v45 }
0x1746   :  { %1261 = vmatprep.subr.bf16.mxu0 %v2723_v43 }
0x1749   :  { %1262 = vmatpush2.bf16.msra.mxu0 %v2726_v46 }
0x174a   :  { %1263 = vmatprep.subr.bf16.mxu0 %v2729_v40 }
0x174d   :  { %1264 = vmatpush2.bf16.msra.mxu0 %v2732_v12 }
0x174e   :  { %1265 = vmatprep.subr.bf16.mxu0 %v2735_v15 }
0x1751   :  { %1266 = vmatpush2.bf16.msra.mxu0 %v2738_v16 }
0x1752   :  { %1267 = vmatprep.subr.bf16.mxu0 %v2741_v17 }
0x1755   :  { %1268 = vmatpush2.bf16.msra.mxu0 %v2744_v18 }
0x1756   :  { %1383 = vmatprep.subr.bf16.mxu0 %v3112_v55 }
0x17d8   :  { %v1125_v56 = vpop.f32.mrf.mxu0 }
0x17d9   :  { %v1126_v57 = vadd.f32 %v1125_v56, %v1089_v44  ;;  %v3174_v44 = vld [vmem:[#allocation3 + $0x40] ss:$8 sps:$4 sm:$0xff]   ;;  %v3177_v56 = vld [vmem:[#allocation3 + $0x34] ss:$8 sps:$4 sm:$0xff]  }
0x17da   :  { %v1127_v37 = vpop.f32.mrf.mxu0 }
0x17db   :  { %v1128_v2 = vadd.f32 %v1127_v37, %v1090_v60  ;;  %v1132_v4 = vmul.f32 %v1126_v57, %v3072_v21  ;;  %v3183_v60 = vld [vmem:[#allocation3 + $0x24] ss:$8 sps:$4 sm:$0xff]   ;;  %v3186_v37 = vld [vmem:[#allocation3 + $0x20] ss:$8 sps:$4 sm:$0xff]  }
0x17dc   :  { %v1129_v3 = vpop.f32.mrf.mxu0 }
0x17dd   :  { %v1133_v5 = vmul.f32 %v1128_v2, %v3075_v62 }
0x17de   :  { %v1130_v6 = vpop.f32.mrf.mxu0 }
0x17df   :  { %v1134_v38 = vadd.f32 %v1133_v5, %v1132_v4 }
0x17e1   :  { %1135 = vadd.xlane.f32.xlu1 %v1134_v38 }
0x186a   :  { %v1136_v19 = vpop.xlane.xlu1 %1135 }
0x186b   :  { %v1137_v0 = vadd.f32 1e-12, %v1136_v19 }
0x186d   :  { %1862 = vrcp.f32 %v1137_v0 }
0x187a   :  { %v1863_v63 = vpop.eup %1862 }
0x187b   :  { %v1139_v26 = vmul.f32 %v1863_v63, %v3066_v32 }
0x187d   :  { %v1140_v7 = vmul.f32 %v1139_v26, %v3072_v21  ;;  %v1141_v23 = vmul.f32 %v1139_v26, %v3075_v62  ;;  %v1144_v24 = vmul.f32 %v1139_v26, %v1126_v57  ;;  %v1145_v1 = vmul.f32 %v1139_v26, %v1128_v2  ;;  %v3180_v57 = vld [vmem:[#allocation3 + $0x30] ss:$8 sps:$4 sm:$0xff]  }
0x187f   :  { %v3125_v8 = vadd.f32 %v1140_v7, %v3050_v52  ;;  %v3128_v31 = vadd.f32 %v1141_v23, %v3053_v14  ;;  %v3131_v34 = vsub.f32 %v3056_v61, %v1144_v24  ;;  %v3134_v28 = vsub.f32 %v3059_v30, %v1145_v1 }
0x1880   :  { %v1153_v52 = vadd.f32 1e-12, %v3066_v32 }
0x1881   :  { %v1148_v29 = vmul.f32 %v3131_v34, %v3131_v34  ;;  %v1149_v13 = vmul.f32 %v3134_v28, %v3134_v28 }
0x1882   :  { %1864 = vrcp.f32 %v1153_v52  ;;  %v3277_v52 = vld [vmem:[#allocation3 + $0xf0] ss:$8 sps:$4 sm:$0xff]  }
0x1883   :  { %v1150_v20 = vadd.f32 %v1149_v13, %v1148_v29  ;;  %v3268_v29 = vld [vmem:[#allocation3 + $0x4] ss:$8 sps:$4 sm:$0xff]   ;;  %v3271_v13 = vld [vmem:[#allocation3] ss:$8 sps:$4 sm:$0xff]  }
0x1885   :  { %1151 = vadd.xlane.f32.xlu0 %v1150_v20  ;;  %v3274_v20 = vld [vmem:[#allocation3 + $0xf4] ss:$8 sps:$4 sm:$0xff]  }
0x188f   :  { %v1865_v22 = vpop.eup %1864 }
0x190e   :  { %v3141_v14 = vpop.xlane.xlu0 %1151 }
0x190f   :  { %v1155_v61 = vmul.f32 %v1865_v22, %v3141_v14  ;;  %v1226_v19 = vadd.f32 1e-12, %v3141_v14  ;;  %v3280_v22 = vld [vmem:[#allocation3 + $0xe4] ss:$8 sps:$4 sm:$0xff]  }
0x1911   :  { %v1156_v10 = vmul.f32 %v1155_v61, %v3072_v21  ;;  %v1157_v30 = vmul.f32 %v1155_v61, %v3075_v62  ;;  %v3162_v21 = vld [vmem:[#allocation3 + $0x60] ss:$8 sps:$4 sm:$0xff]   ;;  %v3165_v62 = vld [vmem:[#allocation3 + $0x54] ss:$8 sps:$4 sm:$0xff]  }
0x1912   :  { %v3286_v61 = vld [vmem:[#allocation3 + $0xd4] ss:$8 sps:$4 sm:$0xff]  }
0x1913   :  { %v3147_v9 = vadd.f32 %v1156_v10, %v3131_v34  ;;  %v3150_v11 = vadd.f32 %v1157_v30, %v3134_v28  ;;  %v3289_v10 = vld [vmem:[#allocation3 + $0xd0] ss:$8 sps:$4 sm:$0xff]   ;;  %v3292_v30 = vld [vmem:[#allocation3 + $0xc4] ss:$8 sps:$4 sm:$0xff]  }
0x1915   :  { %v1161_v25 = vpack.c.bf16 %v3150_v11, %v3150_v11  ;;  %v1160_v32 = vpack.c.bf16 %v3147_v9, %v3147_v9 }
0x1917   :  { %1196 = vmatprep.mubr.bf16.mxu1 %v1161_v25  ;;  %v3301_v25 = vld [vmem:[#allocation3 + $0xb0] ss:$8 sps:$4 sm:$0xff]  }
0x1918   :  { %1197 = vmatmul.mubr.bf16.vlgmr.msra.gmra.mxu1 %v1160_v32  ;;  %v3304_v32 = vld [vmem:[#allocation3 + $0xa4] ss:$8 sps:$4 sm:$0xff]  }
0x1919   :  { %1311 = vmatpush1.bf16.msra.mxu1 %v3156_v33 }
0x191a   :  { %1312 = vmatprep.subr.bf16.mxu1 %v3159_v51 }
0x191d   :  { %1313 = vmatpush1.bf16.msra.mxu1 %v3162_v21 }
0x191e   :  { %1314 = vmatprep.subr.bf16.mxu1 %v3165_v62 }
0x1921   :  { %1315 = vmatpush1.bf16.msra.mxu1 %v3168_v42 }
0x1922   :  { %1316 = vmatprep.subr.bf16.mxu1 %v3171_v27 }
0x1925   :  { %1317 = vmatpush1.bf16.msra.mxu1 %v3174_v44 }
0x1926   :  { %1318 = vmatprep.subr.bf16.mxu1 %v3177_v56 }
0x1929   :  { %1319 = vmatpush1.bf16.msra.mxu1 %v3180_v57 }
0x192a   :  { %1320 = vmatprep.subr.bf16.mxu1 %v3183_v60 }
0x192d   :  { %1321 = vmatpush1.bf16.msra.mxu1 %v3186_v37 }
0x192e   :  { %1322 = vmatprep.subr.bf16.mxu1 %v2687_v54  ;;  %v1162_v54 = vmul.f32 %v3147_v9, %v2192_v36 }
0x1931   :  { %1323 = vmatpush1.bf16.msra.mxu1 %v2690_v58 }
0x1932   :  { %1324 = vmatprep.subr.bf16.mxu1 %v2693_v59 }
0x1935   :  { %1325 = vmatpush1.bf16.msra.mxu1 %v2696_v35  ;;  %v1163_v35 = vmul.f32 %v3150_v11, %v2192_v36 }
0x1936   :  { %1326 = vmatprep.subr.bf16.mxu1 %v2699_v53 }
0x1939   :  { %1327 = vmatpush2.bf16.msra.mxu1 %v2702_v48 }
0x193a   :  { %1328 = vmatprep.subr.bf16.mxu1 %v2705_v39 }
0x193d   :  { %1329 = vmatpush2.bf16.msra.mxu1 %v2708_v47 }
0x193e   :  { %1330 = vmatprep.subr.bf16.mxu1 %v2711_v50 }
0x1941   :  { %1331 = vmatpush2.bf16.msra.mxu1 %v2714_v41 }
0x1942   :  { %1332 = vmatprep.subr.bf16.mxu1 %v2717_v49 }
0x1945   :  { %1333 = vmatpush2.bf16.msra.mxu1 %v2720_v45 }
0x1946   :  { %1334 = vmatprep.subr.bf16.mxu1 %v2723_v43 }
0x1949   :  { %1335 = vmatpush2.bf16.msra.mxu1 %v2726_v46 }
0x194a   :  { %1336 = vmatprep.subr.bf16.mxu1 %v2729_v40 }
0x194d   :  { %1337 = vmatpush2.bf16.msra.mxu1 %v2732_v12 }
0x194e   :  { %1338 = vmatprep.subr.bf16.mxu1 %v2735_v15 }
0x1951   :  { %1339 = vmatpush2.bf16.msra.mxu1 %v2738_v16 }
0x1952   :  { %1340 = vmatprep.subr.bf16.mxu1 %v2741_v17 }
0x1955   :  { %1341 = vmatpush2.bf16.msra.mxu1 %v2744_v18 }
0x1956   :  { %1456 = vmatprep.subr.bf16.mxu1 %v3112_v55 }
0x19d8   :  { %v1198_v58 = vpop.f32.mrf.mxu1 }
0x19d9   :  { %v1199_v59 = vadd.f32 %v1198_v58, %v1162_v54  ;;  %v3307_v54 = vld [vmem:[#allocation3 + $0xa0] ss:$8 sps:$4 sm:$0xff]   ;;  %v3310_v58 = vld [vmem:[#allocation3 + $0x94] ss:$8 sps:$4 sm:$0xff]  }
0x19da   :  { %v1200_v53 = vpop.f32.mrf.mxu1 }
0x19db   :  { %v1201_v48 = vadd.f32 %v1200_v53, %v1163_v35  ;;  %v1205_v47 = vmul.f32 %v1199_v59, %v3147_v9  ;;  %v3316_v35 = vld [vmem:[#allocation3 + $0x84] ss:$8 sps:$4 sm:$0xff]   ;;  %v3319_v53 = vld [vmem:[#allocation3 + $0x80] ss:$8 sps:$4 sm:$0xff]  }
0x19dc   :  { %v1202_v39 = vpop.f32.mrf.mxu1 }
0x19dd   :  { %v1206_v50 = vmul.f32 %v1201_v48, %v3150_v11 }
0x19de   :  { %v1203_v41 = vpop.f32.mrf.mxu1 }
0x19df   :  { %v1207_v49 = vadd.f32 %v1206_v50, %v1205_v47 }
0x19e1   :  { %1208 = vadd.xlane.f32.xlu1 %v1207_v49 }
0x1a6a   :  { %v1209_v45 = vpop.xlane.xlu1 %1208 }
0x1a6b   :  { %v1210_v43 = vadd.f32 1e-12, %v1209_v45 }
0x1a6d   :  { %1866 = vrcp.f32 %v1210_v43 }
0x1a6e   :  { %1868 = vrcp.f32 %v1226_v19 }
0x1a7a   :  { %v1867_v46 = vpop.eup %1866 }
0x1a7b   :  { %v1212_v40 = vmul.f32 %v1867_v46, %v3141_v14  ;;  %v1869_v0 = vpop.eup %1868  ;;  %v3283_v14 = vld [vmem:[#allocation3 + $0xe0] ss:$8 sps:$4 sm:$0xff]  }
0x1a7d   :  { %v1213_v12 = vmul.f32 %v1212_v40, %v3147_v9  ;;  %v1214_v15 = vmul.f32 %v1212_v40, %v3150_v11  ;;  %v1217_v16 = vmul.f32 %v1212_v40, %v1199_v59  ;;  %v1218_v17 = vmul.f32 %v1212_v40, %v1201_v48  ;;  %v3313_v59 = vld [vmem:[#allocation3 + $0x90] ss:$8 sps:$4 sm:$0xff]  }
0x1a7f   :  { %v3220_v18 = vadd.f32 %v1213_v12, %v3125_v8  ;;  %v3223_v2 = vadd.f32 %v1214_v15, %v3128_v31  ;;  %v3226_v3 = vsub.f32 %v3131_v34, %v1217_v16  ;;  %v3229_v4 = vsub.f32 %v3134_v28, %v1218_v17  ;;  %v3262_v34 = vld [vmem:[#allocation3 + $0x14] ss:$8 sps:$4 sm:$0xff]   ;;  %v3265_v28 = vld [vmem:[#allocation3 + $0x10] ss:$8 sps:$4 sm:$0xff]  }
0x1a81   :  { %v1221_v5 = vmul.f32 %v3226_v3, %v3226_v3  ;;  %v1222_v6 = vmul.f32 %v3229_v4, %v3229_v4 }
0x1a83   :  { %v1223_v38 = vadd.f32 %v1222_v6, %v1221_v5 }
0x1a85   :  { %1224 = vadd.xlane.f32.xlu0 %v1223_v38 }
0x1b0e   :  { %v3236_v63 = vpop.xlane.xlu0 %1224 }
0x1b0f   :  { %v1228_v26 = vmul.f32 %v1869_v0, %v3236_v63 }
0x1b11   :  { %v1229_v7 = vmul.f32 %v1228_v26, %v3147_v9  ;;  %v1230_v23 = vmul.f32 %v1228_v26, %v3150_v11  ;;  %v3295_v9 = vld [vmem:[#allocation3 + $0xc0] ss:$8 sps:$4 sm:$0xff]   ;;  %v3298_v11 = vld [vmem:[#allocation3 + $0xb4] ss:$8 sps:$4 sm:$0xff]  }
0x1b13   :  { %v3242_v24 = vadd.f32 %v1229_v7, %v3226_v3  ;;  %v3245_v1 = vadd.f32 %v1230_v23, %v3229_v4 }
0x1b15   :  { %v1234_v8 = vpack.c.bf16 %v3245_v1, %v3245_v1  ;;  %v1233_v31 = vpack.c.bf16 %v3242_v24, %v3242_v24  ;;  %v1235_v48 = vmul.f32 %v3242_v24, %v2192_v36  ;;  %v1236_v50 = vmul.f32 %v3245_v1, %v2192_v36 }
0x1b17   :  { %1269 = vmatprep.mubr.bf16.mxu0 %v1234_v8 }
0x1b18   :  { %1270 = vmatmul.mubr.bf16.vlgmr.msra.gmra.mxu0 %v1233_v31 }
0x1b19   :  { %1384 = vmatpush1.bf16.msra.mxu0 %v3156_v33 }
0x1b1a   :  { %1385 = vmatprep.subr.bf16.mxu0 %v3159_v51 }
0x1b1d   :  { %1386 = vmatpush1.bf16.msra.mxu0 %v3162_v21 }
0x1b1e   :  { %1387 = vmatprep.subr.bf16.mxu0 %v3165_v62 }
0x1b21   :  { %1388 = vmatpush1.bf16.msra.mxu0 %v3168_v42 }
0x1b22   :  { %1389 = vmatprep.subr.bf16.mxu0 %v3171_v27 }
0x1b25   :  { %1390 = vmatpush1.bf16.msra.mxu0 %v3174_v44 }
0x1b26   :  { %1391 = vmatprep.subr.bf16.mxu0 %v3177_v56 }
0x1b29   :  { %1392 = vmatpush1.bf16.msra.mxu0 %v3180_v57 }
0x1b2a   :  { %1393 = vmatprep.subr.bf16.mxu0 %v3183_v60 }
0x1b2d   :  { %1394 = vmatpush1.bf16.msra.mxu0 %v3186_v37 }
0x1b2e   :  { %1395 = vmatprep.subr.bf16.mxu0 %v3262_v34 }
0x1b31   :  { %1396 = vmatpush1.bf16.msra.mxu0 %v3265_v28 }
0x1b32   :  { %1397 = vmatprep.subr.bf16.mxu0 %v3268_v29 }
0x1b35   :  { %1398 = vmatpush1.bf16.msra.mxu0 %v3271_v13 }
0x1b36   :  { %1399 = vmatprep.subr.bf16.mxu0 %v3274_v20 }
0x1b39   :  { %1400 = vmatpush2.bf16.msra.mxu0 %v3277_v52 }
0x1b3a   :  { %1401 = vmatprep.subr.bf16.mxu0 %v3280_v22 }
0x1b3d   :  { %1402 = vmatpush2.bf16.msra.mxu0 %v3283_v14 }
0x1b3e   :  { %1403 = vmatprep.subr.bf16.mxu0 %v3286_v61 }
0x1b41   :  { %1404 = vmatpush2.bf16.msra.mxu0 %v3289_v10 }
0x1b42   :  { %1405 = vmatprep.subr.bf16.mxu0 %v3292_v30 }
0x1b45   :  { %1406 = vmatpush2.bf16.msra.mxu0 %v3295_v9 }
0x1b46   :  { %1407 = vmatprep.subr.bf16.mxu0 %v3298_v11 }
0x1b49   :  { %1408 = vmatpush2.bf16.msra.mxu0 %v3301_v25 }
0x1b4a   :  { %1409 = vmatprep.subr.bf16.mxu0 %v3304_v32 }
0x1b4d   :  { %1410 = vmatpush2.bf16.msra.mxu0 %v3307_v54 }
0x1b4e   :  { %1411 = vmatprep.subr.bf16.mxu0 %v3310_v58 }
0x1b51   :  { %1412 = vmatpush2.bf16.msra.mxu0 %v3313_v59 }
0x1b52   :  { %1413 = vmatprep.subr.bf16.mxu0 %v3316_v35 }
0x1b55   :  { %1414 = vmatpush2.bf16.msra.mxu0 %v3319_v53 }
0x1b56   :  { %1529 = vmatprep.subr.bf16.mxu0 %v3112_v55 }
0x1bd8   :  { %v1271_v39 = vpop.f32.mrf.mxu0 }
0x1bd9   :  { %v1272_v47 = vadd.f32 %v1271_v39, %v1235_v48 }
0x1bda   :  { %v1273_v41 = vpop.f32.mrf.mxu0 }
0x1bdb   :  { %v1274_v49 = vadd.f32 %v1273_v41, %v1236_v50  ;;  %v1278_v43 = vmul.f32 %v1272_v47, %v3242_v24 }
0x1bdc   :  { %v1275_v45 = vpop.f32.mrf.mxu0 }
0x1bdd   :  { %v1279_v46 = vmul.f32 %v1274_v49, %v3245_v1 }
0x1bde   :  { %v1276_v40 = vpop.f32.mrf.mxu0 }
0x1bdf   :  { %v1280_v12 = vadd.f32 %v1279_v46, %v1278_v43 }
0x1be1   :  { %1281 = vadd.xlane.f32.xlu1 %v1280_v12 }
0x1c6a   :  { %v1282_v15 = vpop.xlane.xlu1 %1281 }
0x1c6b   :  { %v1283_v16 = vadd.f32 1e-12, %v1282_v15 }
0x1c6d   :  { %1870 = vrcp.f32 %v1283_v16 }
0x1c7a   :  { %v1871_v17 = vpop.eup %1870 }
0x1c7b   :  { %v1285_v5 = vmul.f32 %v1871_v17, %v3236_v63 }
0x1c7d   :  { %v1286_v6 = vmul.f32 %v1285_v5, %v3242_v24  ;;  %v1287_v38 = vmul.f32 %v1285_v5, %v3245_v1  ;;  %v1290_v19 = vmul.f32 %v1285_v5, %v1272_v47  ;;  %v1291_v0 = vmul.f32 %v1285_v5, %v1274_v49 }
0x1c7f   :  { %v3333_v26 = vadd.f32 %v1286_v6, %v3220_v18  ;;  %v3336_v7 = vadd.f32 %v1287_v38, %v3223_v2  ;;  %v3339_v23 = vsub.f32 %v3226_v3, %v1290_v19  ;;  %v3342_v8 = vsub.f32 %v3229_v4, %v1291_v0 }
0x1c80   :  { %v1299_v18 = vadd.f32 1e-12, %v3236_v63 }
0x1c81   :  { %v1294_v31 = vmul.f32 %v3339_v23, %v3339_v23  ;;  %v1295_v48 = vmul.f32 %v3342_v8, %v3342_v8 }
0x1c82   :  { %1872 = vrcp.f32 %v1299_v18 }
0x1c83   :  { %v1296_v39 = vadd.f32 %v1295_v48, %v1294_v31 }
0x1c85   :  { %1297 = vadd.xlane.f32.xlu0 %v1296_v39 }
0x1c8f   :  { %v1873_v47 = vpop.eup %1872 }
0x1d0e   :  { %v3349_v2 = vpop.xlane.xlu0 %1297 }
0x1d0f   :  { %v1301_v3 = vmul.f32 %v1873_v47, %v3349_v2 }
0x1d11   :  { %v1302_v50 = vmul.f32 %v1301_v3, %v3242_v24  ;;  %v1303_v4 = vmul.f32 %v1301_v3, %v3245_v1 }
0x1d13   :  { %v3355_v41 = vadd.f32 %v1302_v50, %v3339_v23  ;;  %v3358_v49 = vadd.f32 %v1303_v4, %v3342_v8 }
0x1d15   :  { %v1307_v45 = vpack.c.bf16 %v3358_v49, %v3358_v49  ;;  %v1306_v63 = vpack.c.bf16 %v3355_v41, %v3355_v41  ;;  %v1308_v24 = vmul.f32 %v3355_v41, %v2192_v36  ;;  %v1309_v46 = vmul.f32 %v3358_v49, %v2192_v36 }
0x1d17   :  { %1342 = vmatprep.mubr.bf16.mxu1 %v1307_v45 }
0x1d18   :  { %1343 = vmatmul.mubr.bf16.vlgmr.msra.gmra.mxu1 %v1306_v63 }
0x1d19   :  { %1457 = vmatpush1.bf16.msra.mxu1 %v3156_v33 }
0x1d1a   :  { %1458 = vmatprep.subr.bf16.mxu1 %v3159_v51 }
0x1d1d   :  { %1459 = vmatpush1.bf16.msra.mxu1 %v3162_v21 }
0x1d1e   :  { %1460 = vmatprep.subr.bf16.mxu1 %v3165_v62 }
0x1d21   :  { %1461 = vmatpush1.bf16.msra.mxu1 %v3168_v42 }
0x1d22   :  { %1462 = vmatprep.subr.bf16.mxu1 %v3171_v27 }
0x1d25   :  { %1463 = vmatpush1.bf16.msra.mxu1 %v3174_v44 }
0x1d26   :  { %1464 = vmatprep.subr.bf16.mxu1 %v3177_v56 }
0x1d29   :  { %1465 = vmatpush1.bf16.msra.mxu1 %v3180_v57 }
0x1d2a   :  { %1466 = vmatprep.subr.bf16.mxu1 %v3183_v60 }
0x1d2d   :  { %1467 = vmatpush1.bf16.msra.mxu1 %v3186_v37 }
0x1d2e   :  { %1468 = vmatprep.subr.bf16.mxu1 %v3262_v34 }
0x1d31   :  { %1469 = vmatpush1.bf16.msra.mxu1 %v3265_v28 }
0x1d32   :  { %1470 = vmatprep.subr.bf16.mxu1 %v3268_v29 }
0x1d35   :  { %1471 = vmatpush1.bf16.msra.mxu1 %v3271_v13 }
0x1d36   :  { %1472 = vmatprep.subr.bf16.mxu1 %v3274_v20 }
0x1d39   :  { %1473 = vmatpush2.bf16.msra.mxu1 %v3277_v52 }
0x1d3a   :  { %1474 = vmatprep.subr.bf16.mxu1 %v3280_v22 }
0x1d3d   :  { %1475 = vmatpush2.bf16.msra.mxu1 %v3283_v14 }
0x1d3e   :  { %1476 = vmatprep.subr.bf16.mxu1 %v3286_v61 }
0x1d41   :  { %1477 = vmatpush2.bf16.msra.mxu1 %v3289_v10 }
0x1d42   :  { %1478 = vmatprep.subr.bf16.mxu1 %v3292_v30 }
0x1d45   :  { %1479 = vmatpush2.bf16.msra.mxu1 %v3295_v9 }
0x1d46   :  { %1480 = vmatprep.subr.bf16.mxu1 %v3298_v11 }
0x1d49   :  { %1481 = vmatpush2.bf16.msra.mxu1 %v3301_v25 }
0x1d4a   :  { %1482 = vmatprep.subr.bf16.mxu1 %v3304_v32 }
0x1d4d   :  { %1483 = vmatpush2.bf16.msra.mxu1 %v3307_v54 }
0x1d4e   :  { %1484 = vmatprep.subr.bf16.mxu1 %v3310_v58 }
0x1d51   :  { %1485 = vmatpush2.bf16.msra.mxu1 %v3313_v59 }
0x1d52   :  { %1486 = vmatprep.subr.bf16.mxu1 %v3316_v35 }
0x1d55   :  { %1487 = vmatpush2.bf16.msra.mxu1 %v3319_v53 }
0x1d56   :  { %1602 = vmatprep.subr.bf16.mxu1 %v3112_v55 }
0x1dd8   :  { %v1344_v1 = vpop.f32.mrf.mxu1 }
0x1dd9   :  { %v1345_v43 = vadd.f32 %v1344_v1, %v1308_v24 }
0x1dda   :  { %v1346_v40 = vpop.f32.mrf.mxu1 }
0x1ddb   :  { %v1347_v12 = vadd.f32 %v1346_v40, %v1309_v46  ;;  %v1351_v16 = vmul.f32 %v1345_v43, %v3355_v41 }
0x1ddc   :  { %v1348_v15 = vpop.f32.mrf.mxu1 }
0x1ddd   :  { %v1352_v17 = vmul.f32 %v1347_v12, %v3358_v49 }
0x1dde   :  { %v1349_v5 = vpop.f32.mrf.mxu1 }
0x1ddf   :  { %v1353_v6 = vadd.f32 %v1352_v17, %v1351_v16 }
0x1de1   :  { %1354 = vadd.xlane.f32.xlu1 %v1353_v6 }
0x1e6a   :  { %v1355_v38 = vpop.xlane.xlu1 %1354 }
0x1e6b   :  { %v1356_v19 = vadd.f32 1e-12, %v1355_v38 }
0x1e6d   :  { %1874 = vrcp.f32 %v1356_v19 }
0x1e7a   :  { %v1875_v0 = vpop.eup %1874 }
0x1e7b   :  { %v1358_v31 = vmul.f32 %v1875_v0, %v3349_v2 }
0x1e7d   :  { %v1359_v48 = vmul.f32 %v1358_v31, %v3355_v41  ;;  %v1360_v39 = vmul.f32 %v1358_v31, %v3358_v49  ;;  %v1363_v18 = vmul.f32 %v1358_v31, %v1345_v43  ;;  %v1364_v47 = vmul.f32 %v1358_v31, %v1347_v12 }
0x1e7f   :  { %v3406_v3 = vadd.f32 %v1359_v48, %v3333_v26  ;;  %v3409_v50 = vadd.f32 %v1360_v39, %v3336_v7  ;;  %v3412_v4 = vsub.f32 %v3339_v23, %v1363_v18  ;;  %v3415_v45 = vsub.f32 %v3342_v8, %v1364_v47 }
0x1e80   :  { %v1372_v26 = vadd.f32 1e-12, %v3349_v2 }
0x1e81   :  { %v1367_v63 = vmul.f32 %v3412_v4, %v3412_v4  ;;  %v1368_v24 = vmul.f32 %v3415_v45, %v3415_v45 }
0x1e82   :  { %1876 = vrcp.f32 %v1372_v26 }
0x1e83   :  { %v1369_v1 = vadd.f32 %v1368_v24, %v1367_v63 }
0x1e85   :  { %1370 = vadd.xlane.f32.xlu0 %v1369_v1 }
0x1e8f   :  { %v1877_v43 = vpop.eup %1876 }
0x1f0e   :  { %v3422_v7 = vpop.xlane.xlu0 %1370 }
0x1f0f   :  { %v1374_v23 = vmul.f32 %v1877_v43, %v3422_v7 }
0x1f11   :  { %v1375_v46 = vmul.f32 %v1374_v23, %v3355_v41  ;;  %v1376_v8 = vmul.f32 %v1374_v23, %v3358_v49 }
0x1f13   :  { %v3428_v40 = vadd.f32 %v1375_v46, %v3412_v4  ;;  %v3431_v12 = vadd.f32 %v1376_v8, %v3415_v45 }
0x1f15   :  { %v1380_v15 = vpack.c.bf16 %v3431_v12, %v3431_v12  ;;  %v1379_v2 = vpack.c.bf16 %v3428_v40, %v3428_v40  ;;  %v1381_v41 = vmul.f32 %v3428_v40, %v2192_v36  ;;  %v1382_v17 = vmul.f32 %v3431_v12, %v2192_v36 }
0x1f17   :  { %1415 = vmatprep.mubr.bf16.mxu0 %v1380_v15 }
0x1f18   :  { %1416 = vmatmul.mubr.bf16.vlgmr.msra.gmra.mxu0 %v1379_v2 }
0x1f19   :  { %1530 = vmatpush1.bf16.msra.mxu0 %v3156_v33 }
0x1f1a   :  { %1531 = vmatprep.subr.bf16.mxu0 %v3159_v51 }
0x1f1d   :  { %1532 = vmatpush1.bf16.msra.mxu0 %v3162_v21 }
0x1f1e   :  { %1533 = vmatprep.subr.bf16.mxu0 %v3165_v62 }
0x1f21   :  { %1534 = vmatpush1.bf16.msra.mxu0 %v3168_v42 }
0x1f22   :  { %1535 = vmatprep.subr.bf16.mxu0 %v3171_v27 }
0x1f25   :  { %1536 = vmatpush1.bf16.msra.mxu0 %v3174_v44 }
0x1f26   :  { %1537 = vmatprep.subr.bf16.mxu0 %v3177_v56 }
0x1f29   :  { %1538 = vmatpush1.bf16.msra.mxu0 %v3180_v57 }
0x1f2a   :  { %1539 = vmatprep.subr.bf16.mxu0 %v3183_v60 }
0x1f2d   :  { %1540 = vmatpush1.bf16.msra.mxu0 %v3186_v37 }
0x1f2e   :  { %1541 = vmatprep.subr.bf16.mxu0 %v3262_v34 }
0x1f31   :  { %1542 = vmatpush1.bf16.msra.mxu0 %v3265_v28 }
0x1f32   :  { %1543 = vmatprep.subr.bf16.mxu0 %v3268_v29 }
0x1f35   :  { %1544 = vmatpush1.bf16.msra.mxu0 %v3271_v13 }
0x1f36   :  { %1545 = vmatprep.subr.bf16.mxu0 %v3274_v20 }
0x1f39   :  { %1546 = vmatpush2.bf16.msra.mxu0 %v3277_v52 }
0x1f3a   :  { %1547 = vmatprep.subr.bf16.mxu0 %v3280_v22 }
0x1f3d   :  { %1548 = vmatpush2.bf16.msra.mxu0 %v3283_v14 }
0x1f3e   :  { %1549 = vmatprep.subr.bf16.mxu0 %v3286_v61 }
0x1f41   :  { %1550 = vmatpush2.bf16.msra.mxu0 %v3289_v10 }
0x1f42   :  { %1551 = vmatprep.subr.bf16.mxu0 %v3292_v30 }
0x1f45   :  { %1552 = vmatpush2.bf16.msra.mxu0 %v3295_v9 }
0x1f46   :  { %1553 = vmatprep.subr.bf16.mxu0 %v3298_v11 }
0x1f49   :  { %1554 = vmatpush2.bf16.msra.mxu0 %v3301_v25 }
0x1f4a   :  { %1555 = vmatprep.subr.bf16.mxu0 %v3304_v32 }
0x1f4d   :  { %1556 = vmatpush2.bf16.msra.mxu0 %v3307_v54 }
0x1f4e   :  { %1557 = vmatprep.subr.bf16.mxu0 %v3310_v58 }
0x1f51   :  { %1558 = vmatpush2.bf16.msra.mxu0 %v3313_v59 }
0x1f52   :  { %1559 = vmatprep.subr.bf16.mxu0 %v3316_v35 }
0x1f55   :  { %1560 = vmatpush2.bf16.msra.mxu0 %v3319_v53 }
0x1f56   :  { %1675 = vmatprep.subr.bf16.mxu0 %v3112_v55 }
0x1fd8   :  { %v1417_v49 = vpop.f32.mrf.mxu0 }
0x1fd9   :  { %v1418_v16 = vadd.f32 %v1417_v49, %v1381_v41 }
0x1fda   :  { %v1419_v5 = vpop.f32.mrf.mxu0 }
0x1fdb   :  { %v1420_v6 = vadd.f32 %v1419_v5, %v1382_v17  ;;  %v1424_v19 = vmul.f32 %v1418_v16, %v3428_v40 }
0x1fdc   :  { %v1421_v38 = vpop.f32.mrf.mxu0 }
0x1fdd   :  { %v1425_v0 = vmul.f32 %v1420_v6, %v3431_v12 }
0x1fde   :  { %v1422_v31 = vpop.f32.mrf.mxu0 }
0x1fdf   :  { %v1426_v48 = vadd.f32 %v1425_v0, %v1424_v19 }
0x1fe1   :  { %1427 = vadd.xlane.f32.xlu1 %v1426_v48 }
0x206a   :  { %v1428_v39 = vpop.xlane.xlu1 %1427 }
0x206b   :  { %v1429_v55 = vadd.f32 1e-12, %v1428_v39 }
0x206d   :  { %1878 = vrcp.f32 %v1429_v55 }
0x207a   :  { %v1879_v18 = vpop.eup %1878 }
0x207b   :  { %v1431_v47 = vmul.f32 %v1879_v18, %v3422_v7 }
0x207d   :  { %v1432_v63 = vmul.f32 %v1431_v47, %v3428_v40  ;;  %v1433_v24 = vmul.f32 %v1431_v47, %v3431_v12  ;;  %v1436_v1 = vmul.f32 %v1431_v47, %v1418_v16  ;;  %v1437_v26 = vmul.f32 %v1431_v47, %v1420_v6 }
0x207f   :  { %v3479_v43 = vadd.f32 %v1432_v63, %v3406_v3  ;;  %v3482_v23 = vadd.f32 %v1433_v24, %v3409_v50  ;;  %v3485_v46 = vsub.f32 %v3412_v4, %v1436_v1  ;;  %v3488_v8 = vsub.f32 %v3415_v45, %v1437_v26 }
0x2080   :  { %v1445_v3 = vadd.f32 1e-12, %v3422_v7 }
0x2081   :  { %v1440_v15 = vmul.f32 %v3485_v46, %v3485_v46  ;;  %v1441_v2 = vmul.f32 %v3488_v8, %v3488_v8 }
0x2082   :  { %1880 = vrcp.f32 %v1445_v3 }
0x2083   :  { %v1442_v41 = vadd.f32 %v1441_v2, %v1440_v15 }
0x2085   :  { %1443 = vadd.xlane.f32.xlu0 %v1442_v41 }
0x208f   :  { %v1881_v49 = vpop.eup %1880 }
0x210e   :  { %v3495_v50 = vpop.xlane.xlu0 %1443 }
0x210f   :  { %v1447_v4 = vmul.f32 %v1881_v49, %v3495_v50 }
0x2111   :  { %v1448_v16 = vmul.f32 %v1447_v4, %v3428_v40  ;;  %v1449_v45 = vmul.f32 %v1447_v4, %v3431_v12 }
0x2113   :  { %v3501_v17 = vadd.f32 %v1448_v16, %v3485_v46  ;;  %v3504_v5 = vadd.f32 %v1449_v45, %v3488_v8 }
0x2115   :  { %v1453_v6 = vpack.c.bf16 %v3504_v5, %v3504_v5  ;;  %v1452_v7 = vpack.c.bf16 %v3501_v17, %v3501_v17  ;;  %v1454_v40 = vmul.f32 %v3501_v17, %v2192_v36  ;;  %v1455_v19 = vmul.f32 %v3504_v5, %v2192_v36 }
0x2117   :  { %1488 = vmatprep.mubr.bf16.mxu1 %v1453_v6 }
0x2118   :  { %1489 = vmatmul.mubr.bf16.vlgmr.msra.gmra.mxu1 %v1452_v7 }
0x2119   :  { %1603 = vmatpush1.bf16.msra.mxu1 %v3156_v33 }
0x211a   :  { %1604 = vmatprep.subr.bf16.mxu1 %v3159_v51 }
0x211d   :  { %1605 = vmatpush1.bf16.msra.mxu1 %v3162_v21 }
0x211e   :  { %1606 = vmatprep.subr.bf16.mxu1 %v3165_v62 }
0x2121   :  { %1607 = vmatpush1.bf16.msra.mxu1 %v3168_v42 }
0x2122   :  { %1608 = vmatprep.subr.bf16.mxu1 %v3171_v27 }
0x2125   :  { %1609 = vmatpush1.bf16.msra.mxu1 %v3174_v44 }
0x2126   :  { %1610 = vmatprep.subr.bf16.mxu1 %v3177_v56 }
0x2129   :  { %1611 = vmatpush1.bf16.msra.mxu1 %v3180_v57 }
0x212a   :  { %1612 = vmatprep.subr.bf16.mxu1 %v3183_v60 }
0x212d   :  { %1613 = vmatpush1.bf16.msra.mxu1 %v3186_v37 }
0x212e   :  { %1614 = vmatprep.subr.bf16.mxu1 %v3262_v34 }
0x2131   :  { %1615 = vmatpush1.bf16.msra.mxu1 %v3265_v28 }
0x2132   :  { %1616 = vmatprep.subr.bf16.mxu1 %v3268_v29 }
0x2135   :  { %1617 = vmatpush1.bf16.msra.mxu1 %v3271_v13 }
0x2136   :  { %1618 = vmatprep.subr.bf16.mxu1 %v3274_v20 }
0x2139   :  { %1619 = vmatpush2.bf16.msra.mxu1 %v3277_v52 }
0x213a   :  { %1620 = vmatprep.subr.bf16.mxu1 %v3280_v22 }
0x213d   :  { %1621 = vmatpush2.bf16.msra.mxu1 %v3283_v14 }
0x213e   :  { %1622 = vmatprep.subr.bf16.mxu1 %v3286_v61 }
0x2141   :  { %1623 = vmatpush2.bf16.msra.mxu1 %v3289_v10 }
0x2142   :  { %1624 = vmatprep.subr.bf16.mxu1 %v3292_v30 }
0x2145   :  { %1625 = vmatpush2.bf16.msra.mxu1 %v3295_v9 }
0x2146   :  { %1626 = vmatprep.subr.bf16.mxu1 %v3298_v11 }
0x2149   :  { %1627 = vmatpush2.bf16.msra.mxu1 %v3301_v25 }
0x214a   :  { %1628 = vmatprep.subr.bf16.mxu1 %v3304_v32 }
0x214d   :  { %1629 = vmatpush2.bf16.msra.mxu1 %v3307_v54 }
0x214e   :  { %1630 = vmatprep.subr.bf16.mxu1 %v3310_v58 }
0x2151   :  { %1631 = vmatpush2.bf16.msra.mxu1 %v3313_v59 }
0x2152   :  { %1632 = vmatprep.subr.bf16.mxu1 %v3316_v35 }
0x2155   :  { %1633 = vmatpush2.bf16.msra.mxu1 %v3319_v53 }
0x21d8   :  { %v1490_v12 = vpop.f32.mrf.mxu1 }
0x21d9   :  { %v1491_v38 = vadd.f32 %v1490_v12, %v1454_v40 }
0x21da   :  { %v1492_v0 = vpop.f32.mrf.mxu1 }
0x21db   :  { %v1493_v31 = vadd.f32 %v1492_v0, %v1455_v19  ;;  %v1497_v39 = vmul.f32 %v1491_v38, %v3501_v17 }
0x21dc   :  { %v1494_v48 = vpop.f32.mrf.mxu1 }
0x21dd   :  { %v1498_v55 = vmul.f32 %v1493_v31, %v3504_v5 }
0x21de   :  { %v1495_v18 = vpop.f32.mrf.mxu1 }
0x21df   :  { %v1499_v47 = vadd.f32 %v1498_v55, %v1497_v39 }
0x21e1   :  { %1500 = vadd.xlane.f32.xlu1 %v1499_v47 }
0x226a   :  { %v1501_v63 = vpop.xlane.xlu1 %1500 }
0x226b   :  { %v1502_v24 = vadd.f32 1e-12, %v1501_v63 }
0x226d   :  { %1882 = vrcp.f32 %v1502_v24 }
0x227a   :  { %v1883_v1 = vpop.eup %1882 }
0x227b   :  { %v1504_v26 = vmul.f32 %v1883_v1, %v3495_v50 }
0x227d   :  { %v1505_v15 = vmul.f32 %v1504_v26, %v3501_v17  ;;  %v1506_v2 = vmul.f32 %v1504_v26, %v3504_v5  ;;  %v1509_v41 = vmul.f32 %v1504_v26, %v1491_v38  ;;  %v1510_v3 = vmul.f32 %v1504_v26, %v1493_v31 }
0x227f   :  { %v3551_v49 = vsub.f32 %v3485_v46, %v1509_v41  ;;  %v3554_v4 = vsub.f32 %v3488_v8, %v1510_v3  ;;  %v3557_v16 = vadd.f32 %v1505_v15, %v3479_v43  ;;  %v3560_v45 = vadd.f32 %v1506_v2, %v3482_v23 }
0x2280   :  { %v1518_v46 = vadd.f32 1e-12, %v3495_v50 }
0x2281   :  { %v1513_v6 = vmul.f32 %v3551_v49, %v3551_v49  ;;  %v1514_v7 = vmul.f32 %v3554_v4, %v3554_v4 }
0x2282   :  { %1884 = vrcp.f32 %v1518_v46 }
0x2283   :  { %v1515_v40 = vadd.f32 %v1514_v7, %v1513_v6 }
0x2285   :  { %1516 = vadd.xlane.f32.xlu0 %v1515_v40 }
0x228f   :  { %v1885_v12 = vpop.eup %1884 }
0x230e   :  { %v3567_v8 = vpop.xlane.xlu0 %1516 }
0x230f   :  { %v1520_v43 = vmul.f32 %v1885_v12, %v3567_v8 }
0x2311   :  { %v1521_v38 = vmul.f32 %v1520_v43, %v3501_v17  ;;  %v1522_v23 = vmul.f32 %v1520_v43, %v3504_v5 }
0x2313   :  { %v3573_v19 = vadd.f32 %v1521_v38, %v3551_v49  ;;  %v3576_v0 = vadd.f32 %v1522_v23, %v3554_v4 }
0x2315   :  { %v1526_v31 = vpack.c.bf16 %v3576_v0, %v3576_v0  ;;  %v1525_v50 = vpack.c.bf16 %v3573_v19, %v3573_v19 }
0x2317   :  { %1561 = vmatprep.mubr.bf16.mxu0 %v1526_v31 }
0x2318   :  { %1562 = vmatmul.mubr.bf16.vlgmr.msra.gmra.mxu0 %v1525_v50 }
0x2319   :  { %1676 = vmatpush1.bf16.msra.mxu0 %v3156_v33  ;;  %v1527_v33 = vmul.f32 %v3573_v19, %v2192_v36 }
0x231a   :  { %1677 = vmatprep.subr.bf16.mxu0 %v3159_v51 }
0x231d   :  { %1678 = vmatpush1.bf16.msra.mxu0 %v3162_v21 }
0x231e   :  { %1679 = vmatprep.subr.bf16.mxu0 %v3165_v62  ;;  %v1528_v62 = vmul.f32 %v3576_v0, %v2192_v36 }
0x2321   :  { %1680 = vmatpush1.bf16.msra.mxu0 %v3168_v42 }
0x2322   :  { %1681 = vmatprep.subr.bf16.mxu0 %v3171_v27 }
0x2325   :  { %1682 = vmatpush1.bf16.msra.mxu0 %v3174_v44 }
0x2326   :  { %1683 = vmatprep.subr.bf16.mxu0 %v3177_v56 }
0x2329   :  { %1684 = vmatpush1.bf16.msra.mxu0 %v3180_v57 }
0x232a   :  { %1685 = vmatprep.subr.bf16.mxu0 %v3183_v60 }
0x232d   :  { %1686 = vmatpush1.bf16.msra.mxu0 %v3186_v37 }
0x232e   :  { %1687 = vmatprep.subr.bf16.mxu0 %v3262_v34 }
0x2331   :  { %1688 = vmatpush1.bf16.msra.mxu0 %v3265_v28 }
0x2332   :  { %1689 = vmatprep.subr.bf16.mxu0 %v3268_v29 }
0x2335   :  { %1690 = vmatpush1.bf16.msra.mxu0 %v3271_v13 }
0x2336   :  { %1691 = vmatprep.subr.bf16.mxu0 %v3274_v20 }
0x2339   :  { %1692 = vmatpush2.bf16.msra.mxu0 %v3277_v52 }
0x233a   :  { %1693 = vmatprep.subr.bf16.mxu0 %v3280_v22 }
0x233d   :  { %1694 = vmatpush2.bf16.msra.mxu0 %v3283_v14 }
0x233e   :  { %1695 = vmatprep.subr.bf16.mxu0 %v3286_v61 }
0x2341   :  { %1696 = vmatpush2.bf16.msra.mxu0 %v3289_v10 }
0x2342   :  { %1697 = vmatprep.subr.bf16.mxu0 %v3292_v30 }
0x2345   :  { %1698 = vmatpush2.bf16.msra.mxu0 %v3295_v9 }
0x2346   :  { %1699 = vmatprep.subr.bf16.mxu0 %v3298_v11 }
0x2349   :  { %1700 = vmatpush2.bf16.msra.mxu0 %v3301_v25 }
0x234a   :  { %1701 = vmatprep.subr.bf16.mxu0 %v3304_v32 }
0x234d   :  { %1702 = vmatpush2.bf16.msra.mxu0 %v3307_v54  ;;  %v1591_v54 = vadd.f32 1e-12, %v3567_v8 }
0x234e   :  { %1703 = vmatprep.subr.bf16.mxu0 %v3310_v58 }
0x2351   :  { %1704 = vmatpush2.bf16.msra.mxu0 %v3313_v59 }
0x2352   :  { %1705 = vmatprep.subr.bf16.mxu0 %v3316_v35 }
0x2355   :  { %1706 = vmatpush2.bf16.msra.mxu0 %v3319_v53 }
0x23d8   :  { %v1563_v51 = vpop.f32.mrf.mxu0 }
0x23d9   :  { %v1564_v21 = vadd.f32 %v1563_v51, %v1527_v33 }
0x23da   :  { %v1565_v42 = vpop.f32.mrf.mxu0 }
0x23db   :  { %v1566_v27 = vadd.f32 %v1565_v42, %v1528_v62  ;;  %v1570_v56 = vmul.f32 %v1564_v21, %v3573_v19 }
0x23dc   :  { %v1567_v44 = vpop.f32.mrf.mxu0 }
0x23dd   :  { %v1571_v57 = vmul.f32 %v1566_v27, %v3576_v0 }
0x23de   :  { %v1568_v60 = vpop.f32.mrf.mxu0 }
0x23df   :  { %v1572_v37 = vadd.f32 %v1571_v57, %v1570_v56 }
0x23e1   :  { %1573 = vadd.xlane.f32.xlu1 %v1572_v37 }
0x246a   :  { %v1574_v34 = vpop.xlane.xlu1 %1573 }
0x246b   :  { %v1575_v28 = vadd.f32 1e-12, %v1574_v34 }
0x246d   :  { %1886 = vrcp.f32 %v1575_v28 }
0x246e   :  { %1888 = vrcp.f32 %v1591_v54 }
0x247a   :  { %v1887_v29 = vpop.eup %1886 }
0x247b   :  { %v1577_v13 = vmul.f32 %v1887_v29, %v3567_v8  ;;  %v1889_v58 = vpop.eup %1888 }
0x247d   :  { %v1578_v20 = vmul.f32 %v1577_v13, %v3573_v19  ;;  %v1579_v52 = vmul.f32 %v1577_v13, %v3576_v0  ;;  %v1582_v22 = vmul.f32 %v1577_v13, %v1564_v21  ;;  %v1583_v14 = vmul.f32 %v1577_v13, %v1566_v27 }
0x247f   :  { %v1584_v61 = vsub.f32 %v3551_v49, %v1582_v22  ;;  %v1585_v10 = vsub.f32 %v3554_v4, %v1583_v14  ;;  %v1580_v30 = vadd.f32 %v1578_v20, %v3557_v16  ;;  %v1581_v9 = vadd.f32 %v1579_v52, %v3560_v45 }
0x2481   :  { %v1586_v11 = vmul.f32 %v1584_v61, %v1584_v61  ;;  %v1587_v25 = vmul.f32 %v1585_v10, %v1585_v10 }
0x2483   :  { %v1588_v32 = vadd.f32 %v1587_v25, %v1586_v11 }
0x2485   :  { %1589 = vadd.xlane.f32.xlu0 %v1588_v32 }
0x250e   :  { %v1590_v59 = vpop.xlane.xlu0 %1589 }
0x250f   :  { %v1593_v35 = vmul.f32 %v1889_v58, %v1590_v59  ;;  %v1664_v50 = vadd.f32 1e-12, %v1590_v59 }
0x2511   :  { %v1594_v53 = vmul.f32 %v1593_v35, %v3573_v19  ;;  %v1595_v17 = vmul.f32 %v1593_v35, %v3576_v0 }
0x2513   :  { %v1596_v5 = vadd.f32 %v1594_v53, %v1584_v61  ;;  %v1597_v48 = vadd.f32 %v1595_v17, %v1585_v10 }
0x2515   :  { %v1599_v39 = vpack.c.bf16 %v1597_v48, %v1597_v48  ;;  %v1598_v55 = vpack.c.bf16 %v1596_v5, %v1596_v5  ;;  %v1600_v18 = vmul.f32 %v1596_v5, %v2192_v36  ;;  %v1601_v24 = vmul.f32 %v1597_v48, %v2192_v36 }
0x2517   :  { %1634 = vmatprep.mubr.bf16.mxu1 %v1599_v39 }
0x2518   :  { %1635 = vmatmul.mubr.bf16.vlgmr.msra.gmra.mxu1 %v1598_v55 }
0x25d8   :  { %v1636_v47 = vpop.f32.mrf.mxu1 }
0x25d9   :  { %v1637_v63 = vadd.f32 %v1636_v47, %v1600_v18 }
0x25da   :  { %v1638_v1 = vpop.f32.mrf.mxu1 }
0x25db   :  { %v1639_v26 = vadd.f32 %v1638_v1, %v1601_v24  ;;  %v1643_v2 = vmul.f32 %v1637_v63, %v1596_v5 }
0x25dc   :  { %v1640_v15 = vpop.f32.mrf.mxu1 }
0x25dd   :  { %v1644_v41 = vmul.f32 %v1639_v26, %v1597_v48 }
0x25de   :  { %v1641_v3 = vpop.f32.mrf.mxu1 }
0x25df   :  { %v1645_v49 = vadd.f32 %v1644_v41, %v1643_v2 }
0x25e1   :  { %1646 = vadd.xlane.f32.xlu1 %v1645_v49 }
0x266a   :  { %v1647_v4 = vpop.xlane.xlu1 %1646 }
0x266b   :  { %v1648_v16 = vadd.f32 1e-12, %v1647_v4 }
0x266d   :  { %1890 = vrcp.f32 %v1648_v16 }
0x266e   :  { %1892 = vrcp.f32 %v1664_v50 }
0x267a   :  { %v1891_v45 = vpop.eup %1890 }
0x267b   :  { %v1650_v6 = vmul.f32 %v1891_v45, %v1590_v59  ;;  %v1893_v33 = vpop.eup %1892 }
0x267d   :  { %v1655_v7 = vmul.f32 %v1650_v6, %v1637_v63  ;;  %v1656_v40 = vmul.f32 %v1650_v6, %v1639_v26  ;;  %v1651_v46 = vmul.f32 %v1650_v6, %v1596_v5  ;;  %v1652_v12 = vmul.f32 %v1650_v6, %v1597_v48 }
0x267f   :  { %v1657_v8 = vsub.f32 %v1584_v61, %v1655_v7  ;;  %v1658_v43 = vsub.f32 %v1585_v10, %v1656_v40  ;;  %v1653_v38 = vadd.f32 %v1651_v46, %v1580_v30  ;;  %v1654_v23 = vadd.f32 %v1652_v12, %v1581_v9 }
0x2681   :  { %v1659_v19 = vmul.f32 %v1657_v8, %v1657_v8  ;;  %v1660_v0 = vmul.f32 %v1658_v43, %v1658_v43 }
0x2683   :  { %v1661_v31 = vadd.f32 %v1660_v0, %v1659_v19 }
0x2685   :  { %1662 = vadd.xlane.f32.xlu0 %v1661_v31 }
0x270e   :  { %v1663_v51 = vpop.xlane.xlu0 %1662 }
0x270f   :  { %v1666_v21 = vmul.f32 %v1893_v33, %v1663_v51 }
0x2711   :  { %v1667_v62 = vmul.f32 %v1666_v21, %v1596_v5  ;;  %v1668_v42 = vmul.f32 %v1666_v21, %v1597_v48 }
0x2713   :  { %v1669_v27 = vadd.f32 %v1667_v62, %v1657_v8  ;;  %v1670_v44 = vadd.f32 %v1668_v42, %v1658_v43 }
0x2715   :  { %v1672_v56 = vpack.c.bf16 %v1670_v44, %v1670_v44  ;;  %v1671_v57 = vpack.c.bf16 %v1669_v27, %v1669_v27  ;;  %v1673_v60 = vmul.f32 %v1669_v27, %v2192_v36  ;;  %v1674_v28 = vmul.f32 %v1670_v44, %v2192_v36 }
0x2717   :  { %1707 = vmatprep.mubr.bf16.mxu0 %v1672_v56 }
0x2718   :  { %1708 = vmatmul.mubr.bf16.vlgmr.msra.gmra.mxu0 %v1671_v57 }
0x27d8   :  { %v1709_v37 = vpop.f32.mrf.mxu0 }
0x27d9   :  { %v1710_v34 = vadd.f32 %v1709_v37, %v1673_v60 }
0x27da   :  { %v1711_v29 = vpop.f32.mrf.mxu0 }
0x27db   :  { %v1712_v13 = vadd.f32 %v1711_v29, %v1674_v28  ;;  %v1716_v52 = vmul.f32 %v1710_v34, %v1669_v27 }
0x27dc   :  { %v1713_v20 = vpop.f32.mrf.mxu0 }
0x27dd   :  { %v1717_v22 = vmul.f32 %v1712_v13, %v1670_v44 }
0x27de   :  { %v1714_v14 = vpop.f32.mrf.mxu0 }
0x27df   :  { %v1718_v61 = vadd.f32 %v1717_v22, %v1716_v52 }
0x27e1   :  { %1719 = vadd.xlane.f32.xlu1 %v1718_v61 }
0x286a   :  { %v1720_v10 = vpop.xlane.xlu1 %1719 }
0x286b   :  { %v1721_v30 = vadd.f32 1e-12, %v1720_v10 }
0x286d   :  { %1894 = vrcp.f32 %v1721_v30 }
0x287a   :  { %v1895_v9 = vpop.eup %1894 }
0x287b   :  { %v1723_v11 = vmul.f32 %v1895_v9, %v1663_v51 }
0x287d   :  { %v1724_v25 = vmul.f32 %v1723_v11, %v1669_v27  ;;  %v1725_v32 = vmul.f32 %v1723_v11, %v1670_v44 }
0x287f   :  { %v1726_v54 = vadd.f32 %v1724_v25, %v1653_v38  ;;  %v1727_v58 = vadd.f32 %v1725_v32, %v1654_v23 }
0x2881   :  { %1728 = vst [vmem:[%s3643_s4] sm:$0xff] %v1726_v54  ;;  %1729 = vst [vmem:[%s3643_s4 + $0x8] sm:$0xff] %v1727_v58 }
0x2882   :  { %1734 = vsyncpa [#allocation4], 1 }

</bundles_post_ra>
